<compile_context>
chip_gen: v7x
topology: tpu7x:2x2x1
jax: 0.10.0
libtpu: 0.0.40
codegen_flags: <defaults>
</compile_context>

<pallas_src>
import functools
import math

import jax
import jax.numpy as jnp
from jax import lax
from jax.experimental import pallas as pl
from jax.experimental.pallas import tpu as pltpu

D_MODEL = 32
N_HEADS = 4
DIM_FF = 64
LN_EPS = 1e-5
SLAB_WIDTH = 128   # lane-padded width of the packed parameter slab


# ----------------------------- parameter slab layout -----------------------------

def _build_layout():
    """Row layout of the single packed parameter slab (width = SLAB_WIDTH lanes)."""
    layout = {}
    r = 0

    def add(name, nrows, ncols):
        nonlocal r
        layout[name] = (r, nrows, ncols)
        r += nrows

    # weight matrices (row-blocked; only the first `ncols` lanes are meaningful)
    add('sa_wqkv', D_MODEL, 3 * D_MODEL)
    add('sa_wo',   D_MODEL, D_MODEL)
    add('pa_wqk',  D_MODEL, 2 * D_MODEL)
    add('pa_wv',   D_MODEL, D_MODEL)
    add('pa_wo',   D_MODEL, D_MODEL)
    add('ed_wq',   D_MODEL, D_MODEL)
    add('ed_wkv',  D_MODEL, 2 * D_MODEL)
    add('ed_wo',   D_MODEL, D_MODEL)
    add('ff_w1',   D_MODEL, DIM_FF)
    add('ff_w2',   DIM_FF,  D_MODEL)
    # bias / LayerNorm vectors (one row each)
    for name, ncols in [
        ('sa_bqkv', 3 * D_MODEL), ('sa_bo', D_MODEL), ('ln1_w', D_MODEL), ('ln1_b', D_MODEL),
        ('pa_bqk', 2 * D_MODEL), ('pa_bv', D_MODEL), ('pa_bo', D_MODEL),
        ('ln2_w', D_MODEL), ('ln2_b', D_MODEL),
        ('ed_bq', D_MODEL), ('ed_bkv', 2 * D_MODEL), ('ed_bo', D_MODEL),
        ('ln3_w', D_MODEL), ('ln3_b', D_MODEL),
        ('ff_b1', DIM_FF), ('ff_b2', D_MODEL), ('ln4_w', D_MODEL), ('ln4_b', D_MODEL),
    ]:
        add(name, 1, ncols)

    total_rows = ((r + 7) // 8) * 8   # pad to a multiple of 8 sublanes
    return layout, total_rows


_LAYOUT, _SLAB_ROWS = _build_layout()


def pack_params(params):
    """Pack every weight/bias/LN parameter into ONE (rows, 128) f32 slab.

    The 1/sqrt(head_dim) attention score scale is folded into the Q projection
    weights and biases here (one-time host-side repack).
    """
    hd = D_MODEL // N_HEADS
    qs = 1.0 / math.sqrt(hd)

    e = {}
    wq, wk, wv, bq, bk, bv, wo, bo = params['self_attn']
    e['sa_wqkv'] = jnp.concatenate([wq * qs, wk, wv], axis=1)
    e['sa_bqkv'] = jnp.concatenate([bq * qs, bk, bv], axis=1)
    e['sa_wo'], e['sa_bo'] = wo, bo
    e['ln1_w'], e['ln1_b'] = params['norm1']

    wq, wk, wv, bq, bk, bv, wo, bo = params['pos_attn']
    e['pa_wqk'] = jnp.concatenate([wq * qs, wk], axis=1)
    e['pa_bqk'] = jnp.concatenate([bq * qs, bk], axis=1)
    e['pa_wv'], e['pa_bv'] = wv, bv
    e['pa_wo'], e['pa_bo'] = wo, bo
    e['ln2_w'], e['ln2_b'] = params['norm2']

    wq, wk, wv, bq, bk, bv, wo, bo = params['encdec_attn']
    e['ed_wq'], e['ed_bq'] = wq * qs, bq * qs
    e['ed_wkv'] = jnp.concatenate([wk, wv], axis=1)
    e['ed_bkv'] = jnp.concatenate([bk, bv], axis=1)
    e['ed_wo'], e['ed_bo'] = wo, bo
    e['ln3_w'], e['ln3_b'] = params['norm3']

    w1, b1, w2, b2 = params['ff']
    e['ff_w1'], e['ff_b1'], e['ff_w2'], e['ff_b2'] = w1, b1, w2, b2
    e['ln4_w'], e['ln4_b'] = params['norm4']

    slab = jnp.zeros((_SLAB_ROWS, SLAB_WIDTH), jnp.float32)
    for name, arr in e.items():
        r0, nr, nc = _LAYOUT[name]
        slab = slab.at[r0:r0 + nr, :nc].set(jnp.asarray(arr, jnp.float32).reshape(nr, nc))
    return slab


# ----------------------------- fused Pallas kernel -----------------------------

def _decoder_layer_kernel(tgt_ref, eout_ref, pe_ref, p_ref, o_ref,
                          *, batch, l_tgt, l_src, n_heads, eps):
    f32 = jnp.float32
    d = D_MODEL
    hd = d // n_heads

    def mat(name):
        r0, nr, nc = _LAYOUT[name]
        return p_ref[r0:r0 + nr, :nc]

    def vec(name):
        r0, _, nc = _LAYOUT[name]
        return p_ref[r0:r0 + 1, :nc]          # (1, nc) row, broadcasts over tokens

    def layer_norm(y, wn, bn):
        # one-pass statistics: var = E[x^2] - E[x]^2
        mean = jnp.mean(y, axis=-1, keepdims=True)
        var = jnp.mean(y * y, axis=-1, keepdims=True) - mean * mean
        return (y - mean) * lax.rsqrt(var + eps) * vec(wn) + vec(bn)

    def mha(q2, k2, v2, wo, bo, lq, lk):
        """Multi-head attention on already-projected (B*L, D) q/k/v.

        Scores/softmax/P@V are batched over the batch dim via einsum; per-head
        context is folded straight into the output projection (no head concat).
        The 1/sqrt(hd) scale is already folded into the Q projection weights.
        """
        q3 = q2.reshape(batch, lq, d)
        k3 = k2.reshape(batch, lk, d)
        v3 = v2.reshape(batch, lk, d)
        acc = jnp.zeros((batch * lq, d), f32)
        for h in range(n_heads):               # static unroll over heads
            lo, hi = h * hd, (h + 1) * hd
            s = jnp.einsum('bqd,bkd->bqk', q3[:, :, lo:hi], k3[:, :, lo:hi],
                           preferred_element_type=f32)
            s = s - jnp.max(s, axis=-1, keepdims=True)
            p = jnp.exp(s)
            p = p * pl.reciprocal(jnp.sum(p, axis=-1, keepdims=True), approx=False)
            ctx = jnp.einsum('bqk,bkd->bqd', p, v3[:, :, lo:hi],
                             preferred_element_type=f32)
            acc = acc + jnp.dot(ctx.reshape(batch * lq, hd), wo[lo:hi, :],
                                preferred_element_type=f32)
        return acc + bo

    tgt = tgt_ref[...].astype(f32)       # (B*L, D)  batch folded into rows
    eout = eout_ref[...].astype(f32)     # (B*Ls, D)
    pe = pe_ref[...].astype(f32)         # (B*L, D)  PE pre-tiled over batch

    # --- self-attention block ---
    qkv = jnp.dot(tgt, mat('sa_wqkv'), preferred_element_type=f32) + vec('sa_bqkv')
    sa = mha(qkv[:, :d], qkv[:, d:2 * d], qkv[:, 2 * d:],
             mat('sa_wo'), vec('sa_bo'), l_tgt, l_tgt)
    sa = layer_norm(tgt + sa, 'ln1_w', 'ln1_b')

    # --- positional attention block (q,k = sa + PE, v = sa) ---
    pos_qk = sa + pe
    qk = jnp.dot(pos_qk, mat('pa_wqk'), preferred_element_type=f32) + vec('pa_bqk')
    vv = jnp.dot(sa, mat('pa_wv'), preferred_element_type=f32) + vec('pa_bv')
    pa = mha(qk[:, :d], qk[:, d:], vv, mat('pa_wo'), vec('pa_bo'), l_tgt, l_tgt)
    pa = layer_norm(sa + pa, 'ln2_w', 'ln2_b')

    # --- encoder-decoder attention block ---
    q = jnp.dot(pa, mat('ed_wq'), preferred_element_type=f32) + vec('ed_bq')
    kv = jnp.dot(eout, mat('ed_wkv'), preferred_element_type=f32) + vec('ed_bkv')
    ed = mha(q, kv[:, :d], kv[:, d:], mat('ed_wo'), vec('ed_bo'), l_tgt, l_src)
    ed = layer_norm(pa + ed, 'ln3_w', 'ln3_b')

    # --- feed-forward block (dropout is identity at inference) ---
    h = jnp.dot(ed, mat('ff_w1'), preferred_element_type=f32) + vec('ff_b1')
    h = jnp.maximum(h, 0.0)
    ff = jnp.dot(h, mat('ff_w2'), preferred_element_type=f32) + vec('ff_b2')
    out = layer_norm(ed + ff, 'ln4_w', 'ln4_b')

    o_ref[...] = out.astype(o_ref.dtype)


# ----------------------------- wrapper -----------------------------

def sinusoidal_pe(length, d_model, dtype=jnp.float32):
    pos = jnp.arange(length, dtype=jnp.float32)[:, None]
    div = jnp.exp(jnp.arange(0, d_model, 2, dtype=jnp.float32)
                  * (-math.log(10000.0) / d_model))
    ang = pos * div[None, :]
    pe = jnp.zeros((length, d_model), dtype=jnp.float32)
    pe = pe.at[:, 0::2].set(jnp.sin(ang))
    pe = pe.at[:, 1::2].set(jnp.cos(ang))
    return pe.astype(dtype)


def decoder_layer_nat(e_output, tgt_input, param_slab):
    """Full DecoderLayerNAT forward as a single-step fused pallas_call."""
    B, L, D = tgt_input.shape
    _, Ls, _ = e_output.shape

    # Host-side layout plumbing (free in XLA): fold batch into rows, pre-tile the PE.
    tgt2d = tgt_input.reshape(B * L, D)
    eout2d = e_output.reshape(B * Ls, D)
    pe2d = jnp.tile(sinusoidal_pe(L, D, tgt_input.dtype), (B, 1))

    kernel = functools.partial(_decoder_layer_kernel,
                               batch=B, l_tgt=L, l_src=Ls,
                               n_heads=N_HEADS, eps=LN_EPS)

    out2d = pl.pallas_call(
        kernel,
        out_shape=jax.ShapeDtypeStruct((B * L, D), tgt_input.dtype),
        grid=(1,),   # single grid step: no per-step pipeline overhead on single-TC chips
        in_specs=[
            pl.BlockSpec((B * L, D), lambda i: (0, 0)),        # tgt (batch-flattened)
            pl.BlockSpec((B * Ls, D), lambda i: (0, 0)),       # encoder output
            pl.BlockSpec((B * L, D), lambda i: (0, 0)),        # positional encoding
            pl.BlockSpec(param_slab.shape, lambda i: (0, 0)),  # ONE packed weight slab
        ],
        out_specs=pl.BlockSpec((B * L, D), lambda i: (0, 0)),
        compiler_params=pltpu.CompilerParams(dimension_semantics=("arbitrary",)),
    )(tgt2d, eout2d, pe2d, param_slab)
    return out2d.reshape(B, L, D)


# ----------------------------- pure-JAX reference (correctness check) -----------------------------

def _ref_mha(q, k, v, params, n_heads):
    wq, wk, wv, bq, bk, bv, wo, bo = params
    B, Lq, D = q.shape
    hd = D // n_heads
    qp = q @ wq + bq
    kp = k @ wk + bk
    vp = v @ wv + bv
    qh = qp.reshape(B, Lq, n_heads, hd).transpose(0, 2, 1, 3)
    kh = kp.reshape(B, -1, n_heads, hd).transpose(0, 2, 1, 3)
    vh = vp.reshape(B, -1, n_heads, hd).transpose(0, 2, 1, 3)
    s = jnp.einsum('bhqd,bhkd->bhqk', qh, kh) / math.sqrt(hd)
    p = jax.nn.softmax(s, axis=-1)
    o = jnp.einsum('bhqk,bhkd->bhqd', p, vh).transpose(0, 2, 1, 3).reshape(B, Lq, D)
    return o @ wo + bo


def _ref_resid_ln(x, sub, w, b, eps=LN_EPS):
    y = x + sub
    mean = jnp.mean(y, axis=-1, keepdims=True)
    var = jnp.mean(jnp.square(y - mean), axis=-1, keepdims=True)
    return (y - mean) / jnp.sqrt(var + eps) * w + b


def decoder_layer_nat_ref(e_output, tgt_input, params):
    sa = _ref_mha(tgt_input, tgt_input, tgt_input, params['self_attn'], N_HEADS)
    sa = _ref_resid_ln(tgt_input, sa, *params['norm1'])
    pe = sinusoidal_pe(sa.shape[1], D_MODEL, sa.dtype)
    pos_qk = sa + pe[None]
    pa = _ref_mha(pos_qk, pos_qk, sa, params['pos_attn'], N_HEADS)
    pa = _ref_resid_ln(sa, pa, *params['norm2'])
    ed = _ref_mha(pa, e_output, e_output, params['encdec_attn'], N_HEADS)
    ed = _ref_resid_ln(pa, ed, *params['norm3'])
    w1, b1, w2, b2 = params['ff']
    ff = jnp.maximum(ed @ w1 + b1, 0.0) @ w2 + b2
    return _ref_resid_ln(ed, ff, *params['norm4'])


# ----------------------------- deterministic parameter init -----------------------------

def init_params(key):
    keys = iter(jax.random.split(key, 40))

    def dense(shape, scale=0.08):
        return (scale * jax.random.normal(next(keys), shape)).astype(jnp.float32)

    def mha_params():
        # weights stored already transposed so that kernels compute x @ W + b
        return (dense((D_MODEL, D_MODEL)), dense((D_MODEL, D_MODEL)), dense((D_MODEL, D_MODEL)),
                dense((1, D_MODEL)), dense((1, D_MODEL)), dense((1, D_MODEL)),
                dense((D_MODEL, D_MODEL)), dense((1, D_MODEL)))

    def ln_params():
        return (jnp.ones((1, D_MODEL), jnp.float32), jnp.zeros((1, D_MODEL), jnp.float32))

    return {
        'self_attn': mha_params(),
        'norm1': ln_params(),
        'pos_attn': mha_params(),
        'norm2': ln_params(),
        'encdec_attn': mha_params(),
        'norm3': ln_params(),
        'ff': (dense((D_MODEL, DIM_FF)), dense((1, DIM_FF)),
               dense((DIM_FF, D_MODEL)), dense((1, D_MODEL))),
        'norm4': ln_params(),
    }


# ----------------------------- main -----------------------------

if __name__ == "__main__":
    key = jax.random.PRNGKey(0)
    kp, ke, kt = jax.random.split(key, 3)
    params = init_params(kp)
    slab = pack_params(params)      # one-time host-side repack into a single slab

    B, L_TGT, L_SRC = 2, 8, 8
    e_output = jax.random.normal(ke, (B, L_SRC, D_MODEL), dtype=jnp.float32)
    tgt_input = jax.random.normal(kt, (B, L_TGT, D_MODEL), dtype=jnp.float32)

    out = decoder_layer_nat(e_output, tgt_input, slab)
    out = jax.block_until_ready(out)

    ref = decoder_layer_nat_ref(e_output, tgt_input, params)
    max_err = float(jnp.max(jnp.abs(out - ref)))
    assert out.shape == (B, L_TGT, D_MODEL)
    assert max_err < 1e-3, f"mismatch vs reference: {max_err}"

    # TODO(synk): dropout layers and optional attention/padding masks are identity/None
    # in the traced eval path and are intentionally omitted from the kernel.
    print("KERNEL_OK")
</pallas_src>

<mosaic_0001>
module attributes {stable_mosaic.version = 11 : i64} {
  func.func @_decoder_layer_kernel(%arg0: i32, %arg1: memref<16x32xf32, #tpu.memory_space<vmem>>, %arg2: memref<16x32xf32, #tpu.memory_space<vmem>>, %arg3: memref<16x32xf32, #tpu.memory_space<vmem>>, %arg4: memref<376x128xf32, #tpu.memory_space<vmem>>, %arg5: memref<16x32xf32, #tpu.memory_space<vmem>>) attributes {dimension_semantics = [#tpu.dimension_semantics<arbitrary>], iteration_bounds = array<i64: 1>, scalar_prefetch = 0 : i64, scratch_operands = 0 : i64, tpu.core_type = #tpu.core_type<tc>, window_params = [{pipeline_mode = #tpu.pipeline_mode<synchronous>, transform_indices = @transform_0, window_bounds = array<i64: 16, 32>}, {pipeline_mode = #tpu.pipeline_mode<synchronous>, transform_indices = @transform_1, window_bounds = array<i64: 16, 32>}, {pipeline_mode = #tpu.pipeline_mode<synchronous>, transform_indices = @transform_2, window_bounds = array<i64: 16, 32>}, {pipeline_mode = #tpu.pipeline_mode<synchronous>, transform_indices = @transform_3, window_bounds = array<i64: 376, 128>}, {pipeline_mode = #tpu.pipeline_mode<synchronous>, transform_indices = @transform_4, window_bounds = array<i64: 16, 32>}]} {
    %c0 = arith.constant 0 : index
    %c0_0 = arith.constant 0 : index
    %0 = vector.load %arg1[%c0, %c0_0] : memref<16x32xf32, #tpu.memory_space<vmem>>, vector<16x32xf32>
    %c0_1 = arith.constant 0 : index
    %c0_2 = arith.constant 0 : index
    %1 = vector.load %arg2[%c0_1, %c0_2] : memref<16x32xf32, #tpu.memory_space<vmem>>, vector<16x32xf32>
    %c0_3 = arith.constant 0 : index
    %c0_4 = arith.constant 0 : index
    %2 = vector.load %arg3[%c0_3, %c0_4] : memref<16x32xf32, #tpu.memory_space<vmem>>, vector<16x32xf32>
    %c0_5 = arith.constant 0 : index
    %c0_6 = arith.constant 0 : index
    %3 = vector.load %arg4[%c0_5, %c0_6] : memref<376x128xf32, #tpu.memory_space<vmem>>, vector<32x96xf32>
    %cst = arith.constant dense<0.000000e+00> : vector<16x96xf32>
    %4 = tpu.matmul %0, %3, %cst {dimension_numbers = #tpu.dot_dimension_numbers<[1], [0], [0], [1], [0, 0, 1, 1], [], []>} : vector<16x32xf32>, vector<32x96xf32>, vector<16x96xf32> -> vector<16x96xf32>
    %c352 = arith.constant 352 : index
    %c0_7 = arith.constant 0 : index
    %5 = vector.load %arg4[%c352, %c0_7] : memref<376x128xf32, #tpu.memory_space<vmem>>, vector<1x96xf32>
    %6 = vector.broadcast %5 : vector<1x96xf32> to vector<16x96xf32>
    %7 = arith.addf %4, %6 : vector<16x96xf32>
    %8 = vector.extract_strided_slice %7 {offsets = [0, 0], sizes = [16, 32], strides = [1, 1]} : vector<16x96xf32> to vector<16x32xf32>
    %9 = vector.extract_strided_slice %7 {offsets = [0, 32], sizes = [16, 32], strides = [1, 1]} : vector<16x96xf32> to vector<16x32xf32>
    %10 = vector.extract_strided_slice %7 {offsets = [0, 64], sizes = [16, 32], strides = [1, 1]} : vector<16x96xf32> to vector<16x32xf32>
    %c32 = arith.constant 32 : index
    %c0_8 = arith.constant 0 : index
    %11 = vector.load %arg4[%c32, %c0_8] : memref<376x128xf32, #tpu.memory_space<vmem>>, vector<32x32xf32>
    %c353 = arith.constant 353 : index
    %c0_9 = arith.constant 0 : index
    %12 = vector.load %arg4[%c353, %c0_9] : memref<376x128xf32, #tpu.memory_space<vmem>>, vector<1x32xf32>
    %13 = vector.shape_cast %8 : vector<16x32xf32> to vector<2x8x32xf32>
    %14 = vector.shape_cast %9 : vector<16x32xf32> to vector<2x8x32xf32>
    %15 = vector.shape_cast %10 : vector<16x32xf32> to vector<2x8x32xf32>
    %cst_10 = arith.constant 0.000000e+00 : f32
    %16 = vector.broadcast %cst_10 : f32 to vector<16x32xf32>
    %17 = vector.extract_strided_slice %13 {offsets = [0, 0, 0], sizes = [2, 8, 8], strides = [1, 1, 1]} : vector<2x8x32xf32> to vector<2x8x8xf32>
    %18 = vector.extract_strided_slice %14 {offsets = [0, 0, 0], sizes = [2, 8, 8], strides = [1, 1, 1]} : vector<2x8x32xf32> to vector<2x8x8xf32>
    "tpu.trace_start"() <{level = 10 : i32, message = "bqd,bkd->bqk"}> : () -> ()
    %cst_11 = arith.constant dense<0.000000e+00> : vector<2x8x8xf32>
    %19 = tpu.matmul %17, %18, %cst_11 {dimension_numbers = #tpu.dot_dimension_numbers<[2], [2], [1], [1], [0, 0, 0, 1, 1, 1], [0], [0]>} : vector<2x8x8xf32>, vector<2x8x8xf32>, vector<2x8x8xf32> -> vector<2x8x8xf32>
    "tpu.trace_stop"() : () -> ()
    %cst_12 = arith.constant dense<0xFF800000> : vector<2x8xf32>
    %20 = vector.multi_reduction <maximumf>, %19, %cst_12 [2] : vector<2x8x8xf32> to vector<2x8xf32>
    %21 = vector.shape_cast %20 : vector<2x8xf32> to vector<2x8x1xf32>
    %22 = vector.broadcast %21 : vector<2x8x1xf32> to vector<2x8x8xf32>
    %23 = arith.subf %19, %22 : vector<2x8x8xf32>
    %24 = math.exp %23 : vector<2x8x8xf32>
    %cst_13 = arith.constant dense<0.000000e+00> : vector<2x8xf32>
    %25 = vector.multi_reduction <add>, %24, %cst_13 [2] : vector<2x8x8xf32> to vector<2x8xf32>
    %26 = vector.shape_cast %25 : vector<2x8xf32> to vector<2x8x1xf32>
    %27 = tpu.reciprocal %26 : vector<2x8x1xf32> -> vector<2x8x1xf32>
    %28 = vector.broadcast %27 : vector<2x8x1xf32> to vector<2x8x8xf32>
    %29 = arith.mulf %24, %28 : vector<2x8x8xf32>
    %30 = vector.extract_strided_slice %15 {offsets = [0, 0, 0], sizes = [2, 8, 8], strides = [1, 1, 1]} : vector<2x8x32xf32> to vector<2x8x8xf32>
    "tpu.trace_start"() <{level = 10 : i32, message = "bqk,bkd->bqd"}> : () -> ()
    %cst_14 = arith.constant dense<0.000000e+00> : vector<2x8x8xf32>
    %31 = tpu.matmul %29, %30, %cst_14 {dimension_numbers = #tpu.dot_dimension_numbers<[2], [1], [1], [2], [0, 0, 0, 1, 1, 2], [0], [0]>} : vector<2x8x8xf32>, vector<2x8x8xf32>, vector<2x8x8xf32> -> vector<2x8x8xf32>
    "tpu.trace_stop"() : () -> ()
    %32 = vector.shape_cast %31 : vector<2x8x8xf32> to vector<16x8xf32>
    %33 = vector.extract_strided_slice %11 {offsets = [0, 0], sizes = [8, 32], strides = [1, 1]} : vector<32x32xf32> to vector<8x32xf32>
    %cst_15 = arith.constant dense<0.000000e+00> : vector<16x32xf32>
    %34 = tpu.matmul %32, %33, %cst_15 {dimension_numbers = #tpu.dot_dimension_numbers<[1], [0], [0], [1], [0, 0, 1, 1], [], []>} : vector<16x8xf32>, vector<8x32xf32>, vector<16x32xf32> -> vector<16x32xf32>
    %35 = arith.addf %16, %34 : vector<16x32xf32>
    %36 = vector.extract_strided_slice %13 {offsets = [0, 0, 8], sizes = [2, 8, 8], strides = [1, 1, 1]} : vector<2x8x32xf32> to vector<2x8x8xf32>
    %37 = vector.extract_strided_slice %14 {offsets = [0, 0, 8], sizes = [2, 8, 8], strides = [1, 1, 1]} : vector<2x8x32xf32> to vector<2x8x8xf32>
    "tpu.trace_start"() <{level = 10 : i32, message = "bqd,bkd->bqk"}> : () -> ()
    %cst_16 = arith.constant dense<0.000000e+00> : vector<2x8x8xf32>
    %38 = tpu.matmul %36, %37, %cst_16 {dimension_numbers = #tpu.dot_dimension_numbers<[2], [2], [1], [1], [0, 0, 0, 1, 1, 1], [0], [0]>} : vector<2x8x8xf32>, vector<2x8x8xf32>, vector<2x8x8xf32> -> vector<2x8x8xf32>
    "tpu.trace_stop"() : () -> ()
    %cst_17 = arith.constant dense<0xFF800000> : vector<2x8xf32>
    %39 = vector.multi_reduction <maximumf>, %38, %cst_17 [2] : vector<2x8x8xf32> to vector<2x8xf32>
    %40 = vector.shape_cast %39 : vector<2x8xf32> to vector<2x8x1xf32>
    %41 = vector.broadcast %40 : vector<2x8x1xf32> to vector<2x8x8xf32>
    %42 = arith.subf %38, %41 : vector<2x8x8xf32>
    %43 = math.exp %42 : vector<2x8x8xf32>
    %cst_18 = arith.constant dense<0.000000e+00> : vector<2x8xf32>
    %44 = vector.multi_reduction <add>, %43, %cst_18 [2] : vector<2x8x8xf32> to vector<2x8xf32>
    %45 = vector.shape_cast %44 : vector<2x8xf32> to vector<2x8x1xf32>
    %46 = tpu.reciprocal %45 : vector<2x8x1xf32> -> vector<2x8x1xf32>
    %47 = vector.broadcast %46 : vector<2x8x1xf32> to vector<2x8x8xf32>
    %48 = arith.mulf %43, %47 : vector<2x8x8xf32>
    %49 = vector.extract_strided_slice %15 {offsets = [0, 0, 8], sizes = [2, 8, 8], strides = [1, 1, 1]} : vector<2x8x32xf32> to vector<2x8x8xf32>
    "tpu.trace_start"() <{level = 10 : i32, message = "bqk,bkd->bqd"}> : () -> ()
    %cst_19 = arith.constant dense<0.000000e+00> : vector<2x8x8xf32>
    %50 = tpu.matmul %48, %49, %cst_19 {dimension_numbers = #tpu.dot_dimension_numbers<[2], [1], [1], [2], [0, 0, 0, 1, 1, 2], [0], [0]>} : vector<2x8x8xf32>, vector<2x8x8xf32>, vector<2x8x8xf32> -> vector<2x8x8xf32>
    "tpu.trace_stop"() : () -> ()
    %51 = vector.shape_cast %50 : vector<2x8x8xf32> to vector<16x8xf32>
    %52 = vector.extract_strided_slice %11 {offsets = [8, 0], sizes = [8, 32], strides = [1, 1]} : vector<32x32xf32> to vector<8x32xf32>
    %cst_20 = arith.constant dense<0.000000e+00> : vector<16x32xf32>
    %53 = tpu.matmul %51, %52, %cst_20 {dimension_numbers = #tpu.dot_dimension_numbers<[1], [0], [0], [1], [0, 0, 1, 1], [], []>} : vector<16x8xf32>, vector<8x32xf32>, vector<16x32xf32> -> vector<16x32xf32>
    %54 = arith.addf %35, %53 : vector<16x32xf32>
    %55 = vector.extract_strided_slice %13 {offsets = [0, 0, 16], sizes = [2, 8, 8], strides = [1, 1, 1]} : vector<2x8x32xf32> to vector<2x8x8xf32>
    %56 = vector.extract_strided_slice %14 {offsets = [0, 0, 16], sizes = [2, 8, 8], strides = [1, 1, 1]} : vector<2x8x32xf32> to vector<2x8x8xf32>
    "tpu.trace_start"() <{level = 10 : i32, message = "bqd,bkd->bqk"}> : () -> ()
    %cst_21 = arith.constant dense<0.000000e+00> : vector<2x8x8xf32>
    %57 = tpu.matmul %55, %56, %cst_21 {dimension_numbers = #tpu.dot_dimension_numbers<[2], [2], [1], [1], [0, 0, 0, 1, 1, 1], [0], [0]>} : vector<2x8x8xf32>, vector<2x8x8xf32>, vector<2x8x8xf32> -> vector<2x8x8xf32>
    "tpu.trace_stop"() : () -> ()
    %cst_22 = arith.constant dense<0xFF800000> : vector<2x8xf32>
    %58 = vector.multi_reduction <maximumf>, %57, %cst_22 [2] : vector<2x8x8xf32> to vector<2x8xf32>
    %59 = vector.shape_cast %58 : vector<2x8xf32> to vector<2x8x1xf32>
    %60 = vector.broadcast %59 : vector<2x8x1xf32> to vector<2x8x8xf32>
    %61 = arith.subf %57, %60 : vector<2x8x8xf32>
    %62 = math.exp %61 : vector<2x8x8xf32>
    %cst_23 = arith.constant dense<0.000000e+00> : vector<2x8xf32>
    %63 = vector.multi_reduction <add>, %62, %cst_23 [2] : vector<2x8x8xf32> to vector<2x8xf32>
    %64 = vector.shape_cast %63 : vector<2x8xf32> to vector<2x8x1xf32>
    %65 = tpu.reciprocal %64 : vector<2x8x1xf32> -> vector<2x8x1xf32>
    %66 = vector.broadcast %65 : vector<2x8x1xf32> to vector<2x8x8xf32>
    %67 = arith.mulf %62, %66 : vector<2x8x8xf32>
    %68 = vector.extract_strided_slice %15 {offsets = [0, 0, 16], sizes = [2, 8, 8], strides = [1, 1, 1]} : vector<2x8x32xf32> to vector<2x8x8xf32>
    "tpu.trace_start"() <{level = 10 : i32, message = "bqk,bkd->bqd"}> : () -> ()
    %cst_24 = arith.constant dense<0.000000e+00> : vector<2x8x8xf32>
    %69 = tpu.matmul %67, %68, %cst_24 {dimension_numbers = #tpu.dot_dimension_numbers<[2], [1], [1], [2], [0, 0, 0, 1, 1, 2], [0], [0]>} : vector<2x8x8xf32>, vector<2x8x8xf32>, vector<2x8x8xf32> -> vector<2x8x8xf32>
    "tpu.trace_stop"() : () -> ()
    %70 = vector.shape_cast %69 : vector<2x8x8xf32> to vector<16x8xf32>
    %71 = vector.extract_strided_slice %11 {offsets = [16, 0], sizes = [8, 32], strides = [1, 1]} : vector<32x32xf32> to vector<8x32xf32>
    %cst_25 = arith.constant dense<0.000000e+00> : vector<16x32xf32>
    %72 = tpu.matmul %70, %71, %cst_25 {dimension_numbers = #tpu.dot_dimension_numbers<[1], [0], [0], [1], [0, 0, 1, 1], [], []>} : vector<16x8xf32>, vector<8x32xf32>, vector<16x32xf32> -> vector<16x32xf32>
    %73 = arith.addf %54, %72 : vector<16x32xf32>
    %74 = vector.extract_strided_slice %13 {offsets = [0, 0, 24], sizes = [2, 8, 8], strides = [1, 1, 1]} : vector<2x8x32xf32> to vector<2x8x8xf32>
    %75 = vector.extract_strided_slice %14 {offsets = [0, 0, 24], sizes = [2, 8, 8], strides = [1, 1, 1]} : vector<2x8x32xf32> to vector<2x8x8xf32>
    "tpu.trace_start"() <{level = 10 : i32, message = "bqd,bkd->bqk"}> : () -> ()
    %cst_26 = arith.constant dense<0.000000e+00> : vector<2x8x8xf32>
    %76 = tpu.matmul %74, %75, %cst_26 {dimension_numbers = #tpu.dot_dimension_numbers<[2], [2], [1], [1], [0, 0, 0, 1, 1, 1], [0], [0]>} : vector<2x8x8xf32>, vector<2x8x8xf32>, vector<2x8x8xf32> -> vector<2x8x8xf32>
    "tpu.trace_stop"() : () -> ()
    %cst_27 = arith.constant dense<0xFF800000> : vector<2x8xf32>
    %77 = vector.multi_reduction <maximumf>, %76, %cst_27 [2] : vector<2x8x8xf32> to vector<2x8xf32>
    %78 = vector.shape_cast %77 : vector<2x8xf32> to vector<2x8x1xf32>
    %79 = vector.broadcast %78 : vector<2x8x1xf32> to vector<2x8x8xf32>
    %80 = arith.subf %76, %79 : vector<2x8x8xf32>
    %81 = math.exp %80 : vector<2x8x8xf32>
    %cst_28 = arith.constant dense<0.000000e+00> : vector<2x8xf32>
    %82 = vector.multi_reduction <add>, %81, %cst_28 [2] : vector<2x8x8xf32> to vector<2x8xf32>
    %83 = vector.shape_cast %82 : vector<2x8xf32> to vector<2x8x1xf32>
    %84 = tpu.reciprocal %83 : vector<2x8x1xf32> -> vector<2x8x1xf32>
    %85 = vector.broadcast %84 : vector<2x8x1xf32> to vector<2x8x8xf32>
    %86 = arith.mulf %81, %85 : vector<2x8x8xf32>
    %87 = vector.extract_strided_slice %15 {offsets = [0, 0, 24], sizes = [2, 8, 8], strides = [1, 1, 1]} : vector<2x8x32xf32> to vector<2x8x8xf32>
    "tpu.trace_start"() <{level = 10 : i32, message = "bqk,bkd->bqd"}> : () -> ()
    %cst_29 = arith.constant dense<0.000000e+00> : vector<2x8x8xf32>
    %88 = tpu.matmul %86, %87, %cst_29 {dimension_numbers = #tpu.dot_dimension_numbers<[2], [1], [1], [2], [0, 0, 0, 1, 1, 2], [0], [0]>} : vector<2x8x8xf32>, vector<2x8x8xf32>, vector<2x8x8xf32> -> vector<2x8x8xf32>
    "tpu.trace_stop"() : () -> ()
    %89 = vector.shape_cast %88 : vector<2x8x8xf32> to vector<16x8xf32>
    %90 = vector.extract_strided_slice %11 {offsets = [24, 0], sizes = [8, 32], strides = [1, 1]} : vector<32x32xf32> to vector<8x32xf32>
    %cst_30 = arith.constant dense<0.000000e+00> : vector<16x32xf32>
    %91 = tpu.matmul %89, %90, %cst_30 {dimension_numbers = #tpu.dot_dimension_numbers<[1], [0], [0], [1], [0, 0, 1, 1], [], []>} : vector<16x8xf32>, vector<8x32xf32>, vector<16x32xf32> -> vector<16x32xf32>
    %92 = arith.addf %73, %91 : vector<16x32xf32>
    %93 = vector.broadcast %12 : vector<1x32xf32> to vector<16x32xf32>
    %94 = arith.addf %92, %93 : vector<16x32xf32>
    %95 = arith.addf %0, %94 : vector<16x32xf32>
    %cst_31 = arith.constant dense<0.000000e+00> : vector<16xf32>
    %96 = vector.multi_reduction <add>, %95, %cst_31 [1] : vector<16x32xf32> to vector<16xf32>
    %97 = vector.shape_cast %96 : vector<16xf32> to vector<16x1xf32>
    %cst_32 = arith.constant 3.200000e+01 : f32
    %98 = vector.broadcast %cst_32 : f32 to vector<16x1xf32>
    %99 = arith.divf %97, %98 : vector<16x1xf32>
    %100 = arith.mulf %95, %95 : vector<16x32xf32>
    %cst_33 = arith.constant dense<0.000000e+00> : vector<16xf32>
    %101 = vector.multi_reduction <add>, %100, %cst_33 [1] : vector<16x32xf32> to vector<16xf32>
    %102 = vector.shape_cast %101 : vector<16xf32> to vector<16x1xf32>
    %cst_34 = arith.constant 3.200000e+01 : f32
    %103 = vector.broadcast %cst_34 : f32 to vector<16x1xf32>
    %104 = arith.divf %102, %103 : vector<16x1xf32>
    %105 = arith.mulf %99, %99 : vector<16x1xf32>
    %106 = arith.subf %104, %105 : vector<16x1xf32>
    %107 = vector.broadcast %99 : vector<16x1xf32> to vector<16x32xf32>
    %108 = arith.subf %95, %107 : vector<16x32xf32>
    %cst_35 = arith.constant 9.99999974E-6 : f32
    %109 = vector.broadcast %cst_35 : f32 to vector<16x1xf32>
    %110 = arith.addf %106, %109 : vector<16x1xf32>
    %111 = math.rsqrt %110 : vector<16x1xf32>
    %112 = vector.broadcast %111 : vector<16x1xf32> to vector<16x32xf32>
    %113 = arith.mulf %108, %112 : vector<16x32xf32>
    %c354 = arith.constant 354 : index
    %c0_36 = arith.constant 0 : index
    %114 = vector.load %arg4[%c354, %c0_36] : memref<376x128xf32, #tpu.memory_space<vmem>>, vector<1x32xf32>
    %115 = vector.broadcast %114 : vector<1x32xf32> to vector<16x32xf32>
    %116 = arith.mulf %113, %115 : vector<16x32xf32>
    %c355 = arith.constant 355 : index
    %c0_37 = arith.constant 0 : index
    %117 = vector.load %arg4[%c355, %c0_37] : memref<376x128xf32, #tpu.memory_space<vmem>>, vector<1x32xf32>
    %118 = vector.broadcast %117 : vector<1x32xf32> to vector<16x32xf32>
    %119 = arith.addf %116, %118 : vector<16x32xf32>
    %120 = arith.addf %119, %2 : vector<16x32xf32>
    %c64 = arith.constant 64 : index
    %c0_38 = arith.constant 0 : index
    %121 = vector.load %arg4[%c64, %c0_38] : memref<376x128xf32, #tpu.memory_space<vmem>>, vector<32x64xf32>
    %cst_39 = arith.constant dense<0.000000e+00> : vector<16x64xf32>
    %122 = tpu.matmul %120, %121, %cst_39 {dimension_numbers = #tpu.dot_dimension_numbers<[1], [0], [0], [1], [0, 0, 1, 1], [], []>} : vector<16x32xf32>, vector<32x64xf32>, vector<16x64xf32> -> vector<16x64xf32>
    %c356 = arith.constant 356 : index
    %c0_40 = arith.constant 0 : index
    %123 = vector.load %arg4[%c356, %c0_40] : memref<376x128xf32, #tpu.memory_space<vmem>>, vector<1x64xf32>
    %124 = vector.broadcast %123 : vector<1x64xf32> to vector<16x64xf32>
    %125 = arith.addf %122, %124 : vector<16x64xf32>
    %c96 = arith.constant 96 : index
    %c0_41 = arith.constant 0 : index
    %126 = vector.load %arg4[%c96, %c0_41] : memref<376x128xf32, #tpu.memory_space<vmem>>, vector<32x32xf32>
    %cst_42 = arith.constant dense<0.000000e+00> : vector<16x32xf32>
    %127 = tpu.matmul %119, %126, %cst_42 {dimension_numbers = #tpu.dot_dimension_numbers<[1], [0], [0], [1], [0, 0, 1, 1], [], []>} : vector<16x32xf32>, vector<32x32xf32>, vector<16x32xf32> -> vector<16x32xf32>
    %c357 = arith.constant 357 : index
    %c0_43 = arith.constant 0 : index
    %128 = vector.load %arg4[%c357, %c0_43] : memref<376x128xf32, #tpu.memory_space<vmem>>, vector<1x32xf32>
    %129 = vector.broadcast %128 : vector<1x32xf32> to vector<16x32xf32>
    %130 = arith.addf %127, %129 : vector<16x32xf32>
    %131 = vector.extract_strided_slice %125 {offsets = [0, 0], sizes = [16, 32], strides = [1, 1]} : vector<16x64xf32> to vector<16x32xf32>
    %132 = vector.extract_strided_slice %125 {offsets = [0, 32], sizes = [16, 32], strides = [1, 1]} : vector<16x64xf32> to vector<16x32xf32>
    %c128 = arith.constant 128 : index
    %c0_44 = arith.constant 0 : index
    %133 = vector.load %arg4[%c128, %c0_44] : memref<376x128xf32, #tpu.memory_space<vmem>>, vector<32x32xf32>
    %c358 = arith.constant 358 : index
    %c0_45 = arith.constant 0 : index
    %134 = vector.load %arg4[%c358, %c0_45] : memref<376x128xf32, #tpu.memory_space<vmem>>, vector<1x32xf32>
    %135 = vector.shape_cast %131 : vector<16x32xf32> to vector<2x8x32xf32>
    %136 = vector.shape_cast %132 : vector<16x32xf32> to vector<2x8x32xf32>
    %137 = vector.shape_cast %130 : vector<16x32xf32> to vector<2x8x32xf32>
    %cst_46 = arith.constant 0.000000e+00 : f32
    %138 = vector.broadcast %cst_46 : f32 to vector<16x32xf32>
    %139 = vector.extract_strided_slice %135 {offsets = [0, 0, 0], sizes = [2, 8, 8], strides = [1, 1, 1]} : vector<2x8x32xf32> to vector<2x8x8xf32>
    %140 = vector.extract_strided_slice %136 {offsets = [0, 0, 0], sizes = [2, 8, 8], strides = [1, 1, 1]} : vector<2x8x32xf32> to vector<2x8x8xf32>
    "tpu.trace_start"() <{level = 10 : i32, message = "bqd,bkd->bqk"}> : () -> ()
    %cst_47 = arith.constant dense<0.000000e+00> : vector<2x8x8xf32>
    %141 = tpu.matmul %139, %140, %cst_47 {dimension_numbers = #tpu.dot_dimension_numbers<[2], [2], [1], [1], [0, 0, 0, 1, 1, 1], [0], [0]>} : vector<2x8x8xf32>, vector<2x8x8xf32>, vector<2x8x8xf32> -> vector<2x8x8xf32>
    "tpu.trace_stop"() : () -> ()
    %cst_48 = arith.constant dense<0xFF800000> : vector<2x8xf32>
    %142 = vector.multi_reduction <maximumf>, %141, %cst_48 [2] : vector<2x8x8xf32> to vector<2x8xf32>
    %143 = vector.shape_cast %142 : vector<2x8xf32> to vector<2x8x1xf32>
    %144 = vector.broadcast %143 : vector<2x8x1xf32> to vector<2x8x8xf32>
    %145 = arith.subf %141, %144 : vector<2x8x8xf32>
    %146 = math.exp %145 : vector<2x8x8xf32>
    %cst_49 = arith.constant dense<0.000000e+00> : vector<2x8xf32>
    %147 = vector.multi_reduction <add>, %146, %cst_49 [2] : vector<2x8x8xf32> to vector<2x8xf32>
    %148 = vector.shape_cast %147 : vector<2x8xf32> to vector<2x8x1xf32>
    %149 = tpu.reciprocal %148 : vector<2x8x1xf32> -> vector<2x8x1xf32>
    %150 = vector.broadcast %149 : vector<2x8x1xf32> to vector<2x8x8xf32>
    %151 = arith.mulf %146, %150 : vector<2x8x8xf32>
    %152 = vector.extract_strided_slice %137 {offsets = [0, 0, 0], sizes = [2, 8, 8], strides = [1, 1, 1]} : vector<2x8x32xf32> to vector<2x8x8xf32>
    "tpu.trace_start"() <{level = 10 : i32, message = "bqk,bkd->bqd"}> : () -> ()
    %cst_50 = arith.constant dense<0.000000e+00> : vector<2x8x8xf32>
    %153 = tpu.matmul %151, %152, %cst_50 {dimension_numbers = #tpu.dot_dimension_numbers<[2], [1], [1], [2], [0, 0, 0, 1, 1, 2], [0], [0]>} : vector<2x8x8xf32>, vector<2x8x8xf32>, vector<2x8x8xf32> -> vector<2x8x8xf32>
    "tpu.trace_stop"() : () -> ()
    %154 = vector.shape_cast %153 : vector<2x8x8xf32> to vector<16x8xf32>
    %155 = vector.extract_strided_slice %133 {offsets = [0, 0], sizes = [8, 32], strides = [1, 1]} : vector<32x32xf32> to vector<8x32xf32>
    %cst_51 = arith.constant dense<0.000000e+00> : vector<16x32xf32>
    %156 = tpu.matmul %154, %155, %cst_51 {dimension_numbers = #tpu.dot_dimension_numbers<[1], [0], [0], [1], [0, 0, 1, 1], [], []>} : vector<16x8xf32>, vector<8x32xf32>, vector<16x32xf32> -> vector<16x32xf32>
    %157 = arith.addf %138, %156 : vector<16x32xf32>
    %158 = vector.extract_strided_slice %135 {offsets = [0, 0, 8], sizes = [2, 8, 8], strides = [1, 1, 1]} : vector<2x8x32xf32> to vector<2x8x8xf32>
    %159 = vector.extract_strided_slice %136 {offsets = [0, 0, 8], sizes = [2, 8, 8], strides = [1, 1, 1]} : vector<2x8x32xf32> to vector<2x8x8xf32>
    "tpu.trace_start"() <{level = 10 : i32, message = "bqd,bkd->bqk"}> : () -> ()
    %cst_52 = arith.constant dense<0.000000e+00> : vector<2x8x8xf32>
    %160 = tpu.matmul %158, %159, %cst_52 {dimension_numbers = #tpu.dot_dimension_numbers<[2], [2], [1], [1], [0, 0, 0, 1, 1, 1], [0], [0]>} : vector<2x8x8xf32>, vector<2x8x8xf32>, vector<2x8x8xf32> -> vector<2x8x8xf32>
    "tpu.trace_stop"() : () -> ()
    %cst_53 = arith.constant dense<0xFF800000> : vector<2x8xf32>
    %161 = vector.multi_reduction <maximumf>, %160, %cst_53 [2] : vector<2x8x8xf32> to vector<2x8xf32>
    %162 = vector.shape_cast %161 : vector<2x8xf32> to vector<2x8x1xf32>
    %163 = vector.broadcast %162 : vector<2x8x1xf32> to vector<2x8x8xf32>
    %164 = arith.subf %160, %163 : vector<2x8x8xf32>
    %165 = math.exp %164 : vector<2x8x8xf32>
    %cst_54 = arith.constant dense<0.000000e+00> : vector<2x8xf32>
    %166 = vector.multi_reduction <add>, %165, %cst_54 [2] : vector<2x8x8xf32> to vector<2x8xf32>
    %167 = vector.shape_cast %166 : vector<2x8xf32> to vector<2x8x1xf32>
    %168 = tpu.reciprocal %167 : vector<2x8x1xf32> -> vector<2x8x1xf32>
    %169 = vector.broadcast %168 : vector<2x8x1xf32> to vector<2x8x8xf32>
    %170 = arith.mulf %165, %169 : vector<2x8x8xf32>
    %171 = vector.extract_strided_slice %137 {offsets = [0, 0, 8], sizes = [2, 8, 8], strides = [1, 1, 1]} : vector<2x8x32xf32> to vector<2x8x8xf32>
    "tpu.trace_start"() <{level = 10 : i32, message = "bqk,bkd->bqd"}> : () -> ()
    %cst_55 = arith.constant dense<0.000000e+00> : vector<2x8x8xf32>
    %172 = tpu.matmul %170, %171, %cst_55 {dimension_numbers = #tpu.dot_dimension_numbers<[2], [1], [1], [2], [0, 0, 0, 1, 1, 2], [0], [0]>} : vector<2x8x8xf32>, vector<2x8x8xf32>, vector<2x8x8xf32> -> vector<2x8x8xf32>
    "tpu.trace_stop"() : () -> ()
    %173 = vector.shape_cast %172 : vector<2x8x8xf32> to vector<16x8xf32>
    %174 = vector.extract_strided_slice %133 {offsets = [8, 0], sizes = [8, 32], strides = [1, 1]} : vector<32x32xf32> to vector<8x32xf32>
    %cst_56 = arith.constant dense<0.000000e+00> : vector<16x32xf32>
    %175 = tpu.matmul %173, %174, %cst_56 {dimension_numbers = #tpu.dot_dimension_numbers<[1], [0], [0], [1], [0, 0, 1, 1], [], []>} : vector<16x8xf32>, vector<8x32xf32>, vector<16x32xf32> -> vector<16x32xf32>
    %176 = arith.addf %157, %175 : vector<16x32xf32>
    %177 = vector.extract_strided_slice %135 {offsets = [0, 0, 16], sizes = [2, 8, 8], strides = [1, 1, 1]} : vector<2x8x32xf32> to vector<2x8x8xf32>
    %178 = vector.extract_strided_slice %136 {offsets = [0, 0, 16], sizes = [2, 8, 8], strides = [1, 1, 1]} : vector<2x8x32xf32> to vector<2x8x8xf32>
    "tpu.trace_start"() <{level = 10 : i32, message = "bqd,bkd->bqk"}> : () -> ()
    %cst_57 = arith.constant dense<0.000000e+00> : vector<2x8x8xf32>
    %179 = tpu.matmul %177, %178, %cst_57 {dimension_numbers = #tpu.dot_dimension_numbers<[2], [2], [1], [1], [0, 0, 0, 1, 1, 1], [0], [0]>} : vector<2x8x8xf32>, vector<2x8x8xf32>, vector<2x8x8xf32> -> vector<2x8x8xf32>
    "tpu.trace_stop"() : () -> ()
    %cst_58 = arith.constant dense<0xFF800000> : vector<2x8xf32>
    %180 = vector.multi_reduction <maximumf>, %179, %cst_58 [2] : vector<2x8x8xf32> to vector<2x8xf32>
    %181 = vector.shape_cast %180 : vector<2x8xf32> to vector<2x8x1xf32>
    %182 = vector.broadcast %181 : vector<2x8x1xf32> to vector<2x8x8xf32>
    %183 = arith.subf %179, %182 : vector<2x8x8xf32>
    %184 = math.exp %183 : vector<2x8x8xf32>
    %cst_59 = arith.constant dense<0.000000e+00> : vector<2x8xf32>
    %185 = vector.multi_reduction <add>, %184, %cst_59 [2] : vector<2x8x8xf32> to vector<2x8xf32>
    %186 = vector.shape_cast %185 : vector<2x8xf32> to vector<2x8x1xf32>
    %187 = tpu.reciprocal %186 : vector<2x8x1xf32> -> vector<2x8x1xf32>
    %188 = vector.broadcast %187 : vector<2x8x1xf32> to vector<2x8x8xf32>
    %189 = arith.mulf %184, %188 : vector<2x8x8xf32>
    %190 = vector.extract_strided_slice %137 {offsets = [0, 0, 16], sizes = [2, 8, 8], strides = [1, 1, 1]} : vector<2x8x32xf32> to vector<2x8x8xf32>
    "tpu.trace_start"() <{level = 10 : i32, message = "bqk,bkd->bqd"}> : () -> ()
    %cst_60 = arith.constant dense<0.000000e+00> : vector<2x8x8xf32>
    %191 = tpu.matmul %189, %190, %cst_60 {dimension_numbers = #tpu.dot_dimension_numbers<[2], [1], [1], [2], [0, 0, 0, 1, 1, 2], [0], [0]>} : vector<2x8x8xf32>, vector<2x8x8xf32>, vector<2x8x8xf32> -> vector<2x8x8xf32>
    "tpu.trace_stop"() : () -> ()
    %192 = vector.shape_cast %191 : vector<2x8x8xf32> to vector<16x8xf32>
    %193 = vector.extract_strided_slice %133 {offsets = [16, 0], sizes = [8, 32], strides = [1, 1]} : vector<32x32xf32> to vector<8x32xf32>
    %cst_61 = arith.constant dense<0.000000e+00> : vector<16x32xf32>
    %194 = tpu.matmul %192, %193, %cst_61 {dimension_numbers = #tpu.dot_dimension_numbers<[1], [0], [0], [1], [0, 0, 1, 1], [], []>} : vector<16x8xf32>, vector<8x32xf32>, vector<16x32xf32> -> vector<16x32xf32>
    %195 = arith.addf %176, %194 : vector<16x32xf32>
    %196 = vector.extract_strided_slice %135 {offsets = [0, 0, 24], sizes = [2, 8, 8], strides = [1, 1, 1]} : vector<2x8x32xf32> to vector<2x8x8xf32>
    %197 = vector.extract_strided_slice %136 {offsets = [0, 0, 24], sizes = [2, 8, 8], strides = [1, 1, 1]} : vector<2x8x32xf32> to vector<2x8x8xf32>
    "tpu.trace_start"() <{level = 10 : i32, message = "bqd,bkd->bqk"}> : () -> ()
    %cst_62 = arith.constant dense<0.000000e+00> : vector<2x8x8xf32>
    %198 = tpu.matmul %196, %197, %cst_62 {dimension_numbers = #tpu.dot_dimension_numbers<[2], [2], [1], [1], [0, 0, 0, 1, 1, 1], [0], [0]>} : vector<2x8x8xf32>, vector<2x8x8xf32>, vector<2x8x8xf32> -> vector<2x8x8xf32>
    "tpu.trace_stop"() : () -> ()
    %cst_63 = arith.constant dense<0xFF800000> : vector<2x8xf32>
    %199 = vector.multi_reduction <maximumf>, %198, %cst_63 [2] : vector<2x8x8xf32> to vector<2x8xf32>
    %200 = vector.shape_cast %199 : vector<2x8xf32> to vector<2x8x1xf32>
    %201 = vector.broadcast %200 : vector<2x8x1xf32> to vector<2x8x8xf32>
    %202 = arith.subf %198, %201 : vector<2x8x8xf32>
    %203 = math.exp %202 : vector<2x8x8xf32>
    %cst_64 = arith.constant dense<0.000000e+00> : vector<2x8xf32>
    %204 = vector.multi_reduction <add>, %203, %cst_64 [2] : vector<2x8x8xf32> to vector<2x8xf32>
    %205 = vector.shape_cast %204 : vector<2x8xf32> to vector<2x8x1xf32>
    %206 = tpu.reciprocal %205 : vector<2x8x1xf32> -> vector<2x8x1xf32>
    %207 = vector.broadcast %206 : vector<2x8x1xf32> to vector<2x8x8xf32>
    %208 = arith.mulf %203, %207 : vector<2x8x8xf32>
    %209 = vector.extract_strided_slice %137 {offsets = [0, 0, 24], sizes = [2, 8, 8], strides = [1, 1, 1]} : vector<2x8x32xf32> to vector<2x8x8xf32>
    "tpu.trace_start"() <{level = 10 : i32, message = "bqk,bkd->bqd"}> : () -> ()
    %cst_65 = arith.constant dense<0.000000e+00> : vector<2x8x8xf32>
    %210 = tpu.matmul %208, %209, %cst_65 {dimension_numbers = #tpu.dot_dimension_numbers<[2], [1], [1], [2], [0, 0, 0, 1, 1, 2], [0], [0]>} : vector<2x8x8xf32>, vector<2x8x8xf32>, vector<2x8x8xf32> -> vector<2x8x8xf32>
    "tpu.trace_stop"() : () -> ()
    %211 = vector.shape_cast %210 : vector<2x8x8xf32> to vector<16x8xf32>
    %212 = vector.extract_strided_slice %133 {offsets = [24, 0], sizes = [8, 32], strides = [1, 1]} : vector<32x32xf32> to vector<8x32xf32>
    %cst_66 = arith.constant dense<0.000000e+00> : vector<16x32xf32>
    %213 = tpu.matmul %211, %212, %cst_66 {dimension_numbers = #tpu.dot_dimension_numbers<[1], [0], [0], [1], [0, 0, 1, 1], [], []>} : vector<16x8xf32>, vector<8x32xf32>, vector<16x32xf32> -> vector<16x32xf32>
    %214 = arith.addf %195, %213 : vector<16x32xf32>
    %215 = vector.broadcast %134 : vector<1x32xf32> to vector<16x32xf32>
    %216 = arith.addf %214, %215 : vector<16x32xf32>
    %217 = arith.addf %119, %216 : vector<16x32xf32>
    %cst_67 = arith.constant dense<0.000000e+00> : vector<16xf32>
    %218 = vector.multi_reduction <add>, %217, %cst_67 [1] : vector<16x32xf32> to vector<16xf32>
    %219 = vector.shape_cast %218 : vector<16xf32> to vector<16x1xf32>
    %cst_68 = arith.constant 3.200000e+01 : f32
    %220 = vector.broadcast %cst_68 : f32 to vector<16x1xf32>
    %221 = arith.divf %219, %220 : vector<16x1xf32>
    %222 = arith.mulf %217, %217 : vector<16x32xf32>
    %cst_69 = arith.constant dense<0.000000e+00> : vector<16xf32>
    %223 = vector.multi_reduction <add>, %222, %cst_69 [1] : vector<16x32xf32> to vector<16xf32>
    %224 = vector.shape_cast %223 : vector<16xf32> to vector<16x1xf32>
    %cst_70 = arith.constant 3.200000e+01 : f32
    %225 = vector.broadcast %cst_70 : f32 to vector<16x1xf32>
    %226 = arith.divf %224, %225 : vector<16x1xf32>
    %227 = arith.mulf %221, %221 : vector<16x1xf32>
    %228 = arith.subf %226, %227 : vector<16x1xf32>
    %229 = vector.broadcast %221 : vector<16x1xf32> to vector<16x32xf32>
    %230 = arith.subf %217, %229 : vector<16x32xf32>
    %cst_71 = arith.constant 9.99999974E-6 : f32
    %231 = vector.broadcast %cst_71 : f32 to vector<16x1xf32>
    %232 = arith.addf %228, %231 : vector<16x1xf32>
    %233 = math.rsqrt %232 : vector<16x1xf32>
    %234 = vector.broadcast %233 : vector<16x1xf32> to vector<16x32xf32>
    %235 = arith.mulf %230, %234 : vector<16x32xf32>
    %c359 = arith.constant 359 : index
    %c0_72 = arith.constant 0 : index
    %236 = vector.load %arg4[%c359, %c0_72] : memref<376x128xf32, #tpu.memory_space<vmem>>, vector<1x32xf32>
    %237 = vector.broadcast %236 : vector<1x32xf32> to vector<16x32xf32>
    %238 = arith.mulf %235, %237 : vector<16x32xf32>
    %c360 = arith.constant 360 : index
    %c0_73 = arith.constant 0 : index
    %239 = vector.load %arg4[%c360, %c0_73] : memref<376x128xf32, #tpu.memory_space<vmem>>, vector<1x32xf32>
    %240 = vector.broadcast %239 : vector<1x32xf32> to vector<16x32xf32>
    %241 = arith.addf %238, %240 : vector<16x32xf32>
    %c160 = arith.constant 160 : index
    %c0_74 = arith.constant 0 : index
    %242 = vector.load %arg4[%c160, %c0_74] : memref<376x128xf32, #tpu.memory_space<vmem>>, vector<32x32xf32>
    %cst_75 = arith.constant dense<0.000000e+00> : vector<16x32xf32>
    %243 = tpu.matmul %241, %242, %cst_75 {dimension_numbers = #tpu.dot_dimension_numbers<[1], [0], [0], [1], [0, 0, 1, 1], [], []>} : vector<16x32xf32>, vector<32x32xf32>, vector<16x32xf32> -> vector<16x32xf32>
    %c361 = arith.constant 361 : index
    %c0_76 = arith.constant 0 : index
    %244 = vector.load %arg4[%c361, %c0_76] : memref<376x128xf32, #tpu.memory_space<vmem>>, vector<1x32xf32>
    %245 = vector.broadcast %244 : vector<1x32xf32> to vector<16x32xf32>
    %246 = arith.addf %243, %245 : vector<16x32xf32>
    %c192 = arith.constant 192 : index
    %c0_77 = arith.constant 0 : index
    %247 = vector.load %arg4[%c192, %c0_77] : memref<376x128xf32, #tpu.memory_space<vmem>>, vector<32x64xf32>
    %cst_78 = arith.constant dense<0.000000e+00> : vector<16x64xf32>
    %248 = tpu.matmul %1, %247, %cst_78 {dimension_numbers = #tpu.dot_dimension_numbers<[1], [0], [0], [1], [0, 0, 1, 1], [], []>} : vector<16x32xf32>, vector<32x64xf32>, vector<16x64xf32> -> vector<16x64xf32>
    %c362 = arith.constant 362 : index
    %c0_79 = arith.constant 0 : index
    %249 = vector.load %arg4[%c362, %c0_79] : memref<376x128xf32, #tpu.memory_space<vmem>>, vector<1x64xf32>
    %250 = vector.broadcast %249 : vector<1x64xf32> to vector<16x64xf32>
    %251 = arith.addf %248, %250 : vector<16x64xf32>
    %252 = vector.extract_strided_slice %251 {offsets = [0, 0], sizes = [16, 32], strides = [1, 1]} : vector<16x64xf32> to vector<16x32xf32>
    %253 = vector.extract_strided_slice %251 {offsets = [0, 32], sizes = [16, 32], strides = [1, 1]} : vector<16x64xf32> to vector<16x32xf32>
    %c224 = arith.constant 224 : index
    %c0_80 = arith.constant 0 : index
    %254 = vector.load %arg4[%c224, %c0_80] : memref<376x128xf32, #tpu.memory_space<vmem>>, vector<32x32xf32>
    %c363 = arith.constant 363 : index
    %c0_81 = arith.constant 0 : index
    %255 = vector.load %arg4[%c363, %c0_81] : memref<376x128xf32, #tpu.memory_space<vmem>>, vector<1x32xf32>
    %256 = vector.shape_cast %246 : vector<16x32xf32> to vector<2x8x32xf32>
    %257 = vector.shape_cast %252 : vector<16x32xf32> to vector<2x8x32xf32>
    %258 = vector.shape_cast %253 : vector<16x32xf32> to vector<2x8x32xf32>
    %cst_82 = arith.constant 0.000000e+00 : f32
    %259 = vector.broadcast %cst_82 : f32 to vector<16x32xf32>
    %260 = vector.extract_strided_slice %256 {offsets = [0, 0, 0], sizes = [2, 8, 8], strides = [1, 1, 1]} : vector<2x8x32xf32> to vector<2x8x8xf32>
    %261 = vector.extract_strided_slice %257 {offsets = [0, 0, 0], sizes = [2, 8, 8], strides = [1, 1, 1]} : vector<2x8x32xf32> to vector<2x8x8xf32>
    "tpu.trace_start"() <{level = 10 : i32, message = "bqd,bkd->bqk"}> : () -> ()
    %cst_83 = arith.constant dense<0.000000e+00> : vector<2x8x8xf32>
    %262 = tpu.matmul %260, %261, %cst_83 {dimension_numbers = #tpu.dot_dimension_numbers<[2], [2], [1], [1], [0, 0, 0, 1, 1, 1], [0], [0]>} : vector<2x8x8xf32>, vector<2x8x8xf32>, vector<2x8x8xf32> -> vector<2x8x8xf32>
    "tpu.trace_stop"() : () -> ()
    %cst_84 = arith.constant dense<0xFF800000> : vector<2x8xf32>
    %263 = vector.multi_reduction <maximumf>, %262, %cst_84 [2] : vector<2x8x8xf32> to vector<2x8xf32>
    %264 = vector.shape_cast %263 : vector<2x8xf32> to vector<2x8x1xf32>
    %265 = vector.broadcast %264 : vector<2x8x1xf32> to vector<2x8x8xf32>
    %266 = arith.subf %262, %265 : vector<2x8x8xf32>
    %267 = math.exp %266 : vector<2x8x8xf32>
    %cst_85 = arith.constant dense<0.000000e+00> : vector<2x8xf32>
    %268 = vector.multi_reduction <add>, %267, %cst_85 [2] : vector<2x8x8xf32> to vector<2x8xf32>
    %269 = vector.shape_cast %268 : vector<2x8xf32> to vector<2x8x1xf32>
    %270 = tpu.reciprocal %269 : vector<2x8x1xf32> -> vector<2x8x1xf32>
    %271 = vector.broadcast %270 : vector<2x8x1xf32> to vector<2x8x8xf32>
    %272 = arith.mulf %267, %271 : vector<2x8x8xf32>
    %273 = vector.extract_strided_slice %258 {offsets = [0, 0, 0], sizes = [2, 8, 8], strides = [1, 1, 1]} : vector<2x8x32xf32> to vector<2x8x8xf32>
    "tpu.trace_start"() <{level = 10 : i32, message = "bqk,bkd->bqd"}> : () -> ()
    %cst_86 = arith.constant dense<0.000000e+00> : vector<2x8x8xf32>
    %274 = tpu.matmul %272, %273, %cst_86 {dimension_numbers = #tpu.dot_dimension_numbers<[2], [1], [1], [2], [0, 0, 0, 1, 1, 2], [0], [0]>} : vector<2x8x8xf32>, vector<2x8x8xf32>, vector<2x8x8xf32> -> vector<2x8x8xf32>
    "tpu.trace_stop"() : () -> ()
    %275 = vector.shape_cast %274 : vector<2x8x8xf32> to vector<16x8xf32>
    %276 = vector.extract_strided_slice %254 {offsets = [0, 0], sizes = [8, 32], strides = [1, 1]} : vector<32x32xf32> to vector<8x32xf32>
    %cst_87 = arith.constant dense<0.000000e+00> : vector<16x32xf32>
    %277 = tpu.matmul %275, %276, %cst_87 {dimension_numbers = #tpu.dot_dimension_numbers<[1], [0], [0], [1], [0, 0, 1, 1], [], []>} : vector<16x8xf32>, vector<8x32xf32>, vector<16x32xf32> -> vector<16x32xf32>
    %278 = arith.addf %259, %277 : vector<16x32xf32>
    %279 = vector.extract_strided_slice %256 {offsets = [0, 0, 8], sizes = [2, 8, 8], strides = [1, 1, 1]} : vector<2x8x32xf32> to vector<2x8x8xf32>
    %280 = vector.extract_strided_slice %257 {offsets = [0, 0, 8], sizes = [2, 8, 8], strides = [1, 1, 1]} : vector<2x8x32xf32> to vector<2x8x8xf32>
    "tpu.trace_start"() <{level = 10 : i32, message = "bqd,bkd->bqk"}> : () -> ()
    %cst_88 = arith.constant dense<0.000000e+00> : vector<2x8x8xf32>
    %281 = tpu.matmul %279, %280, %cst_88 {dimension_numbers = #tpu.dot_dimension_numbers<[2], [2], [1], [1], [0, 0, 0, 1, 1, 1], [0], [0]>} : vector<2x8x8xf32>, vector<2x8x8xf32>, vector<2x8x8xf32> -> vector<2x8x8xf32>
    "tpu.trace_stop"() : () -> ()
    %cst_89 = arith.constant dense<0xFF800000> : vector<2x8xf32>
    %282 = vector.multi_reduction <maximumf>, %281, %cst_89 [2] : vector<2x8x8xf32> to vector<2x8xf32>
    %283 = vector.shape_cast %282 : vector<2x8xf32> to vector<2x8x1xf32>
    %284 = vector.broadcast %283 : vector<2x8x1xf32> to vector<2x8x8xf32>
    %285 = arith.subf %281, %284 : vector<2x8x8xf32>
    %286 = math.exp %285 : vector<2x8x8xf32>
    %cst_90 = arith.constant dense<0.000000e+00> : vector<2x8xf32>
    %287 = vector.multi_reduction <add>, %286, %cst_90 [2] : vector<2x8x8xf32> to vector<2x8xf32>
    %288 = vector.shape_cast %287 : vector<2x8xf32> to vector<2x8x1xf32>
    %289 = tpu.reciprocal %288 : vector<2x8x1xf32> -> vector<2x8x1xf32>
    %290 = vector.broadcast %289 : vector<2x8x1xf32> to vector<2x8x8xf32>
    %291 = arith.mulf %286, %290 : vector<2x8x8xf32>
    %292 = vector.extract_strided_slice %258 {offsets = [0, 0, 8], sizes = [2, 8, 8], strides = [1, 1, 1]} : vector<2x8x32xf32> to vector<2x8x8xf32>
    "tpu.trace_start"() <{level = 10 : i32, message = "bqk,bkd->bqd"}> : () -> ()
    %cst_91 = arith.constant dense<0.000000e+00> : vector<2x8x8xf32>
    %293 = tpu.matmul %291, %292, %cst_91 {dimension_numbers = #tpu.dot_dimension_numbers<[2], [1], [1], [2], [0, 0, 0, 1, 1, 2], [0], [0]>} : vector<2x8x8xf32>, vector<2x8x8xf32>, vector<2x8x8xf32> -> vector<2x8x8xf32>
    "tpu.trace_stop"() : () -> ()
    %294 = vector.shape_cast %293 : vector<2x8x8xf32> to vector<16x8xf32>
    %295 = vector.extract_strided_slice %254 {offsets = [8, 0], sizes = [8, 32], strides = [1, 1]} : vector<32x32xf32> to vector<8x32xf32>
    %cst_92 = arith.constant dense<0.000000e+00> : vector<16x32xf32>
    %296 = tpu.matmul %294, %295, %cst_92 {dimension_numbers = #tpu.dot_dimension_numbers<[1], [0], [0], [1], [0, 0, 1, 1], [], []>} : vector<16x8xf32>, vector<8x32xf32>, vector<16x32xf32> -> vector<16x32xf32>
    %297 = arith.addf %278, %296 : vector<16x32xf32>
    %298 = vector.extract_strided_slice %256 {offsets = [0, 0, 16], sizes = [2, 8, 8], strides = [1, 1, 1]} : vector<2x8x32xf32> to vector<2x8x8xf32>
    %299 = vector.extract_strided_slice %257 {offsets = [0, 0, 16], sizes = [2, 8, 8], strides = [1, 1, 1]} : vector<2x8x32xf32> to vector<2x8x8xf32>
    "tpu.trace_start"() <{level = 10 : i32, message = "bqd,bkd->bqk"}> : () -> ()
    %cst_93 = arith.constant dense<0.000000e+00> : vector<2x8x8xf32>
    %300 = tpu.matmul %298, %299, %cst_93 {dimension_numbers = #tpu.dot_dimension_numbers<[2], [2], [1], [1], [0, 0, 0, 1, 1, 1], [0], [0]>} : vector<2x8x8xf32>, vector<2x8x8xf32>, vector<2x8x8xf32> -> vector<2x8x8xf32>
    "tpu.trace_stop"() : () -> ()
    %cst_94 = arith.constant dense<0xFF800000> : vector<2x8xf32>
    %301 = vector.multi_reduction <maximumf>, %300, %cst_94 [2] : vector<2x8x8xf32> to vector<2x8xf32>
    %302 = vector.shape_cast %301 : vector<2x8xf32> to vector<2x8x1xf32>
    %303 = vector.broadcast %302 : vector<2x8x1xf32> to vector<2x8x8xf32>
    %304 = arith.subf %300, %303 : vector<2x8x8xf32>
    %305 = math.exp %304 : vector<2x8x8xf32>
    %cst_95 = arith.constant dense<0.000000e+00> : vector<2x8xf32>
    %306 = vector.multi_reduction <add>, %305, %cst_95 [2] : vector<2x8x8xf32> to vector<2x8xf32>
    %307 = vector.shape_cast %306 : vector<2x8xf32> to vector<2x8x1xf32>
    %308 = tpu.reciprocal %307 : vector<2x8x1xf32> -> vector<2x8x1xf32>
    %309 = vector.broadcast %308 : vector<2x8x1xf32> to vector<2x8x8xf32>
    %310 = arith.mulf %305, %309 : vector<2x8x8xf32>
    %311 = vector.extract_strided_slice %258 {offsets = [0, 0, 16], sizes = [2, 8, 8], strides = [1, 1, 1]} : vector<2x8x32xf32> to vector<2x8x8xf32>
    "tpu.trace_start"() <{level = 10 : i32, message = "bqk,bkd->bqd"}> : () -> ()
    %cst_96 = arith.constant dense<0.000000e+00> : vector<2x8x8xf32>
    %312 = tpu.matmul %310, %311, %cst_96 {dimension_numbers = #tpu.dot_dimension_numbers<[2], [1], [1], [2], [0, 0, 0, 1, 1, 2], [0], [0]>} : vector<2x8x8xf32>, vector<2x8x8xf32>, vector<2x8x8xf32> -> vector<2x8x8xf32>
    "tpu.trace_stop"() : () -> ()
    %313 = vector.shape_cast %312 : vector<2x8x8xf32> to vector<16x8xf32>
    %314 = vector.extract_strided_slice %254 {offsets = [16, 0], sizes = [8, 32], strides = [1, 1]} : vector<32x32xf32> to vector<8x32xf32>
    %cst_97 = arith.constant dense<0.000000e+00> : vector<16x32xf32>
    %315 = tpu.matmul %313, %314, %cst_97 {dimension_numbers = #tpu.dot_dimension_numbers<[1], [0], [0], [1], [0, 0, 1, 1], [], []>} : vector<16x8xf32>, vector<8x32xf32>, vector<16x32xf32> -> vector<16x32xf32>
    %316 = arith.addf %297, %315 : vector<16x32xf32>
    %317 = vector.extract_strided_slice %256 {offsets = [0, 0, 24], sizes = [2, 8, 8], strides = [1, 1, 1]} : vector<2x8x32xf32> to vector<2x8x8xf32>
    %318 = vector.extract_strided_slice %257 {offsets = [0, 0, 24], sizes = [2, 8, 8], strides = [1, 1, 1]} : vector<2x8x32xf32> to vector<2x8x8xf32>
    "tpu.trace_start"() <{level = 10 : i32, message = "bqd,bkd->bqk"}> : () -> ()
    %cst_98 = arith.constant dense<0.000000e+00> : vector<2x8x8xf32>
    %319 = tpu.matmul %317, %318, %cst_98 {dimension_numbers = #tpu.dot_dimension_numbers<[2], [2], [1], [1], [0, 0, 0, 1, 1, 1], [0], [0]>} : vector<2x8x8xf32>, vector<2x8x8xf32>, vector<2x8x8xf32> -> vector<2x8x8xf32>
    "tpu.trace_stop"() : () -> ()
    %cst_99 = arith.constant dense<0xFF800000> : vector<2x8xf32>
    %320 = vector.multi_reduction <maximumf>, %319, %cst_99 [2] : vector<2x8x8xf32> to vector<2x8xf32>
    %321 = vector.shape_cast %320 : vector<2x8xf32> to vector<2x8x1xf32>
    %322 = vector.broadcast %321 : vector<2x8x1xf32> to vector<2x8x8xf32>
    %323 = arith.subf %319, %322 : vector<2x8x8xf32>
    %324 = math.exp %323 : vector<2x8x8xf32>
    %cst_100 = arith.constant dense<0.000000e+00> : vector<2x8xf32>
    %325 = vector.multi_reduction <add>, %324, %cst_100 [2] : vector<2x8x8xf32> to vector<2x8xf32>
    %326 = vector.shape_cast %325 : vector<2x8xf32> to vector<2x8x1xf32>
    %327 = tpu.reciprocal %326 : vector<2x8x1xf32> -> vector<2x8x1xf32>
    %328 = vector.broadcast %327 : vector<2x8x1xf32> to vector<2x8x8xf32>
    %329 = arith.mulf %324, %328 : vector<2x8x8xf32>
    %330 = vector.extract_strided_slice %258 {offsets = [0, 0, 24], sizes = [2, 8, 8], strides = [1, 1, 1]} : vector<2x8x32xf32> to vector<2x8x8xf32>
    "tpu.trace_start"() <{level = 10 : i32, message = "bqk,bkd->bqd"}> : () -> ()
    %cst_101 = arith.constant dense<0.000000e+00> : vector<2x8x8xf32>
    %331 = tpu.matmul %329, %330, %cst_101 {dimension_numbers = #tpu.dot_dimension_numbers<[2], [1], [1], [2], [0, 0, 0, 1, 1, 2], [0], [0]>} : vector<2x8x8xf32>, vector<2x8x8xf32>, vector<2x8x8xf32> -> vector<2x8x8xf32>
    "tpu.trace_stop"() : () -> ()
    %332 = vector.shape_cast %331 : vector<2x8x8xf32> to vector<16x8xf32>
    %333 = vector.extract_strided_slice %254 {offsets = [24, 0], sizes = [8, 32], strides = [1, 1]} : vector<32x32xf32> to vector<8x32xf32>
    %cst_102 = arith.constant dense<0.000000e+00> : vector<16x32xf32>
    %334 = tpu.matmul %332, %333, %cst_102 {dimension_numbers = #tpu.dot_dimension_numbers<[1], [0], [0], [1], [0, 0, 1, 1], [], []>} : vector<16x8xf32>, vector<8x32xf32>, vector<16x32xf32> -> vector<16x32xf32>
    %335 = arith.addf %316, %334 : vector<16x32xf32>
    %336 = vector.broadcast %255 : vector<1x32xf32> to vector<16x32xf32>
    %337 = arith.addf %335, %336 : vector<16x32xf32>
    %338 = arith.addf %241, %337 : vector<16x32xf32>
    %cst_103 = arith.constant dense<0.000000e+00> : vector<16xf32>
    %339 = vector.multi_reduction <add>, %338, %cst_103 [1] : vector<16x32xf32> to vector<16xf32>
    %340 = vector.shape_cast %339 : vector<16xf32> to vector<16x1xf32>
    %cst_104 = arith.constant 3.200000e+01 : f32
    %341 = vector.broadcast %cst_104 : f32 to vector<16x1xf32>
    %342 = arith.divf %340, %341 : vector<16x1xf32>
    %343 = arith.mulf %338, %338 : vector<16x32xf32>
    %cst_105 = arith.constant dense<0.000000e+00> : vector<16xf32>
    %344 = vector.multi_reduction <add>, %343, %cst_105 [1] : vector<16x32xf32> to vector<16xf32>
    %345 = vector.shape_cast %344 : vector<16xf32> to vector<16x1xf32>
    %cst_106 = arith.constant 3.200000e+01 : f32
    %346 = vector.broadcast %cst_106 : f32 to vector<16x1xf32>
    %347 = arith.divf %345, %346 : vector<16x1xf32>
    %348 = arith.mulf %342, %342 : vector<16x1xf32>
    %349 = arith.subf %347, %348 : vector<16x1xf32>
    %350 = vector.broadcast %342 : vector<16x1xf32> to vector<16x32xf32>
    %351 = arith.subf %338, %350 : vector<16x32xf32>
    %cst_107 = arith.constant 9.99999974E-6 : f32
    %352 = vector.broadcast %cst_107 : f32 to vector<16x1xf32>
    %353 = arith.addf %349, %352 : vector<16x1xf32>
    %354 = math.rsqrt %353 : vector<16x1xf32>
    %355 = vector.broadcast %354 : vector<16x1xf32> to vector<16x32xf32>
    %356 = arith.mulf %351, %355 : vector<16x32xf32>
    %c364 = arith.constant 364 : index
    %c0_108 = arith.constant 0 : index
    %357 = vector.load %arg4[%c364, %c0_108] : memref<376x128xf32, #tpu.memory_space<vmem>>, vector<1x32xf32>
    %358 = vector.broadcast %357 : vector<1x32xf32> to vector<16x32xf32>
    %359 = arith.mulf %356, %358 : vector<16x32xf32>
    %c365 = arith.constant 365 : index
    %c0_109 = arith.constant 0 : index
    %360 = vector.load %arg4[%c365, %c0_109] : memref<376x128xf32, #tpu.memory_space<vmem>>, vector<1x32xf32>
    %361 = vector.broadcast %360 : vector<1x32xf32> to vector<16x32xf32>
    %362 = arith.addf %359, %361 : vector<16x32xf32>
    %c256 = arith.constant 256 : index
    %c0_110 = arith.constant 0 : index
    %363 = vector.load %arg4[%c256, %c0_110] : memref<376x128xf32, #tpu.memory_space<vmem>>, vector<32x64xf32>
    %cst_111 = arith.constant dense<0.000000e+00> : vector<16x64xf32>
    %364 = tpu.matmul %362, %363, %cst_111 {dimension_numbers = #tpu.dot_dimension_numbers<[1], [0], [0], [1], [0, 0, 1, 1], [], []>} : vector<16x32xf32>, vector<32x64xf32>, vector<16x64xf32> -> vector<16x64xf32>
    %c366 = arith.constant 366 : index
    %c0_112 = arith.constant 0 : index
    %365 = vector.load %arg4[%c366, %c0_112] : memref<376x128xf32, #tpu.memory_space<vmem>>, vector<1x64xf32>
    %366 = vector.broadcast %365 : vector<1x64xf32> to vector<16x64xf32>
    %367 = arith.addf %364, %366 : vector<16x64xf32>
    %cst_113 = arith.constant 0.000000e+00 : f32
    %368 = vector.broadcast %cst_113 : f32 to vector<16x64xf32>
    %369 = arith.maximumf %367, %368 : vector<16x64xf32>
    %c288 = arith.constant 288 : index
    %c0_114 = arith.constant 0 : index
    %370 = vector.load %arg4[%c288, %c0_114] : memref<376x128xf32, #tpu.memory_space<vmem>>, vector<64x32xf32>
    %cst_115 = arith.constant dense<0.000000e+00> : vector<16x32xf32>
    %371 = tpu.matmul %369, %370, %cst_115 {dimension_numbers = #tpu.dot_dimension_numbers<[1], [0], [0], [1], [0, 0, 1, 1], [], []>} : vector<16x64xf32>, vector<64x32xf32>, vector<16x32xf32> -> vector<16x32xf32>
    %c367 = arith.constant 367 : index
    %c0_116 = arith.constant 0 : index
    %372 = vector.load %arg4[%c367, %c0_116] : memref<376x128xf32, #tpu.memory_space<vmem>>, vector<1x32xf32>
    %373 = vector.broadcast %372 : vector<1x32xf32> to vector<16x32xf32>
    %374 = arith.addf %371, %373 : vector<16x32xf32>
    %375 = arith.addf %362, %374 : vector<16x32xf32>
    %cst_117 = arith.constant dense<0.000000e+00> : vector<16xf32>
    %376 = vector.multi_reduction <add>, %375, %cst_117 [1] : vector<16x32xf32> to vector<16xf32>
    %377 = vector.shape_cast %376 : vector<16xf32> to vector<16x1xf32>
    %cst_118 = arith.constant 3.200000e+01 : f32
    %378 = vector.broadcast %cst_118 : f32 to vector<16x1xf32>
    %379 = arith.divf %377, %378 : vector<16x1xf32>
    %380 = arith.mulf %375, %375 : vector<16x32xf32>
    %cst_119 = arith.constant dense<0.000000e+00> : vector<16xf32>
    %381 = vector.multi_reduction <add>, %380, %cst_119 [1] : vector<16x32xf32> to vector<16xf32>
    %382 = vector.shape_cast %381 : vector<16xf32> to vector<16x1xf32>
    %cst_120 = arith.constant 3.200000e+01 : f32
    %383 = vector.broadcast %cst_120 : f32 to vector<16x1xf32>
    %384 = arith.divf %382, %383 : vector<16x1xf32>
    %385 = arith.mulf %379, %379 : vector<16x1xf32>
    %386 = arith.subf %384, %385 : vector<16x1xf32>
    %387 = vector.broadcast %379 : vector<16x1xf32> to vector<16x32xf32>
    %388 = arith.subf %375, %387 : vector<16x32xf32>
    %cst_121 = arith.constant 9.99999974E-6 : f32
    %389 = vector.broadcast %cst_121 : f32 to vector<16x1xf32>
    %390 = arith.addf %386, %389 : vector<16x1xf32>
    %391 = math.rsqrt %390 : vector<16x1xf32>
    %392 = vector.broadcast %391 : vector<16x1xf32> to vector<16x32xf32>
    %393 = arith.mulf %388, %392 : vector<16x32xf32>
    %c368 = arith.constant 368 : index
    %c0_122 = arith.constant 0 : index
    %394 = vector.load %arg4[%c368, %c0_122] : memref<376x128xf32, #tpu.memory_space<vmem>>, vector<1x32xf32>
    %395 = vector.broadcast %394 : vector<1x32xf32> to vector<16x32xf32>
    %396 = arith.mulf %393, %395 : vector<16x32xf32>
    %c369 = arith.constant 369 : index
    %c0_123 = arith.constant 0 : index
    %397 = vector.load %arg4[%c369, %c0_123] : memref<376x128xf32, #tpu.memory_space<vmem>>, vector<1x32xf32>
    %398 = vector.broadcast %397 : vector<1x32xf32> to vector<16x32xf32>
    %399 = arith.addf %396, %398 : vector<16x32xf32>
    %c0_124 = arith.constant 0 : index
    %c0_125 = arith.constant 0 : index
    %400 = vector.load %arg5[%c0_124, %c0_125] : memref<16x32xf32, #tpu.memory_space<vmem>>, vector<16x32xf32>
    tpu.vector_store %arg5[%c0_124, %c0_125], %399 {strides = array<i32>} : memref<16x32xf32, #tpu.memory_space<vmem>>, vector<16x32xf32>,
    return
  }
  func.func @transform_0(%arg0: i32) -> (i32, i32) {
    %c0_i32 = arith.constant 0 : i32
    %c0_i32_0 = arith.constant 0 : i32
    %c0_i32_1 = arith.constant 0 : i32
    return %c0_i32, %c0_i32_0 : i32, i32
  }
  func.func @transform_1(%arg0: i32) -> (i32, i32) {
    %c0_i32 = arith.constant 0 : i32
    %c0_i32_0 = arith.constant 0 : i32
    %c0_i32_1 = arith.constant 0 : i32
    return %c0_i32, %c0_i32_0 : i32, i32
  }
  func.func @transform_2(%arg0: i32) -> (i32, i32) {
    %c0_i32 = arith.constant 0 : i32
    %c0_i32_0 = arith.constant 0 : i32
    %c0_i32_1 = arith.constant 0 : i32
    return %c0_i32, %c0_i32_0 : i32, i32
  }
  func.func @transform_3(%arg0: i32) -> (i32, i32) {
    %c0_i32 = arith.constant 0 : i32
    %c0_i32_0 = arith.constant 0 : i32
    %c0_i32_1 = arith.constant 0 : i32
    return %c0_i32, %c0_i32_0 : i32, i32
  }
  func.func @transform_4(%arg0: i32) -> (i32, i32) {
    %c0_i32 = arith.constant 0 : i32
    %c0_i32_0 = arith.constant 0 : i32
    %c0_i32_1 = arith.constant 0 : i32
    return %c0_i32, %c0_i32_0 : i32, i32
  }
}

</mosaic_0001>

<bundles_post_ra>
// kernel: tpu_custom_call.1
= control target key start
LH: loop header
LB: loop body
LE: loop exit
PB: predicated region body
PF: predicated region fallthrough
CT: control target
= control target key end

     0   :  { %9 = vsyncpa [#allocation3], 0  ;;  %s7558_s0 = inlined_call_operand.hbm [shape: f32[16,32], index: 0, kind: input, shape index: {}]   ;;  %s7559_s1 = inlined_call_operand.hbm [shape: f32[16,32], index: 1, kind: input, shape index: {}]   ;;  %s7560_s2 = inlined_call_operand.hbm [shape: f32[16,32], index: 2, kind: input, shape index: {}]   ;;  %s7561_s3 = inlined_call_operand.hbm [shape: f32[376,128], index: 3, kind: input, shape index: {}]   ;;  %s7562_s4 = inlined_call_operand.hbm [shape: f32[16,32], index: 4, kind: output, shape index: {}]  }
   0x1   :  { %10 = vsyncpa [#allocation6], 0 }
   0x2   :  { %11 = vsyncpa [#allocation9], 0 }
   0x3   :  { %12 = vsyncpa [#allocation4], 0  ;;  %s6914_s15 = smov [#allocation5]   ;;  %s6915_s17 = smov [#allocation2]  }
   0x4   :  { %s30_s16 = sshll.u32 %s6914_s15, 4  ;;  %s18_s18 = sshll.u32 %s6915_s17, 4  ;;  %s31_s16 = int_to_ptr.vmem [resolvable:$true] %s30_s16  ;;  %s6959_s18 = int_to_ptr.vmem [resolvable:$true] %s18_s18 }
   0x5   :  { %s6796_s21 = scalar_lea.hbm %s7559_s1, 256 }
   0x6   :  { %p6797_p0 = scmp.ne.s32.totalorder %s7559_s1, %s6796_s21  ;;  %p6800_p1 = scmp.lt.u32.totalorder %s6796_s21, %s7559_s1 }
   0x8   :  { %p6802_p2 = pnand %p6800_p1, %p6797_p0 }
   0xa   :  { %6805 = shalt.err (!%p6802_p2)
}
   0xb   :  { %s6806_s26 = scalar_lea.vmem %s31_s16, 256  ;;  %p6811_p4 = scmp.lt.s32.totalorder %s31_s16, %s31_s16 }
   0xc   :  { %p6807_p3 = scmp.ne.s32.totalorder %s31_s16, %s6806_s26  ;;  %p6812_p5 = scmp.lt.s32.totalorder %s6806_s26, %s6806_s26 }
   0xe   :  { %p6813_p6 = por %p6812_p5, %p6811_p4 }
  0x10   :  { %p6814_p7 = pnand %p6813_p6, %p6807_p3 }
  0x12   :  { %6817 = shalt.err (!%p6814_p7)
}
  0x13   :  { %s6916_s27 = smov 128   ;;  %s6917_s28 = smov 8  }
  0x14   :  { %36 = dma.hbm_to_vmem [thread:$0]  %s7559_s1, 256, %s31_s16, [#allocation6], %s6916_s27, %s6916_s27, %s6917_s28  }
  0x15   :  { %s6818_s7 = scalar_lea.hbm %s7558_s0, 256 }
  0x16   :  { %p6819_p8 = scmp.ne.s32.totalorder %s7558_s0, %s6818_s7  ;;  %p6822_p9 = scmp.lt.u32.totalorder %s6818_s7, %s7558_s0 }
  0x18   :  { %p6824_p10 = pnand %p6822_p9, %p6819_p8 }
  0x1a   :  { %6827 = shalt.err (!%p6824_p10)
}
  0x1b   :  { %s6828_s12 = scalar_lea.vmem %s6959_s18, 256  ;;  %p6833_p12 = scmp.lt.s32.totalorder %s6959_s18, %s6959_s18 }
  0x1c   :  { %p6829_p11 = scmp.ne.s32.totalorder %s6959_s18, %s6828_s12  ;;  %p6834_p13 = scmp.lt.s32.totalorder %s6828_s12, %s6828_s12 }
  0x1e   :  { %p6835_p0 = por %p6834_p13, %p6833_p12 }
  0x20   :  { %p6836_p1 = pnand %p6835_p0, %p6829_p11 }
  0x22   :  { %6839 = shalt.err (!%p6836_p1)
}
  0x23   :  { %24 = dma.hbm_to_vmem [thread:$0]  %s7558_s0, 256, %s6959_s18, [#allocation3], %s6916_s27, %s6916_s27, %s6917_s28  }
  0x24   :  { %s6918_s14 = smov [#allocation7]   ;;  %s6919_s16 = smov [#allocation8]  }
  0x25   :  { %s42_s15 = sshll.u32 %s6918_s14, 4  ;;  %s54_s17 = sshll.u32 %s6919_s16, 4  ;;  %s43_s15 = int_to_ptr.vmem [resolvable:$true] %s42_s15  ;;  %s6996_s17 = int_to_ptr.vmem [resolvable:$true] %s54_s17 }
  0x26   :  { %s6840_s21 = scalar_lea.hbm %s7560_s2, 256 }
  0x27   :  { %p6841_p2 = scmp.ne.s32.totalorder %s7560_s2, %s6840_s21  ;;  %p6844_p3 = scmp.lt.u32.totalorder %s6840_s21, %s7560_s2 }
  0x29   :  { %p6846_p4 = pnand %p6844_p3, %p6841_p2 }
  0x2b   :  { %6849 = shalt.err (!%p6846_p4)
}
  0x2c   :  { %s6850_s0 = scalar_lea.vmem %s43_s15, 256  ;;  %p6855_p6 = scmp.lt.s32.totalorder %s43_s15, %s43_s15 }
  0x2d   :  { %p6851_p5 = scmp.ne.s32.totalorder %s43_s15, %s6850_s0  ;;  %p6856_p7 = scmp.lt.s32.totalorder %s6850_s0, %s6850_s0 }
  0x2f   :  { %p6857_p8 = por %p6856_p7, %p6855_p6 }
  0x31   :  { %p6858_p9 = pnand %p6857_p8, %p6851_p5 }
  0x33   :  { %6861 = shalt.err (!%p6858_p9)
}
  0x34   :  { %48 = dma.hbm_to_vmem [thread:$0]  %s7560_s2, 256, %s43_s15, [#allocation6], %s6916_s27, %s6916_s27, %s6917_s28  }
  0x35   :  { %s6862_s5 = scalar_lea.hbm %s7561_s3, 6016 }
  0x36   :  { %p6863_p10 = scmp.ne.s32.totalorder %s7561_s3, %s6862_s5  ;;  %p6866_p11 = scmp.lt.u32.totalorder %s6862_s5, %s7561_s3 }
  0x38   :  { %p6868_p12 = pnand %p6866_p11, %p6863_p10 }
  0x3a   :  { %6871 = shalt.err (!%p6868_p12)
}
  0x3b   :  { %s6872_s10 = scalar_lea.vmem %s6996_s17, 6016  ;;  %p6877_p0 = scmp.lt.s32.totalorder %s6996_s17, %s6996_s17 }
  0x3c   :  { %p6873_p13 = scmp.ne.s32.totalorder %s6996_s17, %s6872_s10  ;;  %p6878_p1 = scmp.lt.s32.totalorder %s6872_s10, %s6872_s10 }
  0x3e   :  { %p6879_p2 = por %p6878_p1, %p6877_p0 }
  0x40   :  { %p6880_p3 = pnand %p6879_p2, %p6873_p13 }
  0x42   :  { %6883 = shalt.err (!%p6880_p3)
}
  0x43   :  { %60 = dma.hbm_to_vmem [thread:$0]  %s7561_s3, 6016, %s6996_s17, [#allocation9], %s6916_s27, %s6916_s27, %s6917_s28  }
  0x44   :  { %6906 = dma.done.wait [#allocation3], 256  }
  0x45   :  { %6907 = vsyncadd [#allocation3], 4294967040 }
  0x46   :  { %6908 = dma.done.wait [#allocation6], 512  }
  0x47   :  { %6909 = vsyncadd [#allocation6], 4294966784 }
  0x48   :  { %6910 = dma.done.wait [#allocation9], 6016  }
  0x49   :  { %6911 = vsyncadd [#allocation9], 4294961280  ;;  %vm88_vm0 = vcmask 261120   ;;  %v79_v0 = vld [vmem:[#allocation8] sm:$0xff]  ;;  %v80_v1 = vld [vmem:[#allocation8 + $0x8] sm:$0xff]  ;;  %v6920_v8 = vmov 0.0  }
  0x4a   :  { %v81_v2 = vld [vmem:[#allocation8 + $0x10] sm:$0xff]  ;;  %v6582_v3 = vpack.c.bf16 %v80_v1, %v79_v0  ;;  %v82_v4 = vld [vmem:[#allocation8 + $0x18] sm:$0xff]  ;;  %6218 = vmatprep.subr.mxu0 %v6920_v8  ;;  %vm6921_vm1 = vmmov 0   ;;  %v5891_v9 = vld [vmem:[#allocation8 + $0x160] ss:$0 sm:$0xff]  ;;  %s6922_s3 = smov 96  }
  0x4b   :  { %v7033_v5 = vld [vmem:[#allocation2] sm:$0xff]  ;;  %v6586_v6 = vpack.c.bf16 %v82_v4, %v81_v2  ;;  %v7037_v7 = vld [vmem:[#allocation2 + $0x8] sm:$0xff]  ;;  %6220 = vmatprep.mubr.msk.f32.mxu0 %vm6921_vm1, %v6920_v8  ;;  %s6923_s12 = smov 64   ;;  %s6924_s1 = smov 120   ;;  %vm178_vm2 = vcmask 64512   ;;  %vm5742_vm3 = vcmask 523264  }
  0x4c   :  { %6205 = vmatprep.mubr.msk.f32.mxu1 %vm88_vm0, %v7033_v5  ;;  %6583 = vmatprep.subr.bf16.mxu1 %v6582_v3  ;;  %s6925_s13 = smov 88   ;;  %s6926_s14 = smov 80  }
  0x4d   :  { %6585 = vmatpush3.bf16.msra.mxu1 %v6582_v3  ;;  %s6927_s15 = smov 56   ;;  %s6928_s16 = smov 112  }
  0x4e   :  { %6587 = vmatprep.subr.bf16.mxu1 %v6586_v6  ;;  %s6929_s17 = smov 48   ;;  %s6930_s19 = smov 72  }
  0x4f   :  { %s6931_s20 = smov 104   ;;  %s6932_s21 = smov 40  }
  0x50   :  { %s6933_s22 = smov [#allocation10]  }
  0x51   :  { %6589 = vmatpush3.bf16.msra.mxu1 %v6586_v6  ;;  %s5877_s23 = sshll.u32 %s6933_s22, 4  ;;  %s5878_s23 = int_to_ptr.vmem [resolvable:$true] %s5877_s23 }
  0x52   :  { %6208 = vmatprep.subr.mxu1 %v6920_v8  ;;  %s6884_s24 = scalar_lea.vmem %s5878_s23, 256  ;;  %p6889_p5 = scmp.lt.s32.totalorder %s5878_s23, %s5878_s23 }
  0x53   :  { %p6885_p4 = scmp.ne.s32.totalorder %s5878_s23, %s6884_s24  ;;  %p6890_p6 = scmp.lt.s32.totalorder %s6884_s24, %s6884_s24 }
  0x54   :  { %6206 = vmatmul.mubr.msk.f32.vlgmr.msra.gmra.mrb[0].mxu1 %vm88_vm0, %v7037_v7 }
  0x55   :  { %6210 = vmatprep.mubr.msk.f32.mxu1 %vm6921_vm1, %v6920_v8  ;;  %p6891_p7 = por %p6890_p6, %p6889_p5 }
  0x57   :  { %p6892_p8 = pnand %p6891_p7, %p6885_p4 }
 0x127   :  { %v6207_v10 = vpop.f32.mrb[0].mxu1 }
 0x128   :  { %v161_v11 = vpop.f32.mrb[1].mxu1  ;;  %v7051_v13 = vadd.f32 %v6207_v10, %v5891_v9 }
 0x129   :  { %v7047_v12 = vadd.f32 %v5891_v9, %v161_v11 }
 0x12b   :  { %176 = vrot.lane.b32.xlu0 %v7047_v12, %s6922_s3 }
 0x12f   :  { %254 = vrot.lane.b32.xlu0 %v7051_v13, %s6922_s3 }
 0x133   :  { %428 = vrot.lane.b32.xlu0 %v7051_v13, %s6923_s12 }
 0x137   :  { %582 = vrot.lane.b32.xlu0 %v7051_v13, %s6924_s1 }
 0x19d   :  { %v177_v14 = vpop.permute.xlu0 %176 }
 0x19e   :  { %6209 = vmatpush3.xpose.msk.msra.mxu1 %vm178_vm2, %v177_v14 }
 0x19f   :  { %6213 = vmatprep.subr.mxu1 %v6920_v8 }
 0x1a1   :  { %6211 = vmatmul.mubr.msk.f32.vlgmr.msra.gmra.mrb[2].mxu1 %vm178_vm2, %v7047_v12  ;;  %v255_v15 = vpop.permute.xlu0 %254 }
 0x1a2   :  { %6214 = vmatpush3.xpose.msk.msra.mxu1 %vm178_vm2, %v255_v15  ;;  %6215 = vmatprep.mubr.msk.f32.mxu1 %vm6921_vm1, %v6920_v8 }
 0x1a3   :  { %6223 = vmatprep.subr.mxu1 %v6920_v8 }
 0x1a5   :  { %6216 = vmatmul.mubr.msk.f32.vlgmr.msra.gmra.mrb[4].mxu1 %vm178_vm2, %v7051_v13  ;;  %v429_v16 = vpop.permute.xlu0 %428 }
 0x1a6   :  { %6224 = vmatpush3.msra.mxu1 %v429_v16  ;;  %6225 = vmatprep.mubr.msk.f32.mxu1 %vm6921_vm1, %v6920_v8 }
 0x1a7   :  { %6233 = vmatprep.subr.mxu1 %v6920_v8 }
 0x1a9   :  { %v583_v23 = vpop.permute.xlu0 %582 }
 0x274   :  { %v249_v17 = vpop.f32.mrb[2].mxu1 }
 0x275   :  { %v6212_v18 = vpop.f32.mrb[3].mxu1  ;;  %v330_v19 = vsel %vm178_vm2, %v249_v17, -inf }
 0x276   :  { %331 = vmax.xlane.f32.xlu0 %v330_v19  ;;  %v170_v18 = vld [vmem:[#allocation8 + $0x20] sm:$0xff] }
 0x278   :  { %v326_v20 = vpop.f32.mrb[4].mxu1 }
 0x279   :  { %v6217_v21 = vpop.f32.mrb[5].mxu1  ;;  %v333_v22 = vsel %vm178_vm2, %v326_v20, -inf }
 0x27a   :  { %334 = vmax.xlane.f32.xlu1 %v333_v22 }
 0x28c   :  { %352 = vrot.lane.b32.xlu0 %v7047_v12, %s6923_s12 }
 0x290   :  { %504 = vrot.lane.b32.xlu0 %v7047_v12, %s6924_s1 }
 0x303   :  { %v332_v24 = vpop.xlane.xlu0 %331 }
 0x304   :  { %v336_v31 = vsub.f32 %v249_v17, %v332_v24  ;;  %v171_v17 = vld [vmem:[#allocation8 + $0x28] sm:$0xff] }
 0x306   :  { %v338_v32 = vmul.f32 1.442695, %v336_v31 }
 0x307   :  { %v335_v25 = vpop.xlane.xlu1 %334  ;;  %v353_v26 = vpop.permute.xlu0 %352 }
 0x308   :  { %v337_v27 = vsub.f32 %v326_v20, %v335_v25  ;;  %6219 = vmatpush3.msra.mxu0 %v353_v26 }
 0x309   :  { %6228 = vmatprep.subr.mxu0 %v6920_v8 }
 0x30a   :  { %v340_v28 = vmul.f32 1.442695, %v337_v27 }
 0x30b   :  { %v505_v43 = vpop.permute.xlu0 %504 }
 0x30c   :  { %6684 = vpow2.f32 %v340_v28 }
 0x30d   :  { %6686 = vpow2.f32 %v338_v32 }
 0x316   :  { %v6685_v29 = vpop.eup %6684 }
 0x317   :  { %v345_v30 = vsel %vm178_vm2, %v6685_v29, 0.0  ;;  %v6687_v33 = vpop.eup %6686 }
 0x318   :  { %346 = vadd.xlane.f32.xlu1 %v345_v30  ;;  %v342_v34 = vsel %vm178_vm2, %v6687_v33, 0.0 }
 0x329   :  { %584 = vrot.lane.b32.xlu1 %v7051_v13, %s6925_s13 }
 0x34d   :  { %343 = vadd.xlane.f32.xlu1 %v342_v34 }
 0x35e   :  { %506 = vrot.lane.b32.xlu1 %v7047_v12, %s6925_s13 }
 0x362   :  { %998 = vrot.lane.b32.xlu1 %v7047_v12, %s6926_s14 }
 0x3a5   :  { %v347_v35 = vpop.xlane.xlu1 %346 }
 0x3a6   :  { %6688 = vrcp.f32 %v347_v35 }
 0x3a9   :  { %v585_v38 = vpop.permute.xlu1 %584 }
 0x3b0   :  { %v6689_v36 = vpop.eup %6688 }
 0x3b1   :  { %v351_v37 = vmul.f32 %v6689_v36, %v6685_v29 }
 0x3b3   :  { %6226 = vmatmul.mubr.msk.f32.vlgmr.msra.gmra.mrb[6].mxu1 %vm178_vm2, %v351_v37 }
 0x3b4   :  { %6234 = vmatpush3.xpose.msk.msra.mxu1 %vm178_vm2, %v585_v38  ;;  %6235 = vmatprep.mubr.msk.f32.mxu1 %vm6921_vm1, %v6920_v8 }
 0x3b5   :  { %6243 = vmatprep.subr.mxu1 %v6920_v8 }
 0x3b7   :  { %6236 = vmatmul.mubr.msk.f32.vlgmr.msra.gmra.mrb[8].mxu1 %vm178_vm2, %v583_v23 }
 0x3b8   :  { %6245 = vmatprep.mubr.msk.f32.mxu1 %vm6921_vm1, %v6920_v8 }
 0x3da   :  { %v344_v39 = vpop.xlane.xlu1 %343 }
 0x3db   :  { %6690 = vrcp.f32 %v344_v39 }
 0x3de   :  { %v507_v42 = vpop.permute.xlu1 %506 }
 0x3e2   :  { %v999_v4 = vpop.permute.xlu1 %998 }
 0x3e5   :  { %v6691_v40 = vpop.eup %6690 }
 0x3e6   :  { %v350_v41 = vmul.f32 %v6691_v40, %v6687_v33  ;;  %v172_v40 = vld [vmem:[#allocation8 + $0x30] sm:$0xff] }
 0x3e8   :  { %6221 = vmatmul.mubr.msk.f32.vlgmr.msra.gmra.mrb[0].mxu0 %vm178_vm2, %v350_v41 }
 0x3e9   :  { %6229 = vmatpush3.xpose.msk.msra.mxu0 %vm178_vm2, %v507_v42  ;;  %6230 = vmatprep.mubr.msk.f32.mxu0 %vm6921_vm1, %v6920_v8 }
 0x3ea   :  { %6238 = vmatprep.subr.mxu0 %v6920_v8 }
 0x3ec   :  { %6231 = vmatmul.mubr.msk.f32.vlgmr.msra.gmra.mrb[2].mxu0 %vm178_vm2, %v505_v43 }
 0x3ed   :  { %6240 = vmatprep.mubr.msk.f32.mxu0 %vm6921_vm1, %v6920_v8 }
 0x486   :  { %v7101_v44 = vpop.f32.mrb[6].mxu1 }
 0x487   :  { %v6227_v45 = vpop.f32.mrb[7].mxu1 }
 0x48a   :  { %v656_v46 = vpop.f32.mrb[8].mxu1 }
 0x48b   :  { %v6237_v47 = vpop.f32.mrb[9].mxu1  ;;  %v663_v48 = vsel %vm178_vm2, %v656_v46, -inf }
 0x48c   :  { %664 = vmax.xlane.f32.xlu0 %v663_v48 }
 0x4a2   :  { %758 = vrot.lane.b32.xlu0 %v7051_v13, %s6927_s15 }
 0x4a6   :  { %996 = vrot.lane.b32.xlu0 %v7047_v12, %s6928_s16 }
 0x4aa   :  { %1076 = vrot.lane.b32.xlu0 %v7051_v13, %s6926_s14 }
 0x4bb   :  { %v7109_v49 = vpop.f32.mrb[0].mxu0 }
 0x4bc   :  { %v6222_v50 = vpop.f32.mrb[1].mxu0 }
 0x4bf   :  { %v578_v51 = vpop.f32.mrb[2].mxu0 }
 0x4c0   :  { %v6232_v52 = vpop.f32.mrb[3].mxu0  ;;  %v660_v53 = vsel %vm178_vm2, %v578_v51, -inf }
 0x4c9   :  { %661 = vmax.xlane.f32.xlu0 %v660_v53 }
 0x4df   :  { %682 = vrot.lane.b32.xlu0 %v7047_v12, %s6927_s15 }
 0x4e3   :  { %1174 = vrot.lane.b32.xlu0 %v7047_v12, %s6929_s17 }
 0x4e7   :  { %1411 = vrot.lane.b32.xlu0 %v7047_v12, %s6930_s19 }
 0x4eb   :  { %1489 = vrot.lane.b32.xlu0 %v7051_v13, %s6930_s19 }
 0x4ef   :  { %1409 = vrot.lane.b32.xlu0 %v7047_v12, %s6931_s20 }
 0x4f3   :  { %1487 = vrot.lane.b32.xlu0 %v7051_v13, %s6931_s20 }
 0x519   :  { %v665_v54 = vpop.xlane.xlu0 %664 }
 0x51a   :  { %v667_v55 = vsub.f32 %v656_v46, %v665_v54 }
 0x51c   :  { %v670_v56 = vmul.f32 1.442695, %v667_v55 }
 0x51d   :  { %v759_v57 = vpop.permute.xlu0 %758 }
 0x51e   :  { %6692 = vpow2.f32 %v670_v56  ;;  %6244 = vmatpush3.msra.mxu1 %v759_v57 }
 0x51f   :  { %6258 = vmatprep.subr.mxu1 %v6920_v8 }
 0x521   :  { %v997_v60 = vpop.permute.xlu0 %996 }
 0x525   :  { %v1077_v61 = vpop.permute.xlu0 %1076 }
 0x528   :  { %v6693_v58 = vpop.eup %6692 }
 0x529   :  { %v675_v59 = vsel %vm178_vm2, %v6693_v58, 0.0 }
 0x52a   :  { %676 = vadd.xlane.f32.xlu1 %v675_v59 }
 0x53b   :  { %1074 = vrot.lane.b32.xlu1 %v7051_v13, %s6928_s16 }
 0x556   :  { %v662_v62 = vpop.xlane.xlu0 %661 }
 0x557   :  { %v666_v63 = vsub.f32 %v578_v51, %v662_v62 }
 0x559   :  { %v668_v0 = vmul.f32 1.442695, %v666_v63 }
 0x55a   :  { %v683_v1 = vpop.permute.xlu0 %682 }
 0x55b   :  { %6694 = vpow2.f32 %v668_v0  ;;  %6239 = vmatpush3.msra.mxu0 %v683_v1 }
 0x55c   :  { %6248 = vmatprep.subr.mxu0 %v171_v17 }
 0x55e   :  { %v1175_v29 = vpop.permute.xlu0 %1174 }
 0x565   :  { %v6695_v2 = vpop.eup %6694 }
 0x566   :  { %v672_v3 = vsel %vm178_vm2, %v6695_v2, 0.0 }
 0x567   :  { %673 = vadd.xlane.f32.xlu1 %v672_v3 }
 0x5b7   :  { %v677_v6 = vpop.xlane.xlu1 %676 }
 0x5b8   :  { %6696 = vrcp.f32 %v677_v6 }
 0x5bb   :  { %v1075_v11 = vpop.permute.xlu1 %1074 }
 0x5c2   :  { %v6697_v9 = vpop.eup %6696 }
 0x5c3   :  { %v681_v10 = vmul.f32 %v6697_v9, %v6693_v58 }
 0x5c5   :  { %6246 = vmatmul.mubr.msk.f32.vlgmr.msra.gmra.mrb[10].mxu1 %vm178_vm2, %v681_v10 }
 0x5c6   :  { %6259 = vmatpush3.xpose.msk.msra.mxu1 %vm178_vm2, %v999_v4  ;;  %6260 = vmatprep.mubr.msk.f32.mxu1 %vm6921_vm1, %v6920_v8 }
 0x5c7   :  { %6263 = vmatprep.subr.mxu1 %v6920_v8 }
 0x5c9   :  { %6261 = vmatmul.mubr.msk.f32.vlgmr.msra.gmra.mrb[12].mxu1 %vm178_vm2, %v997_v60 }
 0x5ca   :  { %6264 = vmatpush3.xpose.msk.msra.mxu1 %vm178_vm2, %v1077_v61  ;;  %6265 = vmatprep.mubr.msk.f32.mxu1 %vm6921_vm1, %v6920_v8 }
 0x5cb   :  { %6273 = vmatprep.subr.mxu1 %v6920_v8 }
 0x5cd   :  { %6266 = vmatmul.mubr.msk.f32.vlgmr.msra.gmra.mrb[14].mxu1 %vm178_vm2, %v1075_v11 }
 0x5ce   :  { %6275 = vmatprep.mubr.msk.f32.mxu1 %vm6921_vm1, %v6920_v8 }
 0x5f4   :  { %v674_v14 = vpop.xlane.xlu1 %673 }
 0x5f5   :  { %6698 = vrcp.f32 %v674_v14 }
 0x5ff   :  { %v6699_v15 = vpop.eup %6698 }
 0x600   :  { %v680_v16 = vmul.f32 %v6699_v15, %v6695_v2 }
 0x602   :  { %6241 = vmatmul.mubr.msk.f32.vlgmr.msra.gmra.mrb[4].mxu0 %vm178_vm2, %v680_v16 }
 0x603   :  { %6249 = vmatpush3.msra.mxu0 %v171_v17 }
 0x604   :  { %6253 = vmatprep.subr.mxu0 %v170_v18 }
 0x698   :  { %v830_v19 = vpop.f32.mrb[10].mxu1 }
 0x699   :  { %v6247_v20 = vpop.f32.mrb[11].mxu1 }
 0x69c   :  { %v1070_v21 = vpop.f32.mrb[12].mxu1 }
 0x69d   :  { %v6262_v22 = vpop.f32.mrb[13].mxu1  ;;  %v1152_v23 = vsel %vm178_vm2, %v1070_v21, -inf }
 0x69e   :  { %1153 = vmax.xlane.f32.xlu1 %v1152_v23 }
 0x6a0   :  { %v1148_v24 = vpop.f32.mrb[14].mxu1 }
 0x6a1   :  { %v6267_v25 = vpop.f32.mrb[15].mxu1  ;;  %v1155_v26 = vsel %vm178_vm2, %v1148_v24, -inf }
 0x6a2   :  { %1156 = vmax.xlane.f32.xlu1 %v1155_v26 }
 0x6d5   :  { %v754_v27 = vpop.f32.mrb[4].mxu0 }
 0x6d6   :  { %v6242_v28 = vpop.f32.mrb[5].mxu0  ;;  %6250 = vmatprep.mubr.msk.f32.mxu0 %vm178_vm2, %v754_v27 }
 0x6d7   :  { %6251 = vmatmul.mubr.msk.f32.vlgmr.msra.gmra.mrb[6].mxu0 %vm178_vm2, %v830_v19 }
 0x6d8   :  { %6255 = vmatprep.mubr.msk.f32.mxu0 %vm178_vm2, %v7109_v49  ;;  %6254 = vmatpush3.msra.mxu0 %v170_v18 }
 0x6d9   :  { %6268 = vmatprep.subr.mxu0 %v6920_v8 }
 0x6df   :  { %6256 = vmatmul.mubr.msk.f32.vlgmr.msra.gmra.mrb[6].mxu0 %vm178_vm2, %v7101_v44  ;;  %v1412_v44 = vpop.permute.xlu0 %1411 }
 0x6e0   :  { %6269 = vmatpush3.msra.mxu0 %v1175_v29  ;;  %6270 = vmatprep.mubr.msk.f32.mxu0 %vm6921_vm1, %v6920_v8 }
 0x6e1   :  { %6278 = vmatprep.subr.mxu0 %v172_v40 }
 0x6e3   :  { %v1490_v48 = vpop.permute.xlu0 %1489 }
 0x6e7   :  { %v1410_v50 = vpop.permute.xlu0 %1409 }
 0x6eb   :  { %v1488_v55 = vpop.permute.xlu0 %1487 }
 0x72b   :  { %v1154_v30 = vpop.xlane.xlu1 %1153 }
 0x72c   :  { %v1158_v31 = vsub.f32 %v1070_v21, %v1154_v30 }
 0x72e   :  { %v1160_v32 = vmul.f32 1.442695, %v1158_v31 }
 0x72f   :  { %v1157_v33 = vpop.xlane.xlu1 %1156 }
 0x730   :  { %6700 = vpow2.f32 %v1160_v32  ;;  %v1159_v34 = vsub.f32 %v1148_v24, %v1157_v33 }
 0x732   :  { %v1162_v35 = vmul.f32 1.442695, %v1159_v34 }
 0x734   :  { %6702 = vpow2.f32 %v1162_v35 }
 0x73a   :  { %v6701_v36 = vpop.eup %6700 }
 0x73b   :  { %v1164_v37 = vsel %vm178_vm2, %v6701_v36, 0.0 }
 0x73c   :  { %1165 = vadd.xlane.f32.xlu1 %v1164_v37  ;;  %v1967_v37 = vld [vmem:[#allocation8 + $0x60] sm:$0xff] }
 0x73e   :  { %v6703_v38 = vpop.eup %6702 }
 0x73f   :  { %v1167_v39 = vsel %vm178_vm2, %v6703_v38, 0.0 }
 0x740   :  { %1168 = vadd.xlane.f32.xlu1 %v1167_v39  ;;  %v1877_v39 = vld [vmem:[#allocation8 + $0x40] sm:$0xff] }
 0x751   :  { %1250 = vrot.lane.b32.xlu1 %v7051_v13, %s6929_s17 }
 0x7c9   :  { %v1166_v41 = vpop.xlane.xlu1 %1165 }
 0x7ca   :  { %6704 = vrcp.f32 %v1166_v41  ;;  %v1970_v41 = vld [vmem:[#allocation8 + $0x78] sm:$0xff] }
 0x7cd   :  { %v1169_v42 = vpop.xlane.xlu1 %1168 }
 0x7ce   :  { %6706 = vrcp.f32 %v1169_v42 }
 0x7d1   :  { %v1251_v43 = vpop.permute.xlu1 %1250 }
 0x7d2   :  { %6274 = vmatpush3.msra.mxu1 %v1251_v43 }
 0x7d3   :  { %6283 = vmatprep.subr.mxu1 %v6920_v8 }
 0x7d4   :  { %v6705_v45 = vpop.eup %6704 }
 0x7d5   :  { %v1172_v46 = vmul.f32 %v6705_v45, %v6701_v36  ;;  %v1880_v45 = vld [vmem:[#allocation8 + $0x58] sm:$0xff] }
 0x7d7   :  { %6271 = vmatmul.mubr.msk.f32.vlgmr.msra.gmra.mrb[8].mxu0 %vm178_vm2, %v1172_v46 }
 0x7d8   :  { %v6707_v47 = vpop.eup %6706  ;;  %6279 = vmatpush3.msra.mxu0 %v172_v40  ;;  %v1878_v40 = vld [vmem:[#allocation8 + $0x48] sm:$0xff] }
 0x7d9   :  { %v1173_v49 = vmul.f32 %v6707_v47, %v6703_v38  ;;  %6288 = vmatprep.subr.mxu0 %v6920_v8  ;;  %v1968_v38 = vld [vmem:[#allocation8 + $0x68] sm:$0xff]  ;;  %v6590_v42 = vpack.c.bf16 %v1878_v40, %v1877_v39 }
 0x7db   :  { %6276 = vmatmul.mubr.msk.f32.vlgmr.msra.gmra.mrb[16].mxu1 %vm178_vm2, %v1173_v49 }
 0x7dc   :  { %6284 = vmatpush3.xpose.msk.msra.mxu1 %vm178_vm2, %v1412_v44  ;;  %6285 = vmatprep.mubr.msk.f32.mxu1 %vm6921_vm1, %v6920_v8  ;;  %v1879_v44 = vld [vmem:[#allocation8 + $0x50] sm:$0xff] }
 0x7dd   :  { %6293 = vmatprep.subr.mxu1 %v6920_v8  ;;  %v6594_v46 = vpack.c.bf16 %v1880_v45, %v1879_v44 }
 0x7df   :  { %6286 = vmatmul.mubr.msk.f32.vlgmr.msra.gmra.mrb[18].mxu1 %vm178_vm2, %v1410_v50 }
 0x7e0   :  { %6295 = vmatprep.mubr.msk.f32.mxu1 %vm6921_vm1, %v6920_v8 }
 0x8aa   :  { %v1246_v51 = vpop.f32.mrb[8].mxu0 }
 0x8ab   :  { %v6272_v52 = vpop.f32.mrb[9].mxu0  ;;  %6280 = vmatprep.mubr.msk.f32.mxu0 %vm178_vm2, %v1246_v51 }
 0x8ae   :  { %v1322_v53 = vpop.f32.mrb[16].mxu1 }
 0x8af   :  { %v6277_v54 = vpop.f32.mrb[17].mxu1  ;;  %6281 = vmatmul.mubr.msk.f32.vlgmr.msra.gmra.mrb[6].mxu0 %vm178_vm2, %v1322_v53 }
 0x8b0   :  { %6289 = vmatpush3.xpose.msk.msra.mxu0 %vm178_vm2, %v1490_v48  ;;  %6290 = vmatprep.mubr.msk.f32.mxu0 %vm6921_vm1, %v6920_v8 }
 0x8b1   :  { %6298 = vmatprep.subr.mxu0 %v6920_v8 }
 0x8b2   :  { %v1483_v56 = vpop.f32.mrb[18].mxu1 }
 0x8b3   :  { %v6287_v57 = vpop.f32.mrb[19].mxu1  ;;  %6291 = vmatmul.mubr.msk.f32.vlgmr.msra.gmra.mrb[10].mxu0 %vm178_vm2, %v1488_v55  ;;  %v1565_v58 = vsel %vm178_vm2, %v1483_v56, -inf }
 0x8b4   :  { %1566 = vmax.xlane.f32.xlu1 %v1565_v58  ;;  %6300 = vmatprep.mubr.msk.f32.mxu0 %vm6921_vm1, %v6920_v8 }
 0x941   :  { %v1567_v59 = vpop.xlane.xlu1 %1566 }
 0x942   :  { %v1571_v60 = vsub.f32 %v1483_v56, %v1567_v59 }
 0x944   :  { %v1573_v61 = vmul.f32 1.442695, %v1571_v60 }
 0x946   :  { %6708 = vpow2.f32 %v1573_v61 }
 0x950   :  { %v6709_v1 = vpop.eup %6708 }
 0x951   :  { %v1577_v2 = vsel %vm178_vm2, %v6709_v1, 0.0 }
 0x986   :  { %v1561_v62 = vpop.f32.mrb[10].mxu0 }
 0x987   :  { %v6292_v63 = vpop.f32.mrb[11].mxu0  ;;  %v1568_v0 = vsel %vm178_vm2, %v1561_v62, -inf }
 0x988   :  { %1569 = vmax.xlane.f32.xlu0 %v1568_v0  ;;  %v5927_v0 = vld [vmem:[#allocation8 + $0x162] ss:$0 sm:$0xff] }
 0x98c   :  { %1578 = vadd.xlane.f32.xlu0 %v1577_v2 }
 0x9a2   :  { %1587 = vrot.lane.b32.xlu0 %v7047_v12, %s6932_s21  ;;  %v173_v12 = vld [vmem:[#allocation8 + $0x38] sm:$0xff] }
 0xa15   :  { %v1570_v3 = vpop.xlane.xlu0 %1569 }
 0xa16   :  { %v1572_v4 = vsub.f32 %v1561_v62, %v1570_v3 }
 0xa18   :  { %v1575_v6 = vmul.f32 1.442695, %v1572_v4  ;;  %v5928_v4 = vld [vmem:[#allocation8 + $0x163] ss:$0 sm:$0xff] }
 0xa19   :  { %v1579_v9 = vpop.xlane.xlu0 %1578 }
 0xa1a   :  { %6710 = vpow2.f32 %v1575_v6 }
 0xa1b   :  { %6712 = vrcp.f32 %v1579_v9 }
 0xa1d   :  { %v1588_v10 = vpop.permute.xlu0 %1587 }
 0xa1e   :  { %6294 = vmatpush3.msra.mxu1 %v1588_v10  ;;  %v77_v10 = vld [vmem:[#allocation7] sm:$0xff] }
 0xa1f   :  { %6591 = vmatprep.subr.bf16.mxu1 %v6590_v42 }
 0xa24   :  { %v6711_v11 = vpop.eup %6710 }
 0xa25   :  { %v6713_v14 = vpop.eup %6712  ;;  %v1580_v15 = vsel %vm178_vm2, %v6711_v11, 0.0 }
 0xa26   :  { %v1585_v16 = vmul.f32 %v6713_v14, %v6709_v1  ;;  %1581 = vadd.xlane.f32.xlu1 %v1580_v15  ;;  %v78_v14 = vld [vmem:[#allocation7 + $0x8] sm:$0xff] }
 0xa28   :  { %6296 = vmatmul.mubr.msk.f32.vlgmr.msra.gmra.mrb[20].mxu1 %vm178_vm2, %v1585_v16 }
 0xa29   :  { %6593 = vmatpush3.bf16.msra.mxu1 %v6590_v42 }
 0xa2a   :  { %6595 = vmatprep.subr.bf16.mxu1 %v6594_v46 }
 0xa2d   :  { %6597 = vmatpush3.bf16.msra.mxu1 %v6594_v46 }
 0xa2e   :  { %6330 = vmatprep.subr.mxu1 %v6920_v8 }
 0xa37   :  { %1663 = vrot.lane.b32.xlu1 %v7051_v13, %s6932_s21  ;;  %v5926_v13 = vld [vmem:[#allocation8 + $0x161] ss:$0 sm:$0xff] }
 0xab3   :  { %v1582_v17 = vpop.xlane.xlu1 %1581 }
 0xab4   :  { %6714 = vrcp.f32 %v1582_v17 }
 0xab7   :  { %v1664_v18 = vpop.permute.xlu1 %1663 }
 0xab8   :  { %6299 = vmatpush3.msra.mxu0 %v1664_v18 }
 0xab9   :  { %6303 = vmatprep.subr.mxu0 %v173_v12 }
 0xabe   :  { %v6715_v19 = vpop.eup %6714 }
 0xabf   :  { %v1586_v20 = vmul.f32 %v6715_v19, %v6711_v11  ;;  %v5929_v19 = vld [vmem:[#allocation8 + $0x164] ss:$0 sm:$0xff] }
 0xac1   :  { %6301 = vmatmul.mubr.msk.f32.vlgmr.msra.gmra.mrb[12].mxu0 %vm178_vm2, %v1586_v20 }
 0xac2   :  { %6304 = vmatpush3.msra.mxu0 %v173_v12  ;;  %v5932_v12 = vld [vmem:[#allocation8 + $0x165] ss:$0 sm:$0xff] }
 0xafb   :  { %v1659_v21 = vpop.f32.mrb[20].mxu1 }
 0xafc   :  { %v6297_v22 = vpop.f32.mrb[21].mxu1  ;;  %6305 = vmatprep.mubr.msk.f32.mxu0 %vm178_vm2, %v1659_v21 }
 0xb94   :  { %v1735_v23 = vpop.f32.mrb[12].mxu0 }
 0xb95   :  { %v6302_v24 = vpop.f32.mrb[13].mxu0  ;;  %6306 = vmatmul.mubr.msk.f32.vlgmr.msra.gmra.mrb[6].mxu0 %vm178_vm2, %v1735_v23 }
 0xc68   :  { %v6307_v25 = vpop.f32.mrb[6].mxu0 }
 0xc69   :  { %v1827_v26 = vadd.f32 %v6307_v25, %v5926_v13  ;;  %v1811_v27 = vpop.f32.mrb[7].mxu0 }
 0xc6a   :  { %v1826_v28 = vadd.f32 %v5926_v13, %v1811_v27 }
 0xc6b   :  { %v1829_v29 = vadd.f32 %v1827_v26, %v7037_v7  ;;  %v6598_v7 = vpack.c.bf16 %v1968_v38, %v1967_v37 }
 0xc6c   :  { %v1828_v30 = vadd.f32 %v1826_v28, %v7033_v5  ;;  %v1969_v5 = vld [vmem:[#allocation8 + $0x70] sm:$0xff] }
 0xc6d   :  { %v1833_v31 = vsel %vm88_vm0, %v1829_v29, 0.0  ;;  %v1840_v34 = vmul.f32 %v1829_v29, %v1829_v29  ;;  %v6602_v43 = vpack.c.bf16 %v1970_v41, %v1969_v5  ;;  %6599 = vmatprep.subr.bf16.mxu0 %v6598_v7 }
 0xc6e   :  { %1834 = vadd.xlane.f32.xlu0 %v1833_v31  ;;  %v1830_v32 = vsel %vm88_vm0, %v1828_v30, 0.0  ;;  %v1839_v33 = vmul.f32 %v1828_v30, %v1828_v30  ;;  %6601 = vmatpush3.bf16.msra.mxu0 %v6598_v7 }
 0xc6f   :  { %1831 = vadd.xlane.f32.xlu1 %v1830_v32  ;;  %v1844_v36 = vsel %vm88_vm0, %v1840_v34, 0.0  ;;  %6603 = vmatprep.subr.bf16.mxu0 %v6602_v43 }
 0xc70   :  { %v1841_v35 = vsel %vm88_vm0, %v1839_v33, 0.0 }
 0xc72   :  { %1842 = vadd.xlane.f32.xlu0 %v1841_v35  ;;  %6605 = vmatpush3.bf16.msra.mxu0 %v6602_v43 }
 0xc73   :  { %1845 = vadd.xlane.f32.xlu1 %v1844_v36  ;;  %6340 = vmatprep.subr.mxu0 %v6920_v8 }
 0xcfb   :  { %v1835_v47 = vpop.xlane.xlu0 %1834 }
 0xcfc   :  { %v1832_v48 = vpop.xlane.xlu1 %1831  ;;  %v1838_v49 = vmul.f32 0.03125, %v1835_v47 }
 0xcfd   :  { %v1837_v50 = vmul.f32 0.03125, %v1832_v48 }
 0xcfe   :  { %v1850_v55 = vmul.f32 %v1838_v49, %v1838_v49  ;;  %v1854_v63 = vsub.f32 %v1829_v29, %v1838_v49 }
 0xcff   :  { %v1849_v51 = vmul.f32 %v1837_v50, %v1837_v50  ;;  %v1843_v52 = vpop.xlane.xlu0 %1842  ;;  %v1853_v61 = vsub.f32 %v1828_v30, %v1837_v50 }
 0xd00   :  { %v1847_v53 = vmul.f32 0.03125, %v1843_v52  ;;  %v1846_v54 = vpop.xlane.xlu1 %1845 }
 0xd01   :  { %v1848_v56 = vmul.f32 0.03125, %v1846_v54 }
 0xd02   :  { %v1851_v57 = vsub.f32 %v1847_v53, %v1849_v51 }
 0xd03   :  { %v1852_v58 = vsub.f32 %v1848_v56, %v1850_v55 }
 0xd04   :  { %v1855_v59 = vadd.f32 1e-05, %v1851_v57 }
 0xd05   :  { %v1856_v60 = vadd.f32 1e-05, %v1852_v58 }
 0xd06   :  { %6716 = vrsqrt.f32 %v1855_v59 }
 0xd07   :  { %6718 = vrsqrt.f32 %v1856_v60 }
 0xd10   :  { %v6717_v62 = vpop.eup %6716 }
 0xd11   :  { %v6719_v1 = vpop.eup %6718  ;;  %v1859_v2 = vmul.f32 %v6717_v62, %v1853_v61 }
 0xd12   :  { %v1860_v3 = vmul.f32 %v6719_v1, %v1854_v63 }
 0xd13   :  { %v1866_v6 = vmul.f32 %v5927_v0, %v1859_v2 }
 0xd14   :  { %v1867_v9 = vmul.f32 %v5927_v0, %v1860_v3 }
 0xd15   :  { %v7195_v11 = vadd.f32 %v5928_v4, %v1866_v6 }
 0xd16   :  { %v7197_v15 = vadd.f32 %v5928_v4, %v1867_v9 }
 0xd17   :  { %6327 = vmatprep.mubr.msk.f32.mxu0 %vm88_vm0, %v7195_v11  ;;  %v1875_v16 = vadd.f32 %v7195_v11, %v77_v10 }
 0xd18   :  { %6328 = vmatmul.mubr.msk.f32.vlgmr.msra.gmra.mrb[14].mxu0 %vm88_vm0, %v7197_v15  ;;  %v1876_v17 = vadd.f32 %v7197_v15, %v78_v14 }
 0xd19   :  { %6316 = vmatprep.mubr.msk.f32.mxu1 %vm88_vm0, %v1875_v16  ;;  %6342 = vmatprep.mubr.msk.f32.mxu0 %vm6921_vm1, %v6920_v8 }
 0xd1a   :  { %6317 = vmatmul.mubr.msk.f32.vlgmr.msra.gmra.mrb[22].mxu1 %vm88_vm0, %v1876_v17 }
 0xd1b   :  { %6332 = vmatprep.mubr.msk.f32.mxu1 %vm6921_vm1, %v6920_v8 }
 0xdeb   :  { %v6329_v18 = vpop.f32.mrb[14].mxu0 }
 0xdec   :  { %v7211_v20 = vadd.f32 %v6329_v18, %v5932_v12  ;;  %v2048_v21 = vpop.f32.mrb[15].mxu0 }
 0xded   :  { %v7213_v22 = vadd.f32 %v5932_v12, %v2048_v21  ;;  %v6318_v23 = vpop.f32.mrb[22].mxu1 }
 0xdee   :  { %v7215_v24 = vadd.f32 %v6318_v23, %v5929_v19  ;;  %v1958_v13 = vpop.f32.mrb[23].mxu1 }
 0xdef   :  { %v7217_v25 = vadd.f32 %v5929_v19, %v1958_v13  ;;  %6341 = vmatpush3.msra.mxu0 %v7213_v22 }
 0xdf0   :  { %2140 = vrot.lane.b32.xlu1 %v7215_v24, %s6922_s3  ;;  %6350 = vmatprep.subr.mxu0 %v6920_v8 }
 0xdf1   :  { %2063 = vrot.lane.b32.xlu0 %v7217_v25, %s6922_s3 }
 0xe62   :  { %v2141_v27 = vpop.permute.xlu1 %2140 }
 0xe63   :  { %v2064_v26 = vpop.permute.xlu0 %2063 }
 0xe64   :  { %6331 = vmatpush3.xpose.msk.msra.mxu1 %vm178_vm2, %v2064_v26 }
 0xe65   :  { %6335 = vmatprep.subr.mxu1 %v6920_v8 }
 0xe67   :  { %6333 = vmatmul.mubr.msk.f32.vlgmr.msra.gmra.mrb[24].mxu1 %vm178_vm2, %v7217_v25 }
 0xe68   :  { %6336 = vmatpush3.xpose.msk.msra.mxu1 %vm178_vm2, %v2141_v27  ;;  %6337 = vmatprep.mubr.msk.f32.mxu1 %vm6921_vm1, %v6920_v8 }
 0xe69   :  { %6345 = vmatprep.subr.mxu1 %v6920_v8 }
 0xe6b   :  { %6338 = vmatmul.mubr.msk.f32.vlgmr.msra.gmra.mrb[26].mxu1 %vm178_vm2, %v7215_v24 }
 0xe6c   :  { %6346 = vmatpush3.msra.mxu1 %v7211_v20  ;;  %6347 = vmatprep.mubr.msk.f32.mxu1 %vm6921_vm1, %v6920_v8 }
 0xe6d   :  { %6355 = vmatprep.subr.mxu1 %v6920_v8 }
 0xf3a   :  { %v2135_v28 = vpop.f32.mrb[24].mxu1 }
 0xf3b   :  { %v6334_v29 = vpop.f32.mrb[25].mxu1  ;;  %v2216_v33 = vsel %vm178_vm2, %v2135_v28, -inf }
 0xf3e   :  { %v2212_v30 = vpop.f32.mrb[26].mxu1 }
 0xf3f   :  { %v6339_v31 = vpop.f32.mrb[27].mxu1  ;;  %v2219_v32 = vsel %vm178_vm2, %v2212_v30, -inf }
 0xf40   :  { %2220 = vmax.xlane.f32.xlu1 %v2219_v32 }
 0xf51   :  { %2462 = vrot.lane.b32.xlu1 %v7215_v24, %s6924_s1 }
 0xf75   :  { %2217 = vmax.xlane.f32.xlu1 %v2216_v33 }
 0xf86   :  { %2384 = vrot.lane.b32.xlu1 %v7217_v25, %s6924_s1 }
 0xfcd   :  { %v2221_v34 = vpop.xlane.xlu1 %2220 }
 0xfce   :  { %v2223_v35 = vsub.f32 %v2212_v30, %v2221_v34 }
 0xfd0   :  { %v2226_v36 = vmul.f32 1.442695, %v2223_v35  ;;  %v2058_v35 = vld [vmem:[#allocation8 + $0x88] sm:$0xff] }
 0xfd1   :  { %v2463_v39 = vpop.permute.xlu1 %2462 }
 0xfd2   :  { %6720 = vpow2.f32 %v2226_v36  ;;  %v2057_v36 = vld [vmem:[#allocation8 + $0x80] sm:$0xff] }
 0xfdc   :  { %v6721_v37 = vpop.eup %6720 }
 0xfdd   :  { %v2231_v38 = vsel %vm178_vm2, %v6721_v37, 0.0 }
 0xfde   :  { %2232 = vadd.xlane.f32.xlu0 %v2231_v38 }
 0xff4   :  { %2464 = vrot.lane.b32.xlu0 %v7215_v24, %s6925_s13 }
0x1002   :  { %v2218_v7 = vpop.xlane.xlu1 %2217 }
0x1003   :  { %v2222_v40 = vsub.f32 %v2135_v28, %v2218_v7 }
0x1005   :  { %v2224_v5 = vmul.f32 1.442695, %v2222_v40 }
0x1006   :  { %v2385_v51 = vpop.permute.xlu1 %2384 }
0x1007   :  { %6722 = vpow2.f32 %v2224_v5 }
0x1011   :  { %v6723_v41 = vpop.eup %6722 }
0x1012   :  { %v2228_v42 = vsel %vm178_vm2, %v6723_v41, 0.0 }
0x1013   :  { %2229 = vadd.xlane.f32.xlu0 %v2228_v42 }
0x1029   :  { %2386 = vrot.lane.b32.xlu0 %v7217_v25, %s6925_s13 }
0x106b   :  { %v2233_v43 = vpop.xlane.xlu0 %2232 }
0x106c   :  { %6724 = vrcp.f32 %v2233_v43 }
0x106f   :  { %v2465_v46 = vpop.permute.xlu0 %2464 }
0x1076   :  { %v6725_v44 = vpop.eup %6724 }
0x1077   :  { %v2237_v45 = vmul.f32 %v6725_v44, %v6721_v37 }
0x1079   :  { %6348 = vmatmul.mubr.msk.f32.vlgmr.msra.gmra.mrb[28].mxu1 %vm178_vm2, %v2237_v45 }
0x107a   :  { %6356 = vmatpush3.xpose.msk.msra.mxu1 %vm178_vm2, %v2465_v46  ;;  %6357 = vmatprep.mubr.msk.f32.mxu1 %vm6921_vm1, %v6920_v8 }
0x107b   :  { %6365 = vmatprep.subr.mxu1 %v6920_v8 }
0x107d   :  { %6358 = vmatmul.mubr.msk.f32.vlgmr.msra.gmra.mrb[30].mxu1 %vm178_vm2, %v2463_v39 }
0x107e   :  { %6367 = vmatprep.mubr.msk.f32.mxu1 %vm6921_vm1, %v6920_v8 }
0x10a0   :  { %v2230_v47 = vpop.xlane.xlu0 %2229 }
0x10a1   :  { %6726 = vrcp.f32 %v2230_v47  ;;  %v2059_v47 = vld [vmem:[#allocation8 + $0x90] sm:$0xff] }
0x10a4   :  { %v2387_v50 = vpop.permute.xlu0 %2386 }
0x10ab   :  { %v6727_v48 = vpop.eup %6726 }
0x10ac   :  { %v2236_v49 = vmul.f32 %v6727_v48, %v6723_v41 }
0x10ae   :  { %6343 = vmatmul.mubr.msk.f32.vlgmr.msra.gmra.mrb[16].mxu0 %vm178_vm2, %v2236_v49 }
0x10af   :  { %6351 = vmatpush3.xpose.msk.msra.mxu0 %vm178_vm2, %v2387_v50  ;;  %6352 = vmatprep.mubr.msk.f32.mxu0 %vm6921_vm1, %v6920_v8 }
0x10b0   :  { %6360 = vmatprep.subr.mxu0 %v6920_v8 }
0x10b2   :  { %6353 = vmatmul.mubr.msk.f32.vlgmr.msra.gmra.mrb[18].mxu0 %vm178_vm2, %v2385_v51 }
0x10b3   :  { %6362 = vmatprep.mubr.msk.f32.mxu0 %vm6921_vm1, %v6920_v8 }
0x114c   :  { %v7267_v52 = vpop.f32.mrb[28].mxu1 }
0x114d   :  { %v6349_v53 = vpop.f32.mrb[29].mxu1 }
0x1150   :  { %v2536_v54 = vpop.f32.mrb[30].mxu1 }
0x1151   :  { %v6359_v55 = vpop.f32.mrb[31].mxu1  ;;  %v2543_v56 = vsel %vm178_vm2, %v2536_v54, -inf }
0x1152   :  { %2544 = vmax.xlane.f32.xlu1 %v2543_v56 }
0x1163   :  { %2880 = vrot.lane.b32.xlu1 %v7217_v25, %s6926_s14 }
0x1167   :  { %2878 = vrot.lane.b32.xlu1 %v7217_v25, %s6928_s16 }
0x116b   :  { %2956 = vrot.lane.b32.xlu1 %v7215_v24, %s6928_s16 }
0x1181   :  { %v7276_v57 = vpop.f32.mrb[16].mxu0 }
0x1182   :  { %v6344_v58 = vpop.f32.mrb[17].mxu0 }
0x1185   :  { %v2458_v59 = vpop.f32.mrb[18].mxu0 }
0x1186   :  { %v6354_v60 = vpop.f32.mrb[19].mxu0  ;;  %v2540_v2 = vsel %vm178_vm2, %v2458_v59, -inf }
0x11df   :  { %v2545_v61 = vpop.xlane.xlu1 %2544 }
0x11e0   :  { %v2547_v62 = vsub.f32 %v2536_v54, %v2545_v61 }
0x11e2   :  { %v2550_v63 = vmul.f32 1.442695, %v2547_v62 }
0x11e3   :  { %v2881_v6 = vpop.permute.xlu1 %2880 }
0x11e4   :  { %6728 = vpow2.f32 %v2550_v63 }
0x11e7   :  { %v2879_v14 = vpop.permute.xlu1 %2878 }
0x11eb   :  { %v2957_v17 = vpop.permute.xlu1 %2956 }
0x11ee   :  { %v6729_v0 = vpop.eup %6728 }
0x11ef   :  { %v2555_v1 = vsel %vm178_vm2, %v6729_v0, 0.0 }
0x11f0   :  { %2556 = vadd.xlane.f32.xlu0 %v2555_v1 }
0x1206   :  { %2640 = vrot.lane.b32.xlu0 %v7211_v20, %s6924_s1 }
0x120a   :  { %2958 = vrot.lane.b32.xlu0 %v7215_v24, %s6926_s14 }
0x1229   :  { %2541 = vmax.xlane.f32.xlu0 %v2540_v2 }
0x123f   :  { %2563 = vrot.lane.b32.xlu0 %v7213_v22, %s6924_s1 }
0x1243   :  { %3056 = vrot.lane.b32.xlu0 %v7213_v22, %s6928_s16 }
0x1247   :  { %3293 = vrot.lane.b32.xlu0 %v7217_v25, %s6930_s19 }
0x124b   :  { %3371 = vrot.lane.b32.xlu0 %v7215_v24, %s6930_s19 }
0x124f   :  { %3291 = vrot.lane.b32.xlu0 %v7217_v25, %s6931_s20 }
0x1253   :  { %3369 = vrot.lane.b32.xlu0 %v7215_v24, %s6931_s20 }
0x127d   :  { %v2557_v3 = vpop.xlane.xlu0 %2556 }
0x127e   :  { %6730 = vrcp.f32 %v2557_v3 }
0x1281   :  { %v2641_v4 = vpop.permute.xlu0 %2640 }
0x1282   :  { %6366 = vmatpush3.msra.mxu1 %v2641_v4 }
0x1283   :  { %6380 = vmatprep.subr.mxu1 %v6920_v8 }
0x1285   :  { %v2959_v16 = vpop.permute.xlu0 %2958 }
0x1288   :  { %v6731_v9 = vpop.eup %6730 }
0x1289   :  { %v2561_v10 = vmul.f32 %v6731_v9, %v6729_v0 }
0x128b   :  { %6368 = vmatmul.mubr.msk.f32.vlgmr.msra.gmra.mrb[32].mxu1 %vm178_vm2, %v2561_v10 }
0x128c   :  { %6381 = vmatpush3.xpose.msk.msra.mxu1 %vm178_vm2, %v2881_v6  ;;  %6382 = vmatprep.mubr.msk.f32.mxu1 %vm6921_vm1, %v6920_v8 }
0x128d   :  { %6385 = vmatprep.subr.mxu1 %v6920_v8 }
0x128f   :  { %6383 = vmatmul.mubr.msk.f32.vlgmr.msra.gmra.mrb[34].mxu1 %vm178_vm2, %v2879_v14 }
0x1290   :  { %6386 = vmatpush3.xpose.msk.msra.mxu1 %vm178_vm2, %v2959_v16  ;;  %6387 = vmatprep.mubr.msk.f32.mxu1 %vm6921_vm1, %v6920_v8 }
0x1291   :  { %6395 = vmatprep.subr.mxu1 %v6920_v8 }
0x1293   :  { %6388 = vmatmul.mubr.msk.f32.vlgmr.msra.gmra.mrb[36].mxu1 %vm178_vm2, %v2957_v17 }
0x1294   :  { %6397 = vmatprep.mubr.msk.f32.mxu1 %vm6921_vm1, %v6920_v8 }
0x12b6   :  { %v2542_v12 = vpop.xlane.xlu0 %2541 }
0x12b7   :  { %v2546_v18 = vsub.f32 %v2458_v59, %v2542_v12 }
0x12b9   :  { %v2548_v19 = vmul.f32 1.442695, %v2546_v18 }
0x12ba   :  { %v2564_v21 = vpop.permute.xlu0 %2563 }
0x12bb   :  { %6732 = vpow2.f32 %v2548_v19  ;;  %6361 = vmatpush3.msra.mxu0 %v2564_v21 }
0x12bc   :  { %6370 = vmatprep.subr.mxu0 %v2058_v35 }
0x12be   :  { %v3057_v48 = vpop.permute.xlu0 %3056 }
0x12c2   :  { %v3294_v53 = vpop.permute.xlu0 %3293 }
0x12c5   :  { %v6733_v23 = vpop.eup %6732 }
0x12c6   :  { %v2552_v24 = vsel %vm178_vm2, %v6733_v23, 0.0 }
0x12c7   :  { %2553 = vadd.xlane.f32.xlu1 %v2552_v24 }
0x1354   :  { %v2554_v13 = vpop.xlane.xlu1 %2553 }
0x1355   :  { %6734 = vrcp.f32 %v2554_v13 }
0x135e   :  { %v2712_v25 = vpop.f32.mrb[32].mxu1 }
0x135f   :  { %v6735_v26 = vpop.eup %6734  ;;  %v6369_v27 = vpop.f32.mrb[33].mxu1 }
0x1360   :  { %v2560_v28 = vmul.f32 %v6735_v26, %v6733_v23  ;;  %v2060_v27 = vld [vmem:[#allocation8 + $0x98] sm:$0xff] }
0x1362   :  { %6363 = vmatmul.mubr.msk.f32.vlgmr.msra.gmra.mrb[20].mxu0 %vm178_vm2, %v2560_v28  ;;  %v2952_v29 = vpop.f32.mrb[34].mxu1 }
0x1363   :  { %v6384_v30 = vpop.f32.mrb[35].mxu1  ;;  %v3034_v31 = vsel %vm178_vm2, %v2952_v29, -inf  ;;  %6371 = vmatpush3.msra.mxu0 %v2058_v35 }
0x1364   :  { %3035 = vmax.xlane.f32.xlu1 %v3034_v31  ;;  %6375 = vmatprep.subr.mxu0 %v2057_v36 }
0x1366   :  { %v3030_v32 = vpop.f32.mrb[36].mxu1 }
0x1367   :  { %v6389_v33 = vpop.f32.mrb[37].mxu1  ;;  %v3037_v34 = vsel %vm178_vm2, %v3030_v32, -inf }
0x1368   :  { %3038 = vmax.xlane.f32.xlu1 %v3037_v34 }
0x13f1   :  { %v3036_v37 = vpop.xlane.xlu1 %3035 }
0x13f2   :  { %v3040_v38 = vsub.f32 %v2952_v29, %v3036_v37 }
0x13f4   :  { %v3042_v39 = vmul.f32 1.442695, %v3040_v38 }
0x13f5   :  { %v3039_v7 = vpop.xlane.xlu1 %3038 }
0x13f6   :  { %6736 = vpow2.f32 %v3042_v39  ;;  %v3041_v40 = vsub.f32 %v3030_v32, %v3039_v7 }
0x13f8   :  { %v3044_v5 = vmul.f32 1.442695, %v3041_v40 }
0x13fa   :  { %6738 = vpow2.f32 %v3044_v5 }
0x1400   :  { %v6737_v41 = vpop.eup %6736 }
0x1401   :  { %v3046_v42 = vsel %vm178_vm2, %v6737_v41, 0.0 }
0x1402   :  { %3047 = vadd.xlane.f32.xlu1 %v3046_v42 }
0x1404   :  { %v6739_v43 = vpop.eup %6738 }
0x1405   :  { %v3049_v44 = vsel %vm178_vm2, %v6739_v43, 0.0 }
0x1406   :  { %3050 = vadd.xlane.f32.xlu1 %v3049_v44 }
0x1417   :  { %3132 = vrot.lane.b32.xlu1 %v7211_v20, %s6928_s16 }
0x1435   :  { %v2635_v45 = vpop.f32.mrb[20].mxu0 }
0x1436   :  { %v6364_v46 = vpop.f32.mrb[21].mxu0  ;;  %6372 = vmatprep.mubr.msk.f32.mxu0 %vm178_vm2, %v2635_v45  ;;  %v3846_v45 = vld [vmem:[#allocation8 + $0xc0] sm:$0xff] }
0x1437   :  { %6373 = vmatmul.mubr.msk.f32.vlgmr.msra.gmra.mrb[22].mxu0 %vm178_vm2, %v2712_v25  ;;  %v3847_v46 = vld [vmem:[#allocation8 + $0xc8] sm:$0xff] }
0x1438   :  { %6377 = vmatprep.mubr.msk.f32.mxu0 %vm178_vm2, %v7276_v57  ;;  %6376 = vmatpush3.msra.mxu0 %v2057_v36 }
0x1439   :  { %6390 = vmatprep.subr.mxu0 %v6920_v8 }
0x143f   :  { %6378 = vmatmul.mubr.msk.f32.vlgmr.msra.gmra.mrb[22].mxu0 %vm178_vm2, %v7267_v52  ;;  %v3372_v52 = vpop.permute.xlu0 %3371 }
0x1440   :  { %6391 = vmatpush3.msra.mxu0 %v3057_v48  ;;  %6392 = vmatprep.mubr.msk.f32.mxu0 %vm6921_vm1, %v6920_v8  ;;  %v3757_v48 = vld [vmem:[#allocation8 + $0xa8] sm:$0xff] }
0x1441   :  { %6400 = vmatprep.subr.mxu0 %v2059_v47 }
0x1443   :  { %v3292_v58 = vpop.permute.xlu0 %3291 }
0x1447   :  { %v3370_v63 = vpop.permute.xlu0 %3369 }
0x148f   :  { %v3048_v49 = vpop.xlane.xlu1 %3047 }
0x1490   :  { %6740 = vrcp.f32 %v3048_v49  ;;  %v3849_v49 = vld [vmem:[#allocation8 + $0xd8] sm:$0xff] }
0x1493   :  { %v3051_v50 = vpop.xlane.xlu1 %3050 }
0x1494   :  { %6742 = vrcp.f32 %v3051_v50 }
0x1497   :  { %v3133_v51 = vpop.permute.xlu1 %3132 }
0x1498   :  { %6396 = vmatpush3.msra.mxu1 %v3133_v51 }
0x1499   :  { %6405 = vmatprep.subr.mxu1 %v6920_v8 }
0x149a   :  { %v6741_v54 = vpop.eup %6740 }
0x149b   :  { %v3054_v55 = vmul.f32 %v6741_v54, %v6737_v41  ;;  %v3758_v54 = vld [vmem:[#allocation8 + $0xb0] sm:$0xff] }
0x149d   :  { %6393 = vmatmul.mubr.msk.f32.vlgmr.msra.gmra.mrb[24].mxu0 %vm178_vm2, %v3054_v55  ;;  %v3759_v55 = vld [vmem:[#allocation8 + $0xb8] sm:$0xff] }
0x149e   :  { %v6743_v56 = vpop.eup %6742  ;;  %6401 = vmatpush3.msra.mxu0 %v2059_v47  ;;  %v3756_v47 = vld [vmem:[#allocation8 + $0xa0] sm:$0xff] }
0x149f   :  { %v3055_v57 = vmul.f32 %v6743_v56, %v6739_v43  ;;  %6410 = vmatprep.subr.mxu0 %v6920_v8  ;;  %v6606_v50 = vpack.c.bf16 %v3757_v48, %v3756_v47  ;;  %v6610_v56 = vpack.c.bf16 %v3759_v55, %v3758_v54 }
0x14a1   :  { %6398 = vmatmul.mubr.msk.f32.vlgmr.msra.gmra.mrb[38].mxu1 %vm178_vm2, %v3055_v57 }
0x14a2   :  { %6406 = vmatpush3.xpose.msk.msra.mxu1 %vm178_vm2, %v3294_v53  ;;  %6407 = vmatprep.mubr.msk.f32.mxu1 %vm6921_vm1, %v6920_v8  ;;  %v75_v53 = vld [vmem:[#allocation5] sm:$0xff] }
0x14a3   :  { %6415 = vmatprep.subr.mxu1 %v6920_v8 }
0x14a5   :  { %6408 = vmatmul.mubr.msk.f32.vlgmr.msra.gmra.mrb[40].mxu1 %vm178_vm2, %v3292_v58 }
0x14a6   :  { %6417 = vmatprep.mubr.msk.f32.mxu1 %vm6921_vm1, %v6920_v8 }
0x1570   :  { %v3128_v59 = vpop.f32.mrb[24].mxu0 }
0x1571   :  { %v6394_v60 = vpop.f32.mrb[25].mxu0  ;;  %6402 = vmatprep.mubr.msk.f32.mxu0 %vm178_vm2, %v3128_v59 }
0x1574   :  { %v3204_v61 = vpop.f32.mrb[38].mxu1 }
0x1575   :  { %v6399_v62 = vpop.f32.mrb[39].mxu1  ;;  %6403 = vmatmul.mubr.msk.f32.vlgmr.msra.gmra.mrb[22].mxu0 %vm178_vm2, %v3204_v61 }
0x1576   :  { %6411 = vmatpush3.xpose.msk.msra.mxu0 %vm178_vm2, %v3372_v52  ;;  %6412 = vmatprep.mubr.msk.f32.mxu0 %vm6921_vm1, %v6920_v8  ;;  %v76_v52 = vld [vmem:[#allocation5 + $0x8] sm:$0xff] }
0x1577   :  { %6420 = vmatprep.subr.mxu0 %v6920_v8 }
0x1578   :  { %v3365_v0 = vpop.f32.mrb[40].mxu1 }
0x1579   :  { %v6409_v1 = vpop.f32.mrb[41].mxu1  ;;  %6413 = vmatmul.mubr.msk.f32.vlgmr.msra.gmra.mrb[26].mxu0 %vm178_vm2, %v3370_v63  ;;  %v3447_v2 = vsel %vm178_vm2, %v3365_v0, -inf }
0x157a   :  { %3448 = vmax.xlane.f32.xlu1 %v3447_v2  ;;  %6422 = vmatprep.mubr.msk.f32.mxu0 %vm6921_vm1, %v6920_v8 }
0x1607   :  { %v3449_v3 = vpop.xlane.xlu1 %3448 }
0x1608   :  { %v3453_v4 = vsub.f32 %v3365_v0, %v3449_v3 }
0x160a   :  { %v3455_v6 = vmul.f32 1.442695, %v3453_v4 }
0x160c   :  { %6744 = vpow2.f32 %v3455_v6 }
0x1616   :  { %v6745_v16 = vpop.eup %6744 }
0x1617   :  { %v3459_v17 = vsel %vm178_vm2, %v6745_v16, 0.0 }
0x164c   :  { %v3443_v9 = vpop.f32.mrb[26].mxu0 }
0x164d   :  { %v6414_v10 = vpop.f32.mrb[27].mxu0  ;;  %v3450_v14 = vsel %vm178_vm2, %v3443_v9, -inf }
0x164e   :  { %3451 = vmax.xlane.f32.xlu0 %v3450_v14 }
0x1652   :  { %3460 = vadd.xlane.f32.xlu0 %v3459_v17  ;;  %v5968_v17 = vld [vmem:[#allocation8 + $0x167] ss:$0 sm:$0xff] }
0x1668   :  { %3469 = vrot.lane.b32.xlu0 %v7213_v22, %s6931_s20 }
0x16db   :  { %v3452_v12 = vpop.xlane.xlu0 %3451 }
0x16dc   :  { %v3454_v18 = vsub.f32 %v3443_v9, %v3452_v12 }
0x16de   :  { %v3457_v19 = vmul.f32 1.442695, %v3454_v18 }
0x16df   :  { %v3461_v21 = vpop.xlane.xlu0 %3460 }
0x16e0   :  { %6746 = vpow2.f32 %v3457_v19 }
0x16e1   :  { %6748 = vrcp.f32 %v3461_v21  ;;  %v5969_v21 = vld [vmem:[#allocation8 + $0x168] ss:$0 sm:$0xff] }
0x16e3   :  { %v3470_v23 = vpop.permute.xlu0 %3469 }
0x16e4   :  { %6416 = vmatpush3.msra.mxu1 %v3470_v23 }
0x16e5   :  { %6607 = vmatprep.subr.bf16.mxu1 %v6606_v50 }
0x16ea   :  { %v6747_v24 = vpop.eup %6746 }
0x16eb   :  { %v6749_v13 = vpop.eup %6748  ;;  %v3462_v25 = vsel %vm178_vm2, %v6747_v24, 0.0 }
0x16ec   :  { %v3467_v26 = vmul.f32 %v6749_v13, %v6745_v16  ;;  %3463 = vadd.xlane.f32.xlu1 %v3462_v25 }
0x16ee   :  { %6418 = vmatmul.mubr.msk.f32.vlgmr.msra.gmra.mrb[42].mxu1 %vm178_vm2, %v3467_v26  ;;  %v5973_v26 = vld [vmem:[#allocation8 + $0x16a] ss:$0 sm:$0xff] }
0x16ef   :  { %6609 = vmatpush3.bf16.msra.mxu1 %v6606_v50 }
0x16f0   :  { %6611 = vmatprep.subr.bf16.mxu1 %v6610_v56 }
0x16f3   :  { %6613 = vmatpush3.bf16.msra.mxu1 %v6610_v56 }
0x16f4   :  { %6452 = vmatprep.subr.mxu1 %v6920_v8 }
0x16fd   :  { %3545 = vrot.lane.b32.xlu1 %v7211_v20, %s6931_s20  ;;  %v5967_v20 = vld [vmem:[#allocation8 + $0x166] ss:$0 sm:$0xff] }
0x1779   :  { %v3464_v22 = vpop.xlane.xlu1 %3463 }
0x177a   :  { %6750 = vrcp.f32 %v3464_v22 }
0x177d   :  { %v3546_v28 = vpop.permute.xlu1 %3545 }
0x177e   :  { %6421 = vmatpush3.msra.mxu0 %v3546_v28 }
0x177f   :  { %6425 = vmatprep.subr.mxu0 %v2060_v27 }
0x1784   :  { %v6751_v29 = vpop.eup %6750 }
0x1785   :  { %v3468_v30 = vmul.f32 %v6751_v29, %v6747_v24 }
0x1787   :  { %6423 = vmatmul.mubr.msk.f32.vlgmr.msra.gmra.mrb[28].mxu0 %vm178_vm2, %v3468_v30  ;;  %v5970_v30 = vld [vmem:[#allocation8 + $0x169] ss:$0 sm:$0xff] }
0x1788   :  { %6426 = vmatpush3.msra.mxu0 %v2060_v27 }
0x17c1   :  { %v3541_v31 = vpop.f32.mrb[42].mxu1 }
0x17c2   :  { %v6419_v32 = vpop.f32.mrb[43].mxu1  ;;  %6427 = vmatprep.mubr.msk.f32.mxu0 %vm178_vm2, %v3541_v31 }
0x185a   :  { %v3617_v33 = vpop.f32.mrb[28].mxu0 }
0x185b   :  { %v6424_v34 = vpop.f32.mrb[29].mxu0  ;;  %6428 = vmatmul.mubr.msk.f32.vlgmr.msra.gmra.mrb[22].mxu0 %vm178_vm2, %v3617_v33 }
0x185c   :  { %6449 = vmatprep.mubr.msk.f32.mxu0 %vm88_vm0, %v75_v53 }
0x192e   :  { %v6429_v35 = vpop.f32.mrb[22].mxu0 }
0x192f   :  { %v3709_v36 = vadd.f32 %v6429_v35, %v5967_v20  ;;  %v3693_v37 = vpop.f32.mrb[23].mxu0 }
0x1930   :  { %v3708_v38 = vadd.f32 %v5967_v20, %v3693_v37 }
0x1931   :  { %v3711_v39 = vadd.f32 %v3709_v36, %v7197_v15  ;;  %v6614_v15 = vpack.c.bf16 %v3847_v46, %v3846_v45 }
0x1932   :  { %v3710_v7 = vadd.f32 %v3708_v38, %v7195_v11  ;;  %v3848_v11 = vld [vmem:[#allocation8 + $0xd0] sm:$0xff] }
0x1933   :  { %v3715_v40 = vsel %vm88_vm0, %v3711_v39, 0.0  ;;  %v3721_v42 = vmul.f32 %v3711_v39, %v3711_v39  ;;  %v6618_v51 = vpack.c.bf16 %v3849_v49, %v3848_v11  ;;  %6615 = vmatprep.subr.bf16.mxu0 %v6614_v15 }
0x1934   :  { %3716 = vadd.xlane.f32.xlu0 %v3715_v40  ;;  %v3712_v5 = vsel %vm88_vm0, %v3710_v7, 0.0  ;;  %v3720_v41 = vmul.f32 %v3710_v7, %v3710_v7  ;;  %6617 = vmatpush3.bf16.msra.mxu0 %v6614_v15 }
0x1935   :  { %3713 = vadd.xlane.f32.xlu1 %v3712_v5  ;;  %v3725_v44 = vsel %vm88_vm0, %v3721_v42, 0.0  ;;  %6619 = vmatprep.subr.bf16.mxu0 %v6618_v51 }
0x1936   :  { %v3722_v43 = vsel %vm88_vm0, %v3720_v41, 0.0 }
0x1938   :  { %3723 = vadd.xlane.f32.xlu0 %v3722_v43  ;;  %6621 = vmatpush3.bf16.msra.mxu0 %v6618_v51 }
0x1939   :  { %3726 = vadd.xlane.f32.xlu1 %v3725_v44  ;;  %6462 = vmatprep.subr.mxu0 %v6920_v8 }
0x193b   :  { %6450 = vmatmul.mubr.msk.f32.vlgmr.msra.gmra.mrb[30].mxu0 %vm88_vm0, %v76_v52 }
0x193c   :  { %6464 = vmatprep.mubr.msk.f32.mxu0 %vm6921_vm1, %v6920_v8 }
0x19c1   :  { %v3717_v57 = vpop.xlane.xlu0 %3716 }
0x19c2   :  { %v3714_v58 = vpop.xlane.xlu1 %3713  ;;  %v3719_v59 = vmul.f32 0.03125, %v3717_v57 }
0x19c3   :  { %v3718_v60 = vmul.f32 0.03125, %v3714_v58 }
0x19c4   :  { %v3731_v1 = vmul.f32 %v3719_v59, %v3719_v59  ;;  %v3735_v16 = vsub.f32 %v3711_v39, %v3719_v59 }
0x19c5   :  { %v3730_v61 = vmul.f32 %v3718_v60, %v3718_v60  ;;  %v3724_v62 = vpop.xlane.xlu0 %3723  ;;  %v3734_v10 = vsub.f32 %v3710_v7, %v3718_v60 }
0x19c6   :  { %v3728_v63 = vmul.f32 0.03125, %v3724_v62  ;;  %v3727_v0 = vpop.xlane.xlu1 %3726 }
0x19c7   :  { %v3729_v2 = vmul.f32 0.03125, %v3727_v0 }
0x19c8   :  { %v3732_v3 = vsub.f32 %v3728_v63, %v3730_v61 }
0x19c9   :  { %v3733_v4 = vsub.f32 %v3729_v2, %v3731_v1 }
0x19ca   :  { %v3736_v6 = vadd.f32 1e-05, %v3732_v3 }
0x19cb   :  { %v3737_v9 = vadd.f32 1e-05, %v3733_v4 }
0x19cc   :  { %6752 = vrsqrt.f32 %v3736_v6 }
0x19cd   :  { %6754 = vrsqrt.f32 %v3737_v9 }
0x19d6   :  { %v6753_v14 = vpop.eup %6752 }
0x19d7   :  { %v6755_v12 = vpop.eup %6754  ;;  %v3740_v18 = vmul.f32 %v6753_v14, %v3734_v10 }
0x19d8   :  { %v3741_v19 = vmul.f32 %v6755_v12, %v3735_v16 }
0x19d9   :  { %v3747_v23 = vmul.f32 %v5968_v17, %v3740_v18 }
0x19da   :  { %v3748_v24 = vmul.f32 %v5968_v17, %v3741_v19 }
0x19db   :  { %v7371_v13 = vadd.f32 %v5969_v21, %v3747_v23 }
0x19dc   :  { %v7373_v25 = vadd.f32 %v5969_v21, %v3748_v24 }
0x19dd   :  { %6438 = vmatprep.mubr.msk.f32.mxu1 %vm88_vm0, %v7371_v13 }
0x19de   :  { %6439 = vmatmul.mubr.msk.f32.vlgmr.msra.gmra.mrb[44].mxu1 %vm88_vm0, %v7373_v25 }
0x19df   :  { %6454 = vmatprep.mubr.msk.f32.mxu1 %vm6921_vm1, %v6920_v8 }
0x1a0e   :  { %v6451_v22 = vpop.f32.mrb[30].mxu0 }
0x1a0f   :  { %v7381_v27 = vadd.f32 %v6451_v22, %v5973_v26  ;;  %v3927_v28 = vpop.f32.mrb[31].mxu0 }
0x1a10   :  { %v7383_v29 = vadd.f32 %v5973_v26, %v3927_v28 }
0x1a11   :  { %4347 = vrot.lane.b32.xlu1 %v7381_v27, %s6924_s1 }
0x1a12   :  { %6453 = vmatpush3.xpose.msk.msra.mxu1 %vm178_vm2, %v7383_v29 }
0x1a13   :  { %6457 = vmatprep.subr.mxu1 %v6920_v8 }
0x1a83   :  { %v4348_v11 = vpop.permute.xlu1 %4347 }
0x1ab1   :  { %v6440_v31 = vpop.f32.mrb[44].mxu1 }
0x1ab2   :  { %v3837_v32 = vpop.f32.mrb[45].mxu1  ;;  %v7398_v34 = vadd.f32 %v6440_v31, %v5970_v30 }
0x1ab3   :  { %v7390_v33 = vadd.f32 %v5970_v30, %v3837_v32 }
0x1ab5   :  { %6455 = vmatmul.mubr.msk.f32.vlgmr.msra.gmra.mrb[46].mxu1 %vm178_vm2, %v7390_v33 }
0x1ab6   :  { %6458 = vmatpush3.xpose.msk.msra.mxu1 %vm178_vm2, %v7381_v27  ;;  %6459 = vmatprep.mubr.msk.f32.mxu1 %vm6921_vm1, %v6920_v8 }
0x1ab7   :  { %6467 = vmatprep.subr.mxu1 %v6920_v8 }
0x1ab9   :  { %6460 = vmatmul.mubr.msk.f32.vlgmr.msra.gmra.mrb[48].mxu1 %vm178_vm2, %v7398_v34 }
0x1aba   :  { %6469 = vmatprep.mubr.msk.f32.mxu1 %vm6921_vm1, %v6920_v8 }
0x1b88   :  { %v4013_v20 = vpop.f32.mrb[46].mxu1 }
0x1b89   :  { %v6456_v35 = vpop.f32.mrb[47].mxu1  ;;  %v4093_v39 = vsel %vm178_vm2, %v4013_v20, -inf }
0x1b8c   :  { %v4089_v36 = vpop.f32.mrb[48].mxu1 }
0x1b8d   :  { %v6461_v37 = vpop.f32.mrb[49].mxu1  ;;  %v4096_v38 = vsel %vm178_vm2, %v4089_v36, -inf }
0x1b8e   :  { %4097 = vmax.xlane.f32.xlu0 %v4096_v38 }
0x1ba4   :  { %4191 = vrot.lane.b32.xlu0 %v7381_v27, %s6922_s3 }
0x1bc3   :  { %4094 = vmax.xlane.f32.xlu0 %v4093_v39 }
0x1bd9   :  { %4115 = vrot.lane.b32.xlu0 %v7383_v29, %s6922_s3 }
0x1bdd   :  { %4267 = vrot.lane.b32.xlu0 %v7390_v33, %s6924_s1 }
0x1c1b   :  { %v4098_v7 = vpop.xlane.xlu0 %4097 }
0x1c1c   :  { %v4100_v40 = vsub.f32 %v4089_v36, %v4098_v7 }
0x1c1e   :  { %v4103_v5 = vmul.f32 1.442695, %v4100_v40 }
0x1c1f   :  { %v4192_v41 = vpop.permute.xlu0 %4191 }
0x1c20   :  { %6756 = vpow2.f32 %v4103_v5  ;;  %6468 = vmatpush3.msra.mxu1 %v4192_v41  ;;  %v3937_v41 = vld [vmem:[#allocation8 + $0xe8] sm:$0xff] }
0x1c21   :  { %6477 = vmatprep.subr.mxu1 %v6920_v8 }
0x1c2a   :  { %v6757_v42 = vpop.eup %6756 }
0x1c2b   :  { %v4108_v43 = vsel %vm178_vm2, %v6757_v42, 0.0 }
0x1c2c   :  { %4109 = vadd.xlane.f32.xlu1 %v4108_v43 }
0x1c3d   :  { %4345 = vrot.lane.b32.xlu1 %v7398_v34, %s6924_s1 }
0x1c50   :  { %v4095_v44 = vpop.xlane.xlu0 %4094 }
0x1c51   :  { %v4099_v45 = vsub.f32 %v4013_v20, %v4095_v44 }
0x1c53   :  { %v4101_v46 = vmul.f32 1.442695, %v4099_v45 }
0x1c54   :  { %v4116_v47 = vpop.permute.xlu0 %4115 }
0x1c55   :  { %6758 = vpow2.f32 %v4101_v46  ;;  %6463 = vmatpush3.msra.mxu0 %v4116_v47 }
0x1c56   :  { %6472 = vmatprep.subr.mxu0 %v6920_v8 }
0x1c58   :  { %v4268_v57 = vpop.permute.xlu0 %4267 }
0x1c5f   :  { %v6759_v15 = vpop.eup %6758 }
0x1c60   :  { %v4105_v48 = vsel %vm178_vm2, %v6759_v15, 0.0 }
0x1c61   :  { %4106 = vadd.xlane.f32.xlu1 %v4105_v48 }
0x1c72   :  { %4269 = vrot.lane.b32.xlu1 %v7383_v29, %s6924_s1 }
0x1cb9   :  { %v4110_v49 = vpop.xlane.xlu1 %4109 }
0x1cba   :  { %6760 = vrcp.f32 %v4110_v49 }
0x1cbd   :  { %v4346_v53 = vpop.permute.xlu1 %4345 }
0x1cc4   :  { %v6761_v50 = vpop.eup %6760 }
0x1cc5   :  { %v4114_v51 = vmul.f32 %v6761_v50, %v6757_v42  ;;  %v3936_v42 = vld [vmem:[#allocation8 + $0xe0] sm:$0xff] }
0x1cc7   :  { %6470 = vmatmul.mubr.msk.f32.vlgmr.msra.gmra.mrb[50].mxu1 %vm178_vm2, %v4114_v51 }
0x1cc8   :  { %6478 = vmatpush3.xpose.msk.msra.mxu1 %vm178_vm2, %v4348_v11  ;;  %6479 = vmatprep.mubr.msk.f32.mxu1 %vm6921_vm1, %v6920_v8 }
0x1cc9   :  { %6487 = vmatprep.subr.mxu1 %v6920_v8 }
0x1ccb   :  { %6480 = vmatmul.mubr.msk.f32.vlgmr.msra.gmra.mrb[52].mxu1 %vm178_vm2, %v4346_v53 }
0x1ccc   :  { %6489 = vmatprep.mubr.msk.f32.mxu1 %vm6921_vm1, %v6920_v8 }
0x1cee   :  { %v4107_v54 = vpop.xlane.xlu1 %4106 }
0x1cef   :  { %6762 = vrcp.f32 %v4107_v54  ;;  %v3938_v54 = vld [vmem:[#allocation8 + $0xf0] sm:$0xff] }
0x1cf2   :  { %v4270_v52 = vpop.permute.xlu1 %4269 }
0x1cf9   :  { %v6763_v55 = vpop.eup %6762 }
0x1cfa   :  { %v4113_v56 = vmul.f32 %v6763_v55, %v6759_v15 }
0x1cfc   :  { %6465 = vmatmul.mubr.msk.f32.vlgmr.msra.gmra.mrb[32].mxu0 %vm178_vm2, %v4113_v56 }
0x1cfd   :  { %6473 = vmatpush3.xpose.msk.msra.mxu0 %vm178_vm2, %v4270_v52  ;;  %6474 = vmatprep.mubr.msk.f32.mxu0 %vm6921_vm1, %v6920_v8 }
0x1cfe   :  { %6482 = vmatprep.subr.mxu0 %v6920_v8 }
0x1d00   :  { %6475 = vmatmul.mubr.msk.f32.vlgmr.msra.gmra.mrb[34].mxu0 %vm178_vm2, %v4268_v57 }
0x1d01   :  { %6484 = vmatprep.mubr.msk.f32.mxu0 %vm6921_vm1, %v6920_v8 }
0x1d9a   :  { %v7437_v58 = vpop.f32.mrb[50].mxu1 }
0x1d9b   :  { %v6471_v59 = vpop.f32.mrb[51].mxu1 }
0x1d9e   :  { %v4419_v60 = vpop.f32.mrb[52].mxu1 }
0x1d9f   :  { %v6481_v61 = vpop.f32.mrb[53].mxu1  ;;  %v4426_v62 = vsel %vm178_vm2, %v4419_v60, -inf }
0x1da0   :  { %4427 = vmax.xlane.f32.xlu1 %v4426_v62 }
0x1db1   :  { %4761 = vrot.lane.b32.xlu1 %v7383_v29, %s6928_s16 }
0x1db5   :  { %4759 = vrot.lane.b32.xlu1 %v7390_v33, %s6928_s16 }
0x1db9   :  { %4837 = vrot.lane.b32.xlu1 %v7398_v34, %s6928_s16 }
0x1dcf   :  { %v7446_v63 = vpop.f32.mrb[32].mxu0 }
0x1dd0   :  { %v6466_v0 = vpop.f32.mrb[33].mxu0 }
0x1dd3   :  { %v4341_v1 = vpop.f32.mrb[34].mxu0 }
0x1dd4   :  { %v6476_v2 = vpop.f32.mrb[35].mxu0  ;;  %v4423_v14 = vsel %vm178_vm2, %v4341_v1, -inf }
0x1e2d   :  { %v4428_v3 = vpop.xlane.xlu1 %4427 }
0x1e2e   :  { %v4430_v4 = vsub.f32 %v4419_v60, %v4428_v3 }
0x1e30   :  { %v4433_v6 = vmul.f32 1.442695, %v4430_v4 }
0x1e31   :  { %v4762_v12 = vpop.permute.xlu1 %4761 }
0x1e32   :  { %6764 = vpow2.f32 %v4433_v6 }
0x1e35   :  { %v4760_v21 = vpop.permute.xlu1 %4759 }
0x1e39   :  { %v4838_v24 = vpop.permute.xlu1 %4837 }
0x1e3c   :  { %v6765_v9 = vpop.eup %6764 }
0x1e3d   :  { %v4438_v10 = vsel %vm178_vm2, %v6765_v9, 0.0 }
0x1e3e   :  { %4439 = vadd.xlane.f32.xlu0 %v4438_v10 }
0x1e54   :  { %4521 = vrot.lane.b32.xlu0 %v7381_v27, %s6925_s13 }
0x1e58   :  { %4839 = vrot.lane.b32.xlu0 %v7381_v27, %s6928_s16 }
0x1e77   :  { %4424 = vmax.xlane.f32.xlu0 %v4423_v14 }
0x1e8d   :  { %4445 = vrot.lane.b32.xlu0 %v7383_v29, %s6925_s13 }
0x1e91   :  { %4937 = vrot.lane.b32.xlu0 %v7383_v29, %s6926_s14 }
0x1e95   :  { %5174 = vrot.lane.b32.xlu0 %v7383_v29, %s6931_s20 }
0x1e99   :  { %5252 = vrot.lane.b32.xlu0 %v7381_v27, %s6931_s20 }
0x1e9d   :  { %5172 = vrot.lane.b32.xlu0 %v7390_v33, %s6931_s20 }
0x1ea1   :  { %5250 = vrot.lane.b32.xlu0 %v7398_v34, %s6931_s20 }
0x1ecb   :  { %v4440_v16 = vpop.xlane.xlu0 %4439 }
0x1ecc   :  { %6766 = vrcp.f32 %v4440_v16 }
0x1ecf   :  { %v4522_v17 = vpop.permute.xlu0 %4521 }
0x1ed0   :  { %6488 = vmatpush3.msra.mxu1 %v4522_v17 }
0x1ed1   :  { %6502 = vmatprep.subr.mxu1 %v6920_v8 }
0x1ed3   :  { %v4840_v23 = vpop.permute.xlu0 %4839 }
0x1ed6   :  { %v6767_v18 = vpop.eup %6766 }
0x1ed7   :  { %v4444_v19 = vmul.f32 %v6767_v18, %v6765_v9 }
0x1ed9   :  { %6490 = vmatmul.mubr.msk.f32.vlgmr.msra.gmra.mrb[54].mxu1 %vm178_vm2, %v4444_v19 }
0x1eda   :  { %6503 = vmatpush3.xpose.msk.msra.mxu1 %vm178_vm2, %v4762_v12  ;;  %6504 = vmatprep.mubr.msk.f32.mxu1 %vm6921_vm1, %v6920_v8 }
0x1edb   :  { %6507 = vmatprep.subr.mxu1 %v6920_v8 }
0x1edd   :  { %6505 = vmatmul.mubr.msk.f32.vlgmr.msra.gmra.mrb[56].mxu1 %vm178_vm2, %v4760_v21 }
0x1ede   :  { %6508 = vmatpush3.xpose.msk.msra.mxu1 %vm178_vm2, %v4840_v23  ;;  %6509 = vmatprep.mubr.msk.f32.mxu1 %vm6921_vm1, %v6920_v8 }
0x1edf   :  { %6517 = vmatprep.subr.mxu1 %v6920_v8 }
0x1ee1   :  { %6510 = vmatmul.mubr.msk.f32.vlgmr.msra.gmra.mrb[58].mxu1 %vm178_vm2, %v4838_v24 }
0x1ee2   :  { %6519 = vmatprep.mubr.msk.f32.mxu1 %vm6921_vm1, %v6920_v8 }
0x1f04   :  { %v4425_v26 = vpop.xlane.xlu0 %4424 }
0x1f05   :  { %v4429_v22 = vsub.f32 %v4341_v1, %v4425_v26 }
0x1f07   :  { %v4431_v28 = vmul.f32 1.442695, %v4429_v22 }
0x1f08   :  { %v4446_v30 = vpop.permute.xlu0 %4445 }
0x1f09   :  { %6768 = vpow2.f32 %v4431_v28  ;;  %6483 = vmatpush3.msra.mxu0 %v4446_v30 }
0x1f0a   :  { %6492 = vmatprep.subr.mxu0 %v3937_v41 }
0x1f0c   :  { %v4938_v55 = vpop.permute.xlu0 %4937 }
0x1f10   :  { %v5175_v59 = vpop.permute.xlu0 %5174 }
0x1f13   :  { %v6769_v31 = vpop.eup %6768 }
0x1f14   :  { %v4435_v32 = vsel %vm178_vm2, %v6769_v31, 0.0 }
0x1f15   :  { %4436 = vadd.xlane.f32.xlu1 %v4435_v32 }
0x1fa2   :  { %v4437_v33 = vpop.xlane.xlu1 %4436 }
0x1fa3   :  { %6770 = vrcp.f32 %v4437_v33 }
0x1fac   :  { %v4593_v34 = vpop.f32.mrb[54].mxu1 }
0x1fad   :  { %v6771_v20 = vpop.eup %6770  ;;  %v6491_v35 = vpop.f32.mrb[55].mxu1 }
0x1fae   :  { %v4443_v36 = vmul.f32 %v6771_v20, %v6769_v31  ;;  %v3939_v20 = vld [vmem:[#allocation8 + $0xf8] sm:$0xff] }
0x1fb0   :  { %6485 = vmatmul.mubr.msk.f32.vlgmr.msra.gmra.mrb[36].mxu0 %vm178_vm2, %v4443_v36  ;;  %v4833_v37 = vpop.f32.mrb[56].mxu1 }
0x1fb1   :  { %v6506_v38 = vpop.f32.mrb[57].mxu1  ;;  %v4915_v39 = vsel %vm178_vm2, %v4833_v37, -inf  ;;  %6493 = vmatpush3.msra.mxu0 %v3937_v41 }
0x1fb2   :  { %4916 = vmax.xlane.f32.xlu1 %v4915_v39  ;;  %6497 = vmatprep.subr.mxu0 %v3936_v42 }
0x1fb4   :  { %v4911_v7 = vpop.f32.mrb[58].mxu1 }
0x1fb5   :  { %v6511_v40 = vpop.f32.mrb[59].mxu1  ;;  %v4918_v5 = vsel %vm178_vm2, %v4911_v7, -inf }
0x1fb6   :  { %4919 = vmax.xlane.f32.xlu1 %v4918_v5 }
0x203f   :  { %v4917_v43 = vpop.xlane.xlu1 %4916 }
0x2040   :  { %v4921_v44 = vsub.f32 %v4833_v37, %v4917_v43 }
0x2042   :  { %v4923_v45 = vmul.f32 1.442695, %v4921_v44 }
0x2043   :  { %v4920_v46 = vpop.xlane.xlu1 %4919 }
0x2044   :  { %6772 = vpow2.f32 %v4923_v45  ;;  %v4922_v47 = vsub.f32 %v4911_v7, %v4920_v46 }
0x2046   :  { %v4925_v15 = vmul.f32 1.442695, %v4922_v47 }
0x2048   :  { %6774 = vpow2.f32 %v4925_v15 }
0x204e   :  { %v6773_v48 = vpop.eup %6772 }
0x204f   :  { %v4927_v11 = vsel %vm178_vm2, %v6773_v48, 0.0 }
0x2050   :  { %4928 = vadd.xlane.f32.xlu1 %v4927_v11 }
0x2052   :  { %v6775_v49 = vpop.eup %6774 }
0x2053   :  { %v4930_v50 = vsel %vm178_vm2, %v6775_v49, 0.0 }
0x2054   :  { %4931 = vadd.xlane.f32.xlu1 %v4930_v50  ;;  %v5637_v50 = vld [vmem:[#allocation8 + $0x100] sm:$0xff] }
0x2065   :  { %5013 = vrot.lane.b32.xlu1 %v7381_v27, %s6926_s14 }
0x2083   :  { %v4517_v51 = vpop.f32.mrb[36].mxu0 }
0x2084   :  { %v6486_v53 = vpop.f32.mrb[37].mxu0  ;;  %6494 = vmatprep.mubr.msk.f32.mxu0 %vm178_vm2, %v4517_v51  ;;  %v5638_v51 = vld [vmem:[#allocation8 + $0x108] sm:$0xff] }
0x2085   :  { %6495 = vmatmul.mubr.msk.f32.vlgmr.msra.gmra.mrb[38].mxu0 %vm178_vm2, %v4593_v34  ;;  %v5639_v53 = vld [vmem:[#allocation8 + $0x110] sm:$0xff] }
0x2086   :  { %6499 = vmatprep.mubr.msk.f32.mxu0 %vm178_vm2, %v7446_v63  ;;  %6498 = vmatpush3.msra.mxu0 %v3936_v42 }
0x2087   :  { %6512 = vmatprep.subr.mxu0 %v6920_v8 }
0x208d   :  { %6500 = vmatmul.mubr.msk.f32.vlgmr.msra.gmra.mrb[38].mxu0 %vm178_vm2, %v7437_v58  ;;  %v5253_v58 = vpop.permute.xlu0 %5252 }
0x208e   :  { %6513 = vmatpush3.msra.mxu0 %v4938_v55  ;;  %6514 = vmatprep.mubr.msk.f32.mxu0 %vm6921_vm1, %v6920_v8  ;;  %v5729_v55 = vld [vmem:[#allocation8 + $0x120] sm:$0xff] }
0x208f   :  { %6522 = vmatprep.subr.mxu0 %v3938_v54 }
0x2091   :  { %v5173_v0 = vpop.permute.xlu0 %5172 }
0x2095   :  { %v5251_v6 = vpop.permute.xlu0 %5250 }
0x20dd   :  { %v4929_v56 = vpop.xlane.xlu1 %4928 }
0x20de   :  { %6776 = vrcp.f32 %v4929_v56  ;;  %v5730_v56 = vld [vmem:[#allocation8 + $0x128] sm:$0xff] }
0x20e1   :  { %v4932_v52 = vpop.xlane.xlu1 %4931 }
0x20e2   :  { %6778 = vrcp.f32 %v4932_v52  ;;  %v5731_v52 = vld [vmem:[#allocation8 + $0x130] sm:$0xff] }
0x20e5   :  { %v5014_v57 = vpop.permute.xlu1 %5013 }
0x20e6   :  { %6518 = vmatpush3.msra.mxu1 %v5014_v57  ;;  %v6630_v57 = vpack.c.bf16 %v5730_v56, %v5729_v55 }
0x20e7   :  { %6527 = vmatprep.subr.mxu1 %v6920_v8 }
0x20e8   :  { %v6777_v60 = vpop.eup %6776 }
0x20e9   :  { %v4935_v61 = vmul.f32 %v6777_v60, %v6773_v48 }
0x20eb   :  { %6515 = vmatmul.mubr.msk.f32.vlgmr.msra.gmra.mrb[40].mxu0 %vm178_vm2, %v4935_v61  ;;  %v5733_v61 = vld [vmem:[#allocation8 + $0x140] sm:$0xff] }
0x20ec   :  { %v6779_v62 = vpop.eup %6778  ;;  %6523 = vmatpush3.msra.mxu0 %v3938_v54  ;;  %v5640_v54 = vld [vmem:[#allocation8 + $0x118] sm:$0xff] }
0x20ed   :  { %v4936_v63 = vmul.f32 %v6779_v62, %v6775_v49  ;;  %6532 = vmatprep.subr.mxu0 %v6920_v8  ;;  %v5734_v62 = vld [vmem:[#allocation8 + $0x148] sm:$0xff] }
0x20ef   :  { %6520 = vmatmul.mubr.msk.f32.vlgmr.msra.gmra.mrb[60].mxu1 %vm178_vm2, %v4936_v63 }
0x20f0   :  { %6528 = vmatpush3.xpose.msk.msra.mxu1 %vm178_vm2, %v5175_v59  ;;  %6529 = vmatprep.mubr.msk.f32.mxu1 %vm6921_vm1, %v6920_v8  ;;  %v5732_v59 = vld [vmem:[#allocation8 + $0x138] sm:$0xff] }
0x20f1   :  { %6537 = vmatprep.subr.mxu1 %v6920_v8  ;;  %v6634_v60 = vpack.c.bf16 %v5732_v59, %v5731_v52 }
0x20f3   :  { %6530 = vmatmul.mubr.msk.f32.vlgmr.msra.gmra.mrb[62].mxu1 %vm178_vm2, %v5173_v0 }
0x20f4   :  { %6539 = vmatprep.mubr.msk.f32.mxu1 %vm6921_vm1, %v6920_v8 }
0x21be   :  { %v5009_v1 = vpop.f32.mrb[40].mxu0 }
0x21bf   :  { %v6516_v2 = vpop.f32.mrb[41].mxu0  ;;  %6524 = vmatprep.mubr.msk.f32.mxu0 %vm178_vm2, %v5009_v1 }
0x21c2   :  { %v5085_v3 = vpop.f32.mrb[60].mxu1 }
0x21c3   :  { %v6521_v4 = vpop.f32.mrb[61].mxu1  ;;  %6525 = vmatmul.mubr.msk.f32.vlgmr.msra.gmra.mrb[38].mxu0 %vm178_vm2, %v5085_v3 }
0x21c4   :  { %6533 = vmatpush3.xpose.msk.msra.mxu0 %vm178_vm2, %v5253_v58  ;;  %6534 = vmatprep.mubr.msk.f32.mxu0 %vm6921_vm1, %v6920_v8  ;;  %v6638_v58 = vpack.c.bf16 %v5734_v62, %v5733_v61 }
0x21c5   :  { %6542 = vmatprep.subr.mxu0 %v6920_v8 }
0x21c6   :  { %v5246_v9 = vpop.f32.mrb[62].mxu1 }
0x21c7   :  { %v6531_v10 = vpop.f32.mrb[63].mxu1  ;;  %6535 = vmatmul.mubr.msk.f32.vlgmr.msra.gmra.mrb[42].mxu0 %vm178_vm2, %v5251_v6  ;;  %v5328_v14 = vsel %vm178_vm2, %v5246_v9, -inf }
0x21c8   :  { %5329 = vmax.xlane.f32.xlu1 %v5328_v14  ;;  %6544 = vmatprep.mubr.msk.f32.mxu0 %vm6921_vm1, %v6920_v8 }
0x2255   :  { %v5330_v16 = vpop.xlane.xlu1 %5329 }
0x2256   :  { %v5334_v17 = vsub.f32 %v5246_v9, %v5330_v16 }
0x2258   :  { %v5336_v12 = vmul.f32 1.442695, %v5334_v17 }
0x225a   :  { %6780 = vpow2.f32 %v5336_v12 }
0x2264   :  { %v6781_v23 = vpop.eup %6780 }
0x2265   :  { %v5340_v24 = vsel %vm178_vm2, %v6781_v23, 0.0 }
0x229a   :  { %v5324_v18 = vpop.f32.mrb[42].mxu0 }
0x229b   :  { %v6536_v19 = vpop.f32.mrb[43].mxu0  ;;  %v5331_v21 = vsel %vm178_vm2, %v5324_v18, -inf }
0x229c   :  { %5332 = vmax.xlane.f32.xlu0 %v5331_v21 }
0x22a0   :  { %5341 = vadd.xlane.f32.xlu0 %v5340_v24  ;;  %v6009_v24 = vld [vmem:[#allocation8 + $0x16c] ss:$0 sm:$0xff] }
0x22b6   :  { %5350 = vrot.lane.b32.xlu0 %v7383_v29, %s6930_s19 }
0x2329   :  { %v5333_v26 = vpop.xlane.xlu0 %5332 }
0x232a   :  { %v5335_v22 = vsub.f32 %v5324_v18, %v5333_v26 }
0x232c   :  { %v5338_v28 = vmul.f32 1.442695, %v5335_v22 }
0x232d   :  { %v5342_v8 = vpop.xlane.xlu0 %5341 }
0x232e   :  { %6782 = vpow2.f32 %v5338_v28 }
0x232f   :  { %6784 = vrcp.f32 %v5342_v8  ;;  %v6010_v8 = vld [vmem:[#allocation8 + $0x16d] ss:$0 sm:$0xff] }
0x2331   :  { %v5351_v30 = vpop.permute.xlu0 %5350 }
0x2332   :  { %6538 = vmatpush3.msra.mxu1 %v5351_v30 }
0x2338   :  { %v6783_v31 = vpop.eup %6782 }
0x2339   :  { %v6785_v32 = vpop.eup %6784  ;;  %v5343_v33 = vsel %vm178_vm2, %v6783_v31, 0.0 }
0x233a   :  { %v5348_v34 = vmul.f32 %v6785_v32, %v6781_v23  ;;  %5344 = vadd.xlane.f32.xlu1 %v5343_v33 }
0x233c   :  { %6540 = vmatmul.mubr.msk.f32.vlgmr.msra.gmra.mrb[64].mxu1 %vm178_vm2, %v5348_v34  ;;  %v5735_v34 = vld [vmem:[#allocation8 + $0x150] sm:$0xff] }
0x234b   :  { %5426 = vrot.lane.b32.xlu1 %v7381_v27, %s6930_s19  ;;  %v6008_v27 = vld [vmem:[#allocation8 + $0x16b] ss:$0 sm:$0xff] }
0x23c7   :  { %v5345_v29 = vpop.xlane.xlu1 %5344 }
0x23c8   :  { %6786 = vrcp.f32 %v5345_v29  ;;  %v5736_v29 = vld [vmem:[#allocation8 + $0x158] sm:$0xff] }
0x23cb   :  { %v5427_v35 = vpop.permute.xlu1 %5426 }
0x23cc   :  { %6543 = vmatpush3.msra.mxu0 %v5427_v35  ;;  %v6011_v35 = vld [vmem:[#allocation8 + $0x16e] ss:$0 sm:$0xff] }
0x23cd   :  { %6547 = vmatprep.subr.mxu0 %v3939_v20 }
0x23d2   :  { %v6787_v36 = vpop.eup %6786 }
0x23d3   :  { %v5349_v37 = vmul.f32 %v6787_v36, %v6783_v31 }
0x23d5   :  { %6545 = vmatmul.mubr.msk.f32.vlgmr.msra.gmra.mrb[44].mxu0 %vm178_vm2, %v5349_v37 }
0x23d6   :  { %6548 = vmatpush3.msra.mxu0 %v3939_v20  ;;  %v6642_v20 = vpack.c.bf16 %v5736_v29, %v5735_v34 }
0x23d7   :  { %6631 = vmatprep.subr.bf16.mxu0 %v6630_v57 }
0x240f   :  { %v5422_v38 = vpop.f32.mrb[64].mxu1 }
0x2410   :  { %v6541_v39 = vpop.f32.mrb[65].mxu1  ;;  %6549 = vmatprep.mubr.msk.f32.mxu0 %vm178_vm2, %v5422_v38 }
0x24a8   :  { %v5498_v7 = vpop.f32.mrb[44].mxu0 }
0x24a9   :  { %v6546_v40 = vpop.f32.mrb[45].mxu0  ;;  %6550 = vmatmul.mubr.msk.f32.vlgmr.msra.gmra.mrb[38].mxu0 %vm178_vm2, %v5498_v7 }
0x24aa   :  { %6633 = vmatpush3.bf16.msra.mxu0 %v6630_v57 }
0x24ab   :  { %6635 = vmatprep.subr.bf16.mxu0 %v6634_v60 }
0x24ae   :  { %6637 = vmatpush3.bf16.msra.mxu0 %v6634_v60 }
0x24af   :  { %6639 = vmatprep.subr.bf16.mxu0 %v6638_v58 }
0x24b2   :  { %6641 = vmatpush3.bf16.msra.mxu0 %v6638_v58 }
0x24b3   :  { %6643 = vmatprep.subr.bf16.mxu0 %v6642_v20 }
0x24b6   :  { %6645 = vmatpush3.bf16.msra.mxu0 %v6642_v20 }
0x257c   :  { %v6551_v5 = vpop.f32.mrb[38].mxu0 }
0x257d   :  { %v5590_v41 = vadd.f32 %v6551_v5, %v6008_v27  ;;  %v5574_v42 = vpop.f32.mrb[39].mxu0 }
0x257e   :  { %v5589_v43 = vadd.f32 %v6008_v27, %v5574_v42  ;;  %v6014_v27 = vld [vmem:[#allocation8 + $0x16f] ss:$0 sm:$0xff] }
0x257f   :  { %v5592_v44 = vadd.f32 %v5590_v41, %v7373_v25  ;;  %v6622_v25 = vpack.c.bf16 %v5638_v51, %v5637_v50 }
0x2580   :  { %v5591_v45 = vadd.f32 %v5589_v43, %v7371_v13  ;;  %v6626_v13 = vpack.c.bf16 %v5640_v54, %v5639_v53 }
0x2581   :  { %v5596_v46 = vsel %vm88_vm0, %v5592_v44, 0.0  ;;  %v5602_v48 = vmul.f32 %v5592_v44, %v5592_v44  ;;  %6623 = vmatprep.subr.bf16.mxu1 %v6622_v25 }
0x2582   :  { %5597 = vadd.xlane.f32.xlu0 %v5596_v46  ;;  %v5593_v47 = vsel %vm88_vm0, %v5591_v45, 0.0  ;;  %v5601_v15 = vmul.f32 %v5591_v45, %v5591_v45  ;;  %6625 = vmatpush3.bf16.msra.mxu1 %v6622_v25 }
0x2583   :  { %5594 = vadd.xlane.f32.xlu1 %v5593_v47  ;;  %v5606_v49 = vsel %vm88_vm0, %v5602_v48, 0.0  ;;  %6627 = vmatprep.subr.bf16.mxu1 %v6626_v13 }
0x2584   :  { %v5603_v11 = vsel %vm88_vm0, %v5601_v15, 0.0 }
0x2586   :  { %5604 = vadd.xlane.f32.xlu0 %v5603_v11  ;;  %6629 = vmatpush3.bf16.msra.mxu1 %v6626_v13 }
0x2587   :  { %5607 = vadd.xlane.f32.xlu1 %v5606_v49 }
0x260f   :  { %v5598_v63 = vpop.xlane.xlu0 %5597 }
0x2610   :  { %v5595_v0 = vpop.xlane.xlu1 %5594  ;;  %v5600_v1 = vmul.f32 0.03125, %v5598_v63 }
0x2611   :  { %v5599_v2 = vmul.f32 0.03125, %v5595_v0 }
0x2612   :  { %v5612_v10 = vmul.f32 %v5600_v1, %v5600_v1  ;;  %v5616_v23 = vsub.f32 %v5592_v44, %v5600_v1  ;;  %v6017_v1 = vld [vmem:[#allocation8 + $0x170] ss:$0 sm:$0xff] }
0x2613   :  { %v5611_v3 = vmul.f32 %v5599_v2, %v5599_v2  ;;  %v5605_v4 = vpop.xlane.xlu0 %5604  ;;  %v5615_v19 = vsub.f32 %v5591_v45, %v5599_v2 }
0x2614   :  { %v5609_v6 = vmul.f32 0.03125, %v5605_v4  ;;  %v5608_v9 = vpop.xlane.xlu1 %5607 }
0x2615   :  { %v5610_v14 = vmul.f32 0.03125, %v5608_v9 }
0x2616   :  { %v5613_v16 = vsub.f32 %v5609_v6, %v5611_v3  ;;  %v6018_v6 = vld [vmem:[#allocation8 + $0x171] ss:$0 sm:$0xff] }
0x2617   :  { %v5614_v17 = vsub.f32 %v5610_v14, %v5612_v10 }
0x2618   :  { %v5617_v12 = vadd.f32 1e-05, %v5613_v16 }
0x2619   :  { %v5618_v18 = vadd.f32 1e-05, %v5614_v17 }
0x261a   :  { %6788 = vrsqrt.f32 %v5617_v12 }
0x261b   :  { %6790 = vrsqrt.f32 %v5618_v18 }
0x2624   :  { %v6789_v21 = vpop.eup %6788 }
0x2625   :  { %v6791_v26 = vpop.eup %6790  ;;  %v5621_v22 = vmul.f32 %v6789_v21, %v5615_v19 }
0x2626   :  { %v5622_v28 = vmul.f32 %v6791_v26, %v5616_v23 }
0x2627   :  { %v5628_v30 = vmul.f32 %v6009_v24, %v5621_v22 }
0x2628   :  { %v5629_v31 = vmul.f32 %v6009_v24, %v5622_v28 }
0x2629   :  { %v5635_v32 = vadd.f32 %v6010_v8, %v5628_v30 }
0x262a   :  { %v5636_v33 = vadd.f32 %v6010_v8, %v5629_v31 }
0x262b   :  { %6560 = vmatprep.mubr.msk.f32.mxu1 %vm88_vm0, %v5635_v32 }
0x262c   :  { %6561 = vmatmul.mubr.msk.f32.vlgmr.msra.gmra.mrb[66].mxu1 %vm88_vm0, %v5636_v33 }
0x26ff   :  { %v6562_v36 = vpop.f32.mrb[66].mxu1 }
0x2700   :  { %v5724_v37 = vadd.f32 %v6562_v36, %v6011_v35  ;;  %v5718_v38 = vpop.f32.mrb[67].mxu1 }
0x2701   :  { %v5719_v39 = vadd.f32 %v6011_v35, %v5718_v38 }
0x2702   :  { %v5728_v40 = vmax.f32 %v5724_v37, 0.0 }
0x2703   :  { %v5727_v7 = vmax.f32 %v5719_v39, 0.0 }
0x2705   :  { %6579 = vmatprep.mubr.msk.f32.mxu0 %vm5742_vm3, %v5727_v7 }
0x2706   :  { %6580 = vmatmul.mubr.msk.f32.vlgmr.msra.gmra.mrb[46].mxu0 %vm5742_vm3, %v5728_v40 }
0x27d9   :  { %v6581_v5 = vpop.f32.mrb[46].mxu0 }
0x27da   :  { %v5821_v41 = vadd.f32 %v6581_v5, %v6014_v27  ;;  %v5815_v42 = vpop.f32.mrb[47].mxu0 }
0x27db   :  { %v5816_v43 = vadd.f32 %v6014_v27, %v5815_v42 }
0x27dc   :  { %v5825_v44 = vadd.f32 %v5821_v41, %v5636_v33 }
0x27dd   :  { %v5824_v45 = vadd.f32 %v5816_v43, %v5635_v32 }
0x27de   :  { %v5829_v46 = vsel %vm88_vm0, %v5825_v44, 0.0  ;;  %v5835_v47 = vmul.f32 %v5825_v44, %v5825_v44 }
0x27df   :  { %5830 = vadd.xlane.f32.xlu1 %v5829_v46  ;;  %v5826_v15 = vsel %vm88_vm0, %v5824_v45, 0.0  ;;  %v5834_v48 = vmul.f32 %v5824_v45, %v5824_v45 }
0x27e0   :  { %5827 = vadd.xlane.f32.xlu0 %v5826_v15  ;;  %v5839_v11 = vsel %vm88_vm0, %v5835_v47, 0.0 }
0x27e1   :  { %v5836_v49 = vsel %vm88_vm0, %v5834_v48, 0.0 }
0x27e3   :  { %5840 = vadd.xlane.f32.xlu1 %v5839_v11 }
0x27e4   :  { %5837 = vadd.xlane.f32.xlu0 %v5836_v49 }
0x286c   :  { %v5831_v50 = vpop.xlane.xlu1 %5830 }
0x286d   :  { %v5833_v51 = vmul.f32 0.03125, %v5831_v50  ;;  %v5828_v53 = vpop.xlane.xlu0 %5827 }
0x286e   :  { %v5832_v25 = vmul.f32 0.03125, %v5828_v53 }
0x286f   :  { %v5845_v13 = vmul.f32 %v5833_v51, %v5833_v51  ;;  %v5849_v58 = vsub.f32 %v5825_v44, %v5833_v51 }
0x2870   :  { %v5841_v54 = vpop.xlane.xlu1 %5840  ;;  %v5844_v52 = vmul.f32 %v5832_v25, %v5832_v25  ;;  %v5848_v0 = vsub.f32 %v5824_v45, %v5832_v25 }
0x2871   :  { %v5843_v55 = vmul.f32 0.03125, %v5841_v54  ;;  %v5838_v56 = vpop.xlane.xlu0 %5837 }
0x2872   :  { %v5842_v57 = vmul.f32 0.03125, %v5838_v56 }
0x2873   :  { %v5847_v59 = vsub.f32 %v5843_v55, %v5845_v13 }
0x2874   :  { %v5846_v60 = vsub.f32 %v5842_v57, %v5844_v52 }
0x2875   :  { %v5851_v61 = vadd.f32 1e-05, %v5847_v59 }
0x2876   :  { %v5850_v62 = vadd.f32 1e-05, %v5846_v60 }
0x2877   :  { %6792 = vrsqrt.f32 %v5851_v61 }
0x2878   :  { %6794 = vrsqrt.f32 %v5850_v62 }
0x2881   :  { %v6793_v63 = vpop.eup %6792 }
0x2882   :  { %v6795_v2 = vpop.eup %6794  ;;  %v5855_v3 = vmul.f32 %v6793_v63, %v5849_v58 }
0x2883   :  { %v5854_v4 = vmul.f32 %v6795_v2, %v5848_v0 }
0x2884   :  { %v5862_v9 = vmul.f32 %v6017_v1, %v5855_v3 }
0x2885   :  { %v5861_v10 = vmul.f32 %v6017_v1, %v5854_v4 }
0x2886   :  { %v5869_v14 = vadd.f32 %v6018_v6, %v5862_v9 }
0x2887   :  { %v5868_v16 = vadd.f32 %v6018_v6, %v5861_v10 }
0x2888   :  { %5871 = vst.msk [vmem:[#allocation10 + $0x8] sm:$0xff] %vm88_vm0, %v5869_v14 }
0x2889   :  { %5870 = vst.msk [vmem:[#allocation10] sm:$0xff] %vm88_vm0, %v5868_v16 }
0x288a   :  { %6895 = shalt.err (!%p6892_p8)
}
0x288b   :  { %s6896_s18 = scalar_lea.hbm %s7562_s4, 256 }
0x288c   :  { %p6897_p9 = scmp.ne.s32.totalorder %s7562_s4, %s6896_s18  ;;  %p6900_p10 = scmp.lt.u32.totalorder %s6896_s18, %s7562_s4 }
0x288e   :  { %p6902_p11 = pnand %p6900_p10, %p6897_p9 }
0x2890   :  { %6905 = shalt.err (!%p6902_p11)
}
0x2891   :  { %5883 = dma.vmem_to_hbm [thread:$0]  %s5878_s23, 256, %s7562_s4, [#allocation4], %s6916_s27, %s6916_s27, %s6917_s28  }
0x2892   :  { %6912 = dma.done.wait [#allocation4], 256  }
0x2893   :  { %6913 = vsyncadd [#allocation4], 4294967040 }
0x2894   :  { %5887 = vsyncpa [#allocation3], 1 }
0x2895   :  { %5888 = vsyncpa [#allocation6], 1 }
0x2896   :  { %5889 = vsyncpa [#allocation9], 1 }
0x2897   :  { %5890 = vsyncpa [#allocation4], 1 }

</bundles_post_ra>
